<compile_context>
chip_gen: v6e
topology: v6e:2x2x1
jax: 0.10.0
libtpu: 0.0.40
codegen_flags: <defaults>
</compile_context>

<pallas_src>
import functools

import numpy as np
import jax
import jax.numpy as jnp
from jax.experimental import pallas as pl
from jax.experimental.pallas import tpu as pltpu

EPS = 1e-5
LANE = 128
SUB = 8

try:  # generation-aware VMEM budget (v5e/v6e: 128 MiB, v7x: 64 MiB per TC)
    _VMEM_LIMIT = int(min(pltpu.get_tpu_info().vmem_capacity_bytes // 2,
                          64 * 1024 * 1024))
except Exception:  # pragma: no cover - conservative fallback
    _VMEM_LIMIT = 32 * 1024 * 1024


def _round_up(x, m):
    return (x + m - 1) // m * m


# --------------------------------------------------------------------------
# Kernel 1: conv3x3 (9-tap, in-VMEM im2col) + bias + masked BN partial stats
# --------------------------------------------------------------------------
def _conv_bn_stats_kernel(xg_hbm, w_ref, b_ref, mask_ref,
                          y_ref, sum_ref, ssq_ref,
                          xwin, sem,
                          *, tile_m, guard, win, lead, n_inner, tap_offs,
                          cout_p):
    o = pl.program_id(0)           # parallel (megacore) axis
    it = pl.program_id(1)          # sequential axis (manual double buffering)
    tile = o * n_inner + it

    def dma(t, slot):
        # window start is a multiple of 16 by construction (bf16 tile aligned)
        start = pl.multiple_of(lead + t * tile_m - guard, 16)
        return pltpu.make_async_copy(xg_hbm.at[pl.ds(start, win)],
                                     xwin.at[slot], sem.at[slot])

    @pl.when(it == 0)              # prime this core's pipeline
    def _prime():
        dma(tile, 0).start()

    @pl.when(it + 1 < n_inner)     # prefetch next tile's window
    def _prefetch():
        dma(tile + 1, (it + 1) % 2).start()

    slot = it % 2
    dma(tile, slot).wait()

    xcur = xwin[slot]                                  # (win, cin_p) bf16
    acc = jnp.zeros((tile_m, cout_p), jnp.float32)
    for t, off in enumerate(tap_offs):                 # static 9-tap unroll
        xs = xcur[guard + off:guard + off + tile_m, :]
        acc = acc + jnp.dot(xs, w_ref[t],
                            preferred_element_type=jnp.float32)
    y = acc + b_ref[...]                               # bias (1, cout_p)
    y_ref[...] = y

    # masked partial sums for BatchNorm batch statistics (valid rows only)
    m = mask_ref[...]                                  # (tile_m, 1) 0/1 f32
    ym = y * m
    sum_ref[...] = jnp.broadcast_to(
        jnp.sum(ym, axis=0, keepdims=True), (SUB, cout_p))
    ssq_ref[...] = jnp.broadcast_to(
        jnp.sum(ym * y, axis=0, keepdims=True), (SUB, cout_p))


def _conv_pass(xg, w9, bias, mask, *, tile_m, guard, win, lead,
               n_outer, n_inner, tap_offs):
    L, cin_p = xg.shape
    cout_p = w9.shape[2]
    n_tiles = n_outer * n_inner

    kern = functools.partial(
        _conv_bn_stats_kernel, tile_m=tile_m, guard=guard, win=win, lead=lead,
        n_inner=n_inner, tap_offs=tap_offs, cout_p=cout_p)

    grid_spec = pltpu.PrefetchScalarGridSpec(
        num_scalar_prefetch=0,
        grid=(n_outer, n_inner),
        in_specs=[
            pl.BlockSpec(memory_space=pl.ANY),                    # xg in HBM
            pl.BlockSpec((9, cin_p, cout_p), lambda o, i: (0, 0, 0)),  # weights
            pl.BlockSpec((1, cout_p), lambda o, i: (0, 0)),            # bias
            pl.BlockSpec((tile_m, 1),
                         lambda o, i: (o * n_inner + i + 1, 0)),       # mask
        ],
        out_specs=[
            pl.BlockSpec((tile_m, cout_p),
                         lambda o, i: (o * n_inner + i + 1, 0)),       # conv y
            pl.BlockSpec((SUB, cout_p),
                         lambda o, i: (o * n_inner + i, 0)),           # sum
            pl.BlockSpec((SUB, cout_p),
                         lambda o, i: (o * n_inner + i, 0)),           # sumsq
        ],
        scratch_shapes=[
            pltpu.VMEM((2, win, cin_p), jnp.bfloat16),   # double-buffered window
            pltpu.SemaphoreType.DMA((2,)),
        ])

    return pl.pallas_call(
        kern,
        grid_spec=grid_spec,
        out_shape=(
            jax.ShapeDtypeStruct((L, cout_p), jnp.float32),
            jax.ShapeDtypeStruct((n_tiles * SUB, cout_p), jnp.float32),
            jax.ShapeDtypeStruct((n_tiles * SUB, cout_p), jnp.float32),
        ),
        compiler_params=pltpu.CompilerParams(
            dimension_semantics=("parallel", "arbitrary"),
            vmem_limit_bytes=_VMEM_LIMIT),
    )(xg, w9, bias, mask)


# --------------------------------------------------------------------------
# Kernel 2: fused BN affine + ReLU + border re-zeroing (output feeds next conv)
# --------------------------------------------------------------------------
def _bn_relu_kernel(y_ref, s_ref, t_ref, m_ref, o_ref):
    z = jnp.maximum(y_ref[...] * s_ref[...] + t_ref[...], 0.0)
    o_ref[...] = jnp.where(m_ref[...] > 0.0, z, 0.0).astype(o_ref.dtype)


def _bn_relu_pass(y, scale, shift, mask, *, tile_m, out_dtype):
    L, c = y.shape
    n_blk = L // tile_m
    grid_spec = pltpu.PrefetchScalarGridSpec(
        num_scalar_prefetch=0,
        grid=(n_blk,),
        in_specs=[
            pl.BlockSpec((tile_m, c), lambda j: (j, 0)),
            pl.BlockSpec((1, c), lambda j: (0, 0)),
            pl.BlockSpec((1, c), lambda j: (0, 0)),
            pl.BlockSpec((tile_m, 1), lambda j: (j, 0)),
        ],
        out_specs=pl.BlockSpec((tile_m, c), lambda j: (j, 0)))
    return pl.pallas_call(
        _bn_relu_kernel,
        grid_spec=grid_spec,
        out_shape=jax.ShapeDtypeStruct((L, c), out_dtype),
        compiler_params=pltpu.CompilerParams(
            dimension_semantics=("parallel",),
            vmem_limit_bytes=_VMEM_LIMIT),
    )(y, scale, shift, mask)


# --------------------------------------------------------------------------
# Geometry of the flattened, guarded slab layout
# --------------------------------------------------------------------------
def _geometry(n, h, w):
    hp, wp = h + 2, w + 2
    mp = n * hp * wp                         # rows at padded spatial resolution
    tile_m = 512 if mp >= 4096 else 256      # 512-row tiles for big inputs
    # TODO(synk): very wide images (W+3 > tile_m) would need a larger tile_m.
    assert wp + 1 <= tile_m, "image too wide for the chosen tile size"
    guard = _round_up(wp + 1, 16)            # keep DMA window starts 16-aligned
    win = tile_m + 2 * guard
    lead = tile_m                            # leading zero guard = one tile
    n_t0 = -(-mp // tile_m)
    n_outer = 2 if n_t0 >= 2 else 1          # megacore split (v7x: 2 TCs)
    n_tiles = _round_up(n_t0, n_outer)
    n_inner = n_tiles // n_outer
    mp_pad = n_tiles * tile_m
    L = mp_pad + 2 * tile_m                  # lead guard + data + tail guard

    # constant tap offsets on the padded flat index: (dy-1)*Wp + (dx-1)
    tap_offs = tuple((dy - 1) * wp + (dx - 1)
                     for dy in range(3) for dx in range(3))

    # validity mask over the slab: interior (non-border, non-guard) rows only
    r = np.arange(L) - lead
    xp_ = r % wp
    yp_ = (r // wp) % hp
    valid = ((r >= 0) & (r < mp) &
             (xp_ >= 1) & (xp_ <= w) & (yp_ >= 1) & (yp_ <= h))
    mask = jnp.asarray(valid.astype(np.float32)).reshape(L, 1)

    return dict(hp=hp, wp=wp, mp=mp, tile_m=tile_m, guard=guard, win=win,
                lead=lead, n_outer=n_outer, n_inner=n_inner, L=L,
                tap_offs=tap_offs, mask=mask, count=n * h * w)


# --------------------------------------------------------------------------
# ConvBlock / Bridge forward
# --------------------------------------------------------------------------
def _conv_block(xg, cb, geo, *, out_dtype):
    y, sums, ssqs = _conv_pass(
        xg, cb["w"], cb["b"], geo["mask"],
        tile_m=geo["tile_m"], guard=geo["guard"], win=geo["win"],
        lead=geo["lead"], n_outer=geo["n_outer"], n_inner=geo["n_inner"],
        tap_offs=geo["tap_offs"])

    cout_p = cb["w"].shape[2]
    cnt = float(geo["count"])
    s = jnp.sum(sums.reshape(-1, SUB, cout_p)[:, 0, :], axis=0)
    q = jnp.sum(ssqs.reshape(-1, SUB, cout_p)[:, 0, :], axis=0)
    mean = s / cnt
    var = jnp.maximum(q / cnt - mean * mean, 0.0)   # biased (torch training)
    scale = cb["gamma"] * jax.lax.rsqrt(var + EPS)
    shift = cb["beta"] - mean * scale

    return _bn_relu_pass(y, scale.reshape(1, -1), shift.reshape(1, -1),
                         geo["mask"], tile_m=geo["tile_m"],
                         out_dtype=out_dtype)


def bridge_forward(packed, x_nchw, *, out_channels):
    n, cin, h, w = x_nchw.shape
    geo = _geometry(n, h, w)
    cin_p = packed["cb1"]["w"].shape[1]

    # NCHW -> zero-padded NHWC -> flattened bf16 slab with lead/tail guards.
    xh = jnp.transpose(x_nchw, (0, 2, 3, 1)).astype(jnp.float32)
    xh = jnp.pad(xh, ((0, 0), (1, 1), (1, 1), (0, cin_p - cin)))
    xflat = xh.reshape(geo["mp"], cin_p).astype(jnp.bfloat16)
    xg = jnp.pad(xflat,
                 ((geo["lead"], geo["L"] - geo["lead"] - geo["mp"]), (0, 0)))

    a1 = _conv_block(xg, packed["cb1"], geo, out_dtype=jnp.bfloat16)
    a2 = _conv_block(a1, packed["cb2"], geo, out_dtype=jnp.float32)

    v = a2[geo["lead"]:geo["lead"] + geo["mp"], :]
    v = v.reshape(n, h + 2, w + 2, -1)[:, 1:h + 1, 1:w + 1, :out_channels]
    return jnp.transpose(v, (0, 3, 1, 2))            # back to NCHW


# --------------------------------------------------------------------------
# Parameters (torch layout) and one-time packing into the kernel layout
# --------------------------------------------------------------------------
def init_params(key, in_ch, out_ch):
    k = jax.random.split(key, 8)

    def conv_p(kk, cout, cin):
        fan = cin * 9
        return {"w": jax.random.normal(kk[0], (cout, cin, 3, 3),
                                       jnp.float32) * fan ** -0.5,
                "b": 0.01 * jax.random.normal(kk[1], (cout,), jnp.float32)}

    def bn_p(kk, c):
        return {"gamma": 1.0 + 0.1 * jax.random.normal(kk[0], (c,), jnp.float32),
                "beta": 0.1 * jax.random.normal(kk[1], (c,), jnp.float32)}

    return {"cb1": {"conv": conv_p(k[0:2], out_ch, in_ch), "bn": bn_p(k[2:4], out_ch)},
            "cb2": {"conv": conv_p(k[4:6], out_ch, out_ch), "bn": bn_p(k[6:8], out_ch)}}


def pack_params(params):
    """Pad channels to 128 lanes, transpose to tap-major, cast weights to bf16."""
    def pack(cb):
        w, b = cb["conv"]["w"], cb["conv"]["b"]
        cout, cin, _, _ = w.shape
        cin_p, cout_p = _round_up(cin, LANE), _round_up(cout, LANE)
        w9 = jnp.transpose(w, (2, 3, 1, 0)).reshape(9, cin, cout)
        w9 = jnp.pad(w9, ((0, 0), (0, cin_p - cin),
                          (0, cout_p - cout))).astype(jnp.bfloat16)
        return {"w": w9,
                "b": jnp.pad(b, (0, cout_p - cout)).reshape(1, cout_p),
                "gamma": jnp.pad(cb["bn"]["gamma"], (0, cout_p - cout)),
                "beta": jnp.pad(cb["bn"]["beta"], (0, cout_p - cout))}
    return {"cb1": pack(params["cb1"]), "cb2": pack(params["cb2"])}


# --------------------------------------------------------------------------
# Pure-JAX reference (same bf16 matmul inputs, f32 accumulation / BN math)
# --------------------------------------------------------------------------
def _ref_conv_block(x_nhwc, cb):
    w, b = cb["conv"]["w"], cb["conv"]["b"]
    y = jax.lax.conv_general_dilated(
        x_nhwc.astype(jnp.bfloat16),
        jnp.transpose(w, (2, 3, 1, 0)).astype(jnp.bfloat16),
        window_strides=(1, 1), padding=((1, 1), (1, 1)),
        dimension_numbers=("NHWC", "HWIO", "NHWC"),
        preferred_element_type=jnp.float32) + b
    mean = jnp.mean(y, axis=(0, 1, 2))
    var = jnp.mean((y - mean) ** 2, axis=(0, 1, 2))
    z = (y - mean) * jax.lax.rsqrt(var + EPS) * cb["bn"]["gamma"] + cb["bn"]["beta"]
    return jnp.maximum(z, 0.0)


def bridge_reference(params, x_nchw):
    x = jnp.transpose(x_nchw, (0, 2, 3, 1))
    a1 = _ref_conv_block(x, params["cb1"])
    a2 = _ref_conv_block(a1, params["cb2"])
    return jnp.transpose(a2, (0, 3, 1, 2))


# --------------------------------------------------------------------------
if __name__ == "__main__":
    key = jax.random.PRNGKey(0)
    pkey, xkey = jax.random.split(key)

    IN_CH, OUT_CH = 64, 64          # Bridge(in_channels=64, out_channels=64)
    N, H, W = 2, 16, 16

    params = init_params(pkey, IN_CH, OUT_CH)
    packed = pack_params(params)
    x = jax.random.normal(xkey, (N, IN_CH, H, W), jnp.float32)

    fwd = jax.jit(functools.partial(bridge_forward, out_channels=OUT_CH))
    out = jax.block_until_ready(fwd(packed, x))
    assert out.shape == (N, OUT_CH, H, W), out.shape
    assert out.dtype == jnp.float32

    ref = jax.block_until_ready(jax.jit(bridge_reference)(params, x))
    max_err = float(jnp.max(jnp.abs(out - ref)))
    assert max_err < 5e-2, f"max abs error vs reference: {max_err}"

    print("KERNEL_OK")
</pallas_src>

<mosaic_0001>
module attributes {stable_mosaic.version = 11 : i64} {
  func.func @_bn_relu_kernel(%arg0: i32, %arg1: memref<256x128xf32, #tpu.memory_space<vmem>>, %arg2: memref<1x128xf32, #tpu.memory_space<vmem>>, %arg3: memref<1x128xf32, #tpu.memory_space<vmem>>, %arg4: memref<256x1xf32, #tpu.memory_space<vmem>>, %arg5: memref<256x128xbf16, #tpu.memory_space<vmem>>) attributes {dimension_semantics = [#tpu.dimension_semantics<parallel>], iteration_bounds = array<i64: 6>, scalar_prefetch = 0 : i64, scratch_operands = 0 : i64, tpu.core_type = #tpu.core_type<tc>, window_params = [{transform_indices = @transform_0, window_bounds = array<i64: 256, 128>}, {pipeline_mode = #tpu.pipeline_mode<synchronous>, transform_indices = @transform_1, window_bounds = array<i64: 1, 128>}, {pipeline_mode = #tpu.pipeline_mode<synchronous>, transform_indices = @transform_2, window_bounds = array<i64: 1, 128>}, {transform_indices = @transform_3, window_bounds = array<i64: 256, 1>}, {transform_indices = @transform_4, window_bounds = array<i64: 256, 128>}]} {
    %c0 = arith.constant 0 : index
    %c0_0 = arith.constant 0 : index
    %0 = vector.load %arg1[%c0, %c0_0] : memref<256x128xf32, #tpu.memory_space<vmem>>, vector<256x128xf32>
    %c0_1 = arith.constant 0 : index
    %c0_2 = arith.constant 0 : index
    %1 = vector.load %arg2[%c0_1, %c0_2] : memref<1x128xf32, #tpu.memory_space<vmem>>, vector<1x128xf32>
    %2 = vector.broadcast %1 : vector<1x128xf32> to vector<256x128xf32>
    %3 = arith.mulf %0, %2 : vector<256x128xf32>
    %c0_3 = arith.constant 0 : index
    %c0_4 = arith.constant 0 : index
    %4 = vector.load %arg3[%c0_3, %c0_4] : memref<1x128xf32, #tpu.memory_space<vmem>>, vector<1x128xf32>
    %5 = vector.broadcast %4 : vector<1x128xf32> to vector<256x128xf32>
    %6 = arith.addf %3, %5 : vector<256x128xf32>
    %cst = arith.constant 0.000000e+00 : f32
    %7 = vector.broadcast %cst : f32 to vector<256x128xf32>
    %8 = arith.maximumf %6, %7 : vector<256x128xf32>
    %c0_5 = arith.constant 0 : index
    %c0_6 = arith.constant 0 : index
    %9 = vector.load %arg4[%c0_5, %c0_6] : memref<256x1xf32, #tpu.memory_space<vmem>>, vector<256x1xf32>
    %cst_7 = arith.constant 0.000000e+00 : f32
    %10 = vector.broadcast %cst_7 : f32 to vector<256x1xf32>
    %11 = arith.cmpf ogt, %9, %10 : vector<256x1xf32>
    %cst_8 = arith.constant 0.000000e+00 : f32
    %12 = vector.shape_cast %11 : vector<256x1xi1> to vector<256x1xi1>
    %13 = vector.broadcast %12 : vector<256x1xi1> to vector<256x128xi1>
    %14 = vector.broadcast %cst_8 : f32 to vector<256x128xf32>
    %15 = arith.select %13, %8, %14 : vector<256x128xi1>, vector<256x128xf32>
    %16 = arith.truncf %15 : vector<256x128xf32> to vector<256x128xbf16>
    %c0_9 = arith.constant 0 : index
    %c0_10 = arith.constant 0 : index
    %17 = vector.load %arg5[%c0_9, %c0_10] : memref<256x128xbf16, #tpu.memory_space<vmem>>, vector<256x128xbf16>
    tpu.vector_store %arg5[%c0_9, %c0_10], %16 {strides = array<i32>} : memref<256x128xbf16, #tpu.memory_space<vmem>>, vector<256x128xbf16>,
    return
  }
  func.func @transform_0(%arg0: i32) -> (i32, i32) {
    %c0_i32 = arith.constant 0 : i32
    %c0_i32_0 = arith.constant 0 : i32
    return %arg0, %c0_i32 : i32, i32
  }
  func.func @transform_1(%arg0: i32) -> (i32, i32) {
    %c0_i32 = arith.constant 0 : i32
    %c0_i32_0 = arith.constant 0 : i32
    %c0_i32_1 = arith.constant 0 : i32
    return %c0_i32, %c0_i32_0 : i32, i32
  }
  func.func @transform_2(%arg0: i32) -> (i32, i32) {
    %c0_i32 = arith.constant 0 : i32
    %c0_i32_0 = arith.constant 0 : i32
    %c0_i32_1 = arith.constant 0 : i32
    return %c0_i32, %c0_i32_0 : i32, i32
  }
  func.func @transform_3(%arg0: i32) -> (i32, i32) {
    %c0_i32 = arith.constant 0 : i32
    %c0_i32_0 = arith.constant 0 : i32
    return %arg0, %c0_i32 : i32, i32
  }
  func.func @transform_4(%arg0: i32) -> (i32, i32) {
    %c0_i32 = arith.constant 0 : i32
    %c0_i32_0 = arith.constant 0 : i32
    return %arg0, %c0_i32 : i32, i32
  }
}

module attributes {stable_mosaic.version = 11 : i64} {
  func.func @_conv_bn_stats_kernel(%arg0: i32, %arg1: i32, %arg2: memref<1536x128xbf16, #tpu.memory_space<any>>, %arg3: memref<9x128x128xbf16, #tpu.memory_space<vmem>>, %arg4: memref<1x128xf32, #tpu.memory_space<vmem>>, %arg5: memref<256x1xf32, #tpu.memory_space<vmem>>, %arg6: memref<256x128xf32, #tpu.memory_space<vmem>>, %arg7: memref<8x128xf32, #tpu.memory_space<vmem>>, %arg8: memref<8x128xf32, #tpu.memory_space<vmem>>, %arg9: memref<2x320x128xbf16, #tpu.memory_space<vmem>>, %arg10: memref<2x!tpu.dma_semaphore, #tpu.memory_space<semaphore_mem>>) attributes {dimension_semantics = [#tpu.dimension_semantics<parallel>, #tpu.dimension_semantics<arbitrary>], iteration_bounds = array<i64: 2, 2>, scalar_prefetch = 0 : i64, scratch_operands = 2 : i64, tpu.core_type = #tpu.core_type<tc>, window_params = [{}, {pipeline_mode = #tpu.pipeline_mode<synchronous>, transform_indices = @transform_1, window_bounds = array<i64: 9, 128, 128>}, {pipeline_mode = #tpu.pipeline_mode<synchronous>, transform_indices = @transform_2, window_bounds = array<i64: 1, 128>}, {transform_indices = @transform_3, window_bounds = array<i64: 256, 1>}, {transform_indices = @transform_4, window_bounds = array<i64: 256, 128>}, {transform_indices = @transform_5, window_bounds = array<i64: 8, 128>}, {transform_indices = @transform_6, window_bounds = array<i64: 8, 128>}]} {
    %c2_i32 = arith.constant 2 : i32
    %0 = arith.muli %arg0, %c2_i32 : i32
    %1 = arith.addi %0, %arg1 : i32
    %c0_i32 = arith.constant 0 : i32
    %2 = arith.cmpi eq, %arg1, %c0_i32 : i32
    %3 = arith.extui %2 : i1 to i32
    %c0_i32_0 = arith.constant 0 : i32
    %4 = arith.cmpi ne, %3, %c0_i32_0 : i32
    scf.if %4 {
      %c256_i32_54 = arith.constant 256 : i32
      %95 = arith.muli %1, %c256_i32_54 : i32
      %c256_i32_55 = arith.constant 256 : i32
      %96 = arith.addi %c256_i32_55, %95 : i32
      %c32_i32_56 = arith.constant 32 : i32
      %97 = arith.subi %96, %c32_i32_56 : i32
      %98 = tpu.assume_multiple %97, 16 : i32
      %c0_i32_57 = arith.constant 0 : i32
      %c0_i32_58 = arith.constant 0 : i32
      %c0_i32_59 = arith.constant 0 : i32
      %99 = tpu.memref_slice %arg2[%98, %c0_i32_59] : memref<1536x128xbf16, #tpu.memory_space<any>> -> memref<320x128xbf16, #tpu.memory_space<any>>
      %c0_i32_60 = arith.constant 0 : i32
      %c0_i32_61 = arith.constant 0 : i32
      %100 = tpu.memref_slice %arg9[%c0_i32_57, %c0_i32_60, %c0_i32_61] : memref<2x320x128xbf16, #tpu.memory_space<vmem>> -> memref<1x320x128xbf16, #tpu.memory_space<vmem>>
      %101 = tpu.memref_squeeze %100 : memref<1x320x128xbf16, #tpu.memory_space<vmem>> -> memref<320x128xbf16, #tpu.memory_space<vmem>>
      %102 = tpu.memref_slice %arg10[%c0_i32_58] : memref<2x!tpu.dma_semaphore, #tpu.memory_space<semaphore_mem>> -> memref<1x!tpu.dma_semaphore, #tpu.memory_space<semaphore_mem>>
      %103 = tpu.memref_squeeze %102 : memref<1x!tpu.dma_semaphore, #tpu.memory_space<semaphore_mem>> -> memref<!tpu.dma_semaphore, #tpu.memory_space<semaphore_mem>>
      tpu.enqueue_dma source(%99 : memref<320x128xbf16, #tpu.memory_space<any>>) target(%101 : memref<320x128xbf16, #tpu.memory_space<vmem>>) target_semaphore(%103 : memref<!tpu.dma_semaphore, #tpu.memory_space<semaphore_mem>>)
    } else {
    }
    %c1_i32 = arith.constant 1 : i32
    %5 = arith.addi %arg1, %c1_i32 : i32
    %c2_i32_1 = arith.constant 2 : i32
    %6 = arith.cmpi slt, %5, %c2_i32_1 : i32
    %7 = arith.extui %6 : i1 to i32
    %c0_i32_2 = arith.constant 0 : i32
    %8 = arith.cmpi ne, %7, %c0_i32_2 : i32
    scf.if %8 {
      %c1_i32_54 = arith.constant 1 : i32
      %95 = arith.addi %1, %c1_i32_54 : i32
      %c1_i32_55 = arith.constant 1 : i32
      %96 = arith.addi %arg1, %c1_i32_55 : i32
      %c2_i32_56 = arith.constant 2 : i32
      %c0_i32_57 = arith.constant 0 : i32
      %97 = arith.cmpi eq, %c2_i32_56, %c0_i32_57 : i32
      %c1_i32_58 = arith.constant 1 : i32
      %98 = arith.select %97, %c1_i32_58, %c2_i32_56 : i32
      %99 = arith.remsi %96, %98 : i32
      %c0_i32_59 = arith.constant 0 : i32
      %100 = arith.cmpi ne, %99, %c0_i32_59 : i32
      %c0_i32_60 = arith.constant 0 : i32
      %101 = arith.cmpi slt, %99, %c0_i32_60 : i32
      %c0_i32_61 = arith.constant 0 : i32
      %102 = arith.cmpi slt, %98, %c0_i32_61 : i32
      %103 = arith.xori %101, %102 : i1
      %104 = arith.andi %103, %100 : i1
      %105 = arith.addi %99, %98 : i32
      %106 = arith.select %104, %105, %99 : i32
      %c256_i32_62 = arith.constant 256 : i32
      %107 = arith.muli %95, %c256_i32_62 : i32
      %c256_i32_63 = arith.constant 256 : i32
      %108 = arith.addi %c256_i32_63, %107 : i32
      %c32_i32_64 = arith.constant 32 : i32
      %109 = arith.subi %108, %c32_i32_64 : i32
      %110 = tpu.assume_multiple %109, 16 : i32
      %c0_i32_65 = arith.constant 0 : i32
      %111 = tpu.memref_slice %arg2[%110, %c0_i32_65] : memref<1536x128xbf16, #tpu.memory_space<any>> -> memref<320x128xbf16, #tpu.memory_space<any>>
      %c0_i32_66 = arith.constant 0 : i32
      %c0_i32_67 = arith.constant 0 : i32
      %112 = tpu.memref_slice %arg9[%106, %c0_i32_66, %c0_i32_67] : memref<2x320x128xbf16, #tpu.memory_space<vmem>> -> memref<1x320x128xbf16, #tpu.memory_space<vmem>>
      %113 = tpu.memref_squeeze %112 : memref<1x320x128xbf16, #tpu.memory_space<vmem>> -> memref<320x128xbf16, #tpu.memory_space<vmem>>
      %114 = tpu.memref_slice %arg10[%106] : memref<2x!tpu.dma_semaphore, #tpu.memory_space<semaphore_mem>> -> memref<1x!tpu.dma_semaphore, #tpu.memory_space<semaphore_mem>>
      %115 = tpu.memref_squeeze %114 : memref<1x!tpu.dma_semaphore, #tpu.memory_space<semaphore_mem>> -> memref<!tpu.dma_semaphore, #tpu.memory_space<semaphore_mem>>
      tpu.enqueue_dma source(%111 : memref<320x128xbf16, #tpu.memory_space<any>>) target(%113 : memref<320x128xbf16, #tpu.memory_space<vmem>>) target_semaphore(%115 : memref<!tpu.dma_semaphore, #tpu.memory_space<semaphore_mem>>)
    } else {
    }
    %c2_i32_3 = arith.constant 2 : i32
    %c0_i32_4 = arith.constant 0 : i32
    %9 = arith.cmpi eq, %c2_i32_3, %c0_i32_4 : i32
    %c1_i32_5 = arith.constant 1 : i32
    %10 = arith.select %9, %c1_i32_5, %c2_i32_3 : i32
    %11 = arith.remsi %arg1, %10 : i32
    %c0_i32_6 = arith.constant 0 : i32
    %12 = arith.cmpi ne, %11, %c0_i32_6 : i32
    %c0_i32_7 = arith.constant 0 : i32
    %13 = arith.cmpi slt, %11, %c0_i32_7 : i32
    %c0_i32_8 = arith.constant 0 : i32
    %14 = arith.cmpi slt, %10, %c0_i32_8 : i32
    %15 = arith.xori %13, %14 : i1
    %16 = arith.andi %15, %12 : i1
    %17 = arith.addi %11, %10 : i32
    %18 = arith.select %16, %17, %11 : i32
    %c256_i32 = arith.constant 256 : i32
    %19 = arith.muli %1, %c256_i32 : i32
    %c256_i32_9 = arith.constant 256 : i32
    %20 = arith.addi %c256_i32_9, %19 : i32
    %c32_i32 = arith.constant 32 : i32
    %21 = arith.subi %20, %c32_i32 : i32
    %22 = tpu.assume_multiple %21, 16 : i32
    %c0_i32_10 = arith.constant 0 : i32
    %23 = tpu.memref_slice %arg2[%22, %c0_i32_10] : memref<1536x128xbf16, #tpu.memory_space<any>> -> memref<320x128xbf16, #tpu.memory_space<any>>
    %c0_i32_11 = arith.constant 0 : i32
    %c0_i32_12 = arith.constant 0 : i32
    %24 = tpu.memref_slice %arg9[%18, %c0_i32_11, %c0_i32_12] : memref<2x320x128xbf16, #tpu.memory_space<vmem>> -> memref<1x320x128xbf16, #tpu.memory_space<vmem>>
    %25 = tpu.memref_squeeze %24 : memref<1x320x128xbf16, #tpu.memory_space<vmem>> -> memref<320x128xbf16, #tpu.memory_space<vmem>>
    %26 = tpu.memref_slice %arg10[%18] : memref<2x!tpu.dma_semaphore, #tpu.memory_space<semaphore_mem>> -> memref<1x!tpu.dma_semaphore, #tpu.memory_space<semaphore_mem>>
    %27 = tpu.memref_squeeze %26 : memref<1x!tpu.dma_semaphore, #tpu.memory_space<semaphore_mem>> -> memref<!tpu.dma_semaphore, #tpu.memory_space<semaphore_mem>>
    tpu.wait_dma2 semaphore(%27 : memref<!tpu.dma_semaphore, #tpu.memory_space<semaphore_mem>>) src(%23 : memref<320x128xbf16, #tpu.memory_space<any>>) dst(%25 : memref<320x128xbf16, #tpu.memory_space<vmem>>)
    %28 = arith.index_cast %18 : i32 to index
    %c0 = arith.constant 0 : index
    %c0_13 = arith.constant 0 : index
    %29 = vector.load %arg9[%28, %c0, %c0_13] : memref<2x320x128xbf16, #tpu.memory_space<vmem>>, vector<1x320x128xbf16>
    %30 = vector.shape_cast %29 : vector<1x320x128xbf16> to vector<320x128xbf16>
    %cst = arith.constant 0.000000e+00 : f32
    %31 = vector.broadcast %cst : f32 to vector<256x128xf32>
    %32 = vector.extract_strided_slice %30 {offsets = [13, 0], sizes = [256, 128], strides = [1, 1]} : vector<320x128xbf16> to vector<256x128xbf16>
    %c0_14 = arith.constant 0 : index
    %c0_15 = arith.constant 0 : index
    %c0_16 = arith.constant 0 : index
    %33 = vector.load %arg3[%c0_14, %c0_15, %c0_16] : memref<9x128x128xbf16, #tpu.memory_space<vmem>>, vector<1x128x128xbf16>
    %34 = vector.shape_cast %33 : vector<1x128x128xbf16> to vector<128x128xbf16>
    %cst_17 = arith.constant dense<0.000000e+00> : vector<256x128xf32>
    %35 = tpu.matmul %32, %34, %cst_17 {dimension_numbers = #tpu.dot_dimension_numbers<[1], [0], [0], [1], [0, 0, 1, 1], [], []>} : vector<256x128xbf16>, vector<128x128xbf16>, vector<256x128xf32> -> vector<256x128xf32>
    %36 = arith.addf %31, %35 : vector<256x128xf32>
    %37 = vector.extract_strided_slice %30 {offsets = [14, 0], sizes = [256, 128], strides = [1, 1]} : vector<320x128xbf16> to vector<256x128xbf16>
    %c1 = arith.constant 1 : index
    %c0_18 = arith.constant 0 : index
    %c0_19 = arith.constant 0 : index
    %38 = vector.load %arg3[%c1, %c0_18, %c0_19] : memref<9x128x128xbf16, #tpu.memory_space<vmem>>, vector<1x128x128xbf16>
    %39 = vector.shape_cast %38 : vector<1x128x128xbf16> to vector<128x128xbf16>
    %cst_20 = arith.constant dense<0.000000e+00> : vector<256x128xf32>
    %40 = tpu.matmul %37, %39, %cst_20 {dimension_numbers = #tpu.dot_dimension_numbers<[1], [0], [0], [1], [0, 0, 1, 1], [], []>} : vector<256x128xbf16>, vector<128x128xbf16>, vector<256x128xf32> -> vector<256x128xf32>
    %41 = arith.addf %36, %40 : vector<256x128xf32>
    %42 = vector.extract_strided_slice %30 {offsets = [15, 0], sizes = [256, 128], strides = [1, 1]} : vector<320x128xbf16> to vector<256x128xbf16>
    %c2 = arith.constant 2 : index
    %c0_21 = arith.constant 0 : index
    %c0_22 = arith.constant 0 : index
    %43 = vector.load %arg3[%c2, %c0_21, %c0_22] : memref<9x128x128xbf16, #tpu.memory_space<vmem>>, vector<1x128x128xbf16>
    %44 = vector.shape_cast %43 : vector<1x128x128xbf16> to vector<128x128xbf16>
    %cst_23 = arith.constant dense<0.000000e+00> : vector<256x128xf32>
    %45 = tpu.matmul %42, %44, %cst_23 {dimension_numbers = #tpu.dot_dimension_numbers<[1], [0], [0], [1], [0, 0, 1, 1], [], []>} : vector<256x128xbf16>, vector<128x128xbf16>, vector<256x128xf32> -> vector<256x128xf32>
    %46 = arith.addf %41, %45 : vector<256x128xf32>
    %47 = vector.extract_strided_slice %30 {offsets = [31, 0], sizes = [256, 128], strides = [1, 1]} : vector<320x128xbf16> to vector<256x128xbf16>
    %c3 = arith.constant 3 : index
    %c0_24 = arith.constant 0 : index
    %c0_25 = arith.constant 0 : index
    %48 = vector.load %arg3[%c3, %c0_24, %c0_25] : memref<9x128x128xbf16, #tpu.memory_space<vmem>>, vector<1x128x128xbf16>
    %49 = vector.shape_cast %48 : vector<1x128x128xbf16> to vector<128x128xbf16>
    %cst_26 = arith.constant dense<0.000000e+00> : vector<256x128xf32>
    %50 = tpu.matmul %47, %49, %cst_26 {dimension_numbers = #tpu.dot_dimension_numbers<[1], [0], [0], [1], [0, 0, 1, 1], [], []>} : vector<256x128xbf16>, vector<128x128xbf16>, vector<256x128xf32> -> vector<256x128xf32>
    %51 = arith.addf %46, %50 : vector<256x128xf32>
    %52 = vector.extract_strided_slice %30 {offsets = [32, 0], sizes = [256, 128], strides = [1, 1]} : vector<320x128xbf16> to vector<256x128xbf16>
    %c4 = arith.constant 4 : index
    %c0_27 = arith.constant 0 : index
    %c0_28 = arith.constant 0 : index
    %53 = vector.load %arg3[%c4, %c0_27, %c0_28] : memref<9x128x128xbf16, #tpu.memory_space<vmem>>, vector<1x128x128xbf16>
    %54 = vector.shape_cast %53 : vector<1x128x128xbf16> to vector<128x128xbf16>
    %cst_29 = arith.constant dense<0.000000e+00> : vector<256x128xf32>
    %55 = tpu.matmul %52, %54, %cst_29 {dimension_numbers = #tpu.dot_dimension_numbers<[1], [0], [0], [1], [0, 0, 1, 1], [], []>} : vector<256x128xbf16>, vector<128x128xbf16>, vector<256x128xf32> -> vector<256x128xf32>
    %56 = arith.addf %51, %55 : vector<256x128xf32>
    %57 = vector.extract_strided_slice %30 {offsets = [33, 0], sizes = [256, 128], strides = [1, 1]} : vector<320x128xbf16> to vector<256x128xbf16>
    %c5 = arith.constant 5 : index
    %c0_30 = arith.constant 0 : index
    %c0_31 = arith.constant 0 : index
    %58 = vector.load %arg3[%c5, %c0_30, %c0_31] : memref<9x128x128xbf16, #tpu.memory_space<vmem>>, vector<1x128x128xbf16>
    %59 = vector.shape_cast %58 : vector<1x128x128xbf16> to vector<128x128xbf16>
    %cst_32 = arith.constant dense<0.000000e+00> : vector<256x128xf32>
    %60 = tpu.matmul %57, %59, %cst_32 {dimension_numbers = #tpu.dot_dimension_numbers<[1], [0], [0], [1], [0, 0, 1, 1], [], []>} : vector<256x128xbf16>, vector<128x128xbf16>, vector<256x128xf32> -> vector<256x128xf32>
    %61 = arith.addf %56, %60 : vector<256x128xf32>
    %62 = vector.extract_strided_slice %30 {offsets = [49, 0], sizes = [256, 128], strides = [1, 1]} : vector<320x128xbf16> to vector<256x128xbf16>
    %c6 = arith.constant 6 : index
    %c0_33 = arith.constant 0 : index
    %c0_34 = arith.constant 0 : index
    %63 = vector.load %arg3[%c6, %c0_33, %c0_34] : memref<9x128x128xbf16, #tpu.memory_space<vmem>>, vector<1x128x128xbf16>
    %64 = vector.shape_cast %63 : vector<1x128x128xbf16> to vector<128x128xbf16>
    %cst_35 = arith.constant dense<0.000000e+00> : vector<256x128xf32>
    %65 = tpu.matmul %62, %64, %cst_35 {dimension_numbers = #tpu.dot_dimension_numbers<[1], [0], [0], [1], [0, 0, 1, 1], [], []>} : vector<256x128xbf16>, vector<128x128xbf16>, vector<256x128xf32> -> vector<256x128xf32>
    %66 = arith.addf %61, %65 : vector<256x128xf32>
    %67 = vector.extract_strided_slice %30 {offsets = [50, 0], sizes = [256, 128], strides = [1, 1]} : vector<320x128xbf16> to vector<256x128xbf16>
    %c7 = arith.constant 7 : index
    %c0_36 = arith.constant 0 : index
    %c0_37 = arith.constant 0 : index
    %68 = vector.load %arg3[%c7, %c0_36, %c0_37] : memref<9x128x128xbf16, #tpu.memory_space<vmem>>, vector<1x128x128xbf16>
    %69 = vector.shape_cast %68 : vector<1x128x128xbf16> to vector<128x128xbf16>
    %cst_38 = arith.constant dense<0.000000e+00> : vector<256x128xf32>
    %70 = tpu.matmul %67, %69, %cst_38 {dimension_numbers = #tpu.dot_dimension_numbers<[1], [0], [0], [1], [0, 0, 1, 1], [], []>} : vector<256x128xbf16>, vector<128x128xbf16>, vector<256x128xf32> -> vector<256x128xf32>
    %71 = arith.addf %66, %70 : vector<256x128xf32>
    %72 = vector.extract_strided_slice %30 {offsets = [51, 0], sizes = [256, 128], strides = [1, 1]} : vector<320x128xbf16> to vector<256x128xbf16>
    %c8 = arith.constant 8 : index
    %c0_39 = arith.constant 0 : index
    %c0_40 = arith.constant 0 : index
    %73 = vector.load %arg3[%c8, %c0_39, %c0_40] : memref<9x128x128xbf16, #tpu.memory_space<vmem>>, vector<1x128x128xbf16>
    %74 = vector.shape_cast %73 : vector<1x128x128xbf16> to vector<128x128xbf16>
    %cst_41 = arith.constant dense<0.000000e+00> : vector<256x128xf32>
    %75 = tpu.matmul %72, %74, %cst_41 {dimension_numbers = #tpu.dot_dimension_numbers<[1], [0], [0], [1], [0, 0, 1, 1], [], []>} : vector<256x128xbf16>, vector<128x128xbf16>, vector<256x128xf32> -> vector<256x128xf32>
    %76 = arith.addf %71, %75 : vector<256x128xf32>
    %c0_42 = arith.constant 0 : index
    %c0_43 = arith.constant 0 : index
    %77 = vector.load %arg4[%c0_42, %c0_43] : memref<1x128xf32, #tpu.memory_space<vmem>>, vector<1x128xf32>
    %78 = vector.broadcast %77 : vector<1x128xf32> to vector<256x128xf32>
    %79 = arith.addf %76, %78 : vector<256x128xf32>
    %c0_44 = arith.constant 0 : index
    %c0_45 = arith.constant 0 : index
    %80 = vector.load %arg6[%c0_44, %c0_45] : memref<256x128xf32, #tpu.memory_space<vmem>>, vector<256x128xf32>
    tpu.vector_store %arg6[%c0_44, %c0_45], %79 {strides = array<i32>} : memref<256x128xf32, #tpu.memory_space<vmem>>, vector<256x128xf32>,
    %c0_46 = arith.constant 0 : index
    %c0_47 = arith.constant 0 : index
    %81 = vector.load %arg5[%c0_46, %c0_47] : memref<256x1xf32, #tpu.memory_space<vmem>>, vector<256x1xf32>
    %82 = vector.broadcast %81 : vector<256x1xf32> to vector<256x128xf32>
    %83 = arith.mulf %79, %82 : vector<256x128xf32>
    %cst_48 = arith.constant dense<0.000000e+00> : vector<128xf32>
    %84 = vector.multi_reduction <add>, %83, %cst_48 [0] : vector<256x128xf32> to vector<128xf32>
    %85 = vector.shape_cast %84 : vector<128xf32> to vector<1x128xf32>
    %86 = vector.shape_cast %85 : vector<1x128xf32> to vector<1x128xf32>
    %87 = vector.broadcast %86 : vector<1x128xf32> to vector<8x128xf32>
    %c0_49 = arith.constant 0 : index
    %c0_50 = arith.constant 0 : index
    %88 = vector.load %arg7[%c0_49, %c0_50] : memref<8x128xf32, #tpu.memory_space<vmem>>, vector<8x128xf32>
    tpu.vector_store %arg7[%c0_49, %c0_50], %87 {strides = array<i32>} : memref<8x128xf32, #tpu.memory_space<vmem>>, vector<8x128xf32>,
    %89 = arith.mulf %83, %79 : vector<256x128xf32>
    %cst_51 = arith.constant dense<0.000000e+00> : vector<128xf32>
    %90 = vector.multi_reduction <add>, %89, %cst_51 [0] : vector<256x128xf32> to vector<128xf32>
    %91 = vector.shape_cast %90 : vector<128xf32> to vector<1x128xf32>
    %92 = vector.shape_cast %91 : vector<1x128xf32> to vector<1x128xf32>
    %93 = vector.broadcast %92 : vector<1x128xf32> to vector<8x128xf32>
    %c0_52 = arith.constant 0 : index
    %c0_53 = arith.constant 0 : index
    %94 = vector.load %arg8[%c0_52, %c0_53] : memref<8x128xf32, #tpu.memory_space<vmem>>, vector<8x128xf32>
    tpu.vector_store %arg8[%c0_52, %c0_53], %93 {strides = array<i32>} : memref<8x128xf32, #tpu.memory_space<vmem>>, vector<8x128xf32>,
    return
  }
  func.func @transform_1(%arg0: i32, %arg1: i32) -> (i32, i32, i32) {
    %c0_i32 = arith.constant 0 : i32
    %c0_i32_0 = arith.constant 0 : i32
    %c0_i32_1 = arith.constant 0 : i32
    %c0_i32_2 = arith.constant 0 : i32
    return %c0_i32, %c0_i32_0, %c0_i32_1 : i32, i32, i32
  }
  func.func @transform_2(%arg0: i32, %arg1: i32) -> (i32, i32) {
    %c0_i32 = arith.constant 0 : i32
    %c0_i32_0 = arith.constant 0 : i32
    %c0_i32_1 = arith.constant 0 : i32
    return %c0_i32, %c0_i32_0 : i32, i32
  }
  func.func @transform_3(%arg0: i32, %arg1: i32) -> (i32, i32) {
    %c2_i32 = arith.constant 2 : i32
    %0 = arith.muli %arg0, %c2_i32 : i32
    %1 = arith.addi %0, %arg1 : i32
    %c1_i32 = arith.constant 1 : i32
    %2 = arith.addi %1, %c1_i32 : i32
    %c0_i32 = arith.constant 0 : i32
    %c0_i32_0 = arith.constant 0 : i32
    return %2, %c0_i32 : i32, i32
  }
  func.func @transform_4(%arg0: i32, %arg1: i32) -> (i32, i32) {
    %c2_i32 = arith.constant 2 : i32
    %0 = arith.muli %arg0, %c2_i32 : i32
    %1 = arith.addi %0, %arg1 : i32
    %c1_i32 = arith.constant 1 : i32
    %2 = arith.addi %1, %c1_i32 : i32
    %c0_i32 = arith.constant 0 : i32
    %c0_i32_0 = arith.constant 0 : i32
    return %2, %c0_i32 : i32, i32
  }
  func.func @transform_5(%arg0: i32, %arg1: i32) -> (i32, i32) {
    %c2_i32 = arith.constant 2 : i32
    %0 = arith.muli %arg0, %c2_i32 : i32
    %1 = arith.addi %0, %arg1 : i32
    %c0_i32 = arith.constant 0 : i32
    %c0_i32_0 = arith.constant 0 : i32
    return %1, %c0_i32 : i32, i32
  }
  func.func @transform_6(%arg0: i32, %arg1: i32) -> (i32, i32) {
    %c2_i32 = arith.constant 2 : i32
    %0 = arith.muli %arg0, %c2_i32 : i32
    %1 = arith.addi %0, %arg1 : i32
    %c0_i32 = arith.constant 0 : i32
    %c0_i32_0 = arith.constant 0 : i32
    return %1, %c0_i32 : i32, i32
  }
}

module attributes {stable_mosaic.version = 11 : i64} {
  func.func @_bn_relu_kernel(%arg0: i32, %arg1: memref<256x128xf32, #tpu.memory_space<vmem>>, %arg2: memref<1x128xf32, #tpu.memory_space<vmem>>, %arg3: memref<1x128xf32, #tpu.memory_space<vmem>>, %arg4: memref<256x1xf32, #tpu.memory_space<vmem>>, %arg5: memref<256x128xf32, #tpu.memory_space<vmem>>) attributes {dimension_semantics = [#tpu.dimension_semantics<parallel>], iteration_bounds = array<i64: 6>, scalar_prefetch = 0 : i64, scratch_operands = 0 : i64, tpu.core_type = #tpu.core_type<tc>, window_params = [{transform_indices = @transform_0, window_bounds = array<i64: 256, 128>}, {pipeline_mode = #tpu.pipeline_mode<synchronous>, transform_indices = @transform_1, window_bounds = array<i64: 1, 128>}, {pipeline_mode = #tpu.pipeline_mode<synchronous>, transform_indices = @transform_2, window_bounds = array<i64: 1, 128>}, {transform_indices = @transform_3, window_bounds = array<i64: 256, 1>}, {transform_indices = @transform_4, window_bounds = array<i64: 256, 128>}]} {
    %c0 = arith.constant 0 : index
    %c0_0 = arith.constant 0 : index
    %0 = vector.load %arg1[%c0, %c0_0] : memref<256x128xf32, #tpu.memory_space<vmem>>, vector<256x128xf32>
    %c0_1 = arith.constant 0 : index
    %c0_2 = arith.constant 0 : index
    %1 = vector.load %arg2[%c0_1, %c0_2] : memref<1x128xf32, #tpu.memory_space<vmem>>, vector<1x128xf32>
    %2 = vector.broadcast %1 : vector<1x128xf32> to vector<256x128xf32>
    %3 = arith.mulf %0, %2 : vector<256x128xf32>
    %c0_3 = arith.constant 0 : index
    %c0_4 = arith.constant 0 : index
    %4 = vector.load %arg3[%c0_3, %c0_4] : memref<1x128xf32, #tpu.memory_space<vmem>>, vector<1x128xf32>
    %5 = vector.broadcast %4 : vector<1x128xf32> to vector<256x128xf32>
    %6 = arith.addf %3, %5 : vector<256x128xf32>
    %cst = arith.constant 0.000000e+00 : f32
    %7 = vector.broadcast %cst : f32 to vector<256x128xf32>
    %8 = arith.maximumf %6, %7 : vector<256x128xf32>
    %c0_5 = arith.constant 0 : index
    %c0_6 = arith.constant 0 : index
    %9 = vector.load %arg4[%c0_5, %c0_6] : memref<256x1xf32, #tpu.memory_space<vmem>>, vector<256x1xf32>
    %cst_7 = arith.constant 0.000000e+00 : f32
    %10 = vector.broadcast %cst_7 : f32 to vector<256x1xf32>
    %11 = arith.cmpf ogt, %9, %10 : vector<256x1xf32>
    %cst_8 = arith.constant 0.000000e+00 : f32
    %12 = vector.shape_cast %11 : vector<256x1xi1> to vector<256x1xi1>
    %13 = vector.broadcast %12 : vector<256x1xi1> to vector<256x128xi1>
    %14 = vector.broadcast %cst_8 : f32 to vector<256x128xf32>
    %15 = arith.select %13, %8, %14 : vector<256x128xi1>, vector<256x128xf32>
    %c0_9 = arith.constant 0 : index
    %c0_10 = arith.constant 0 : index
    %16 = vector.load %arg5[%c0_9, %c0_10] : memref<256x128xf32, #tpu.memory_space<vmem>>, vector<256x128xf32>
    tpu.vector_store %arg5[%c0_9, %c0_10], %15 {strides = array<i32>} : memref<256x128xf32, #tpu.memory_space<vmem>>, vector<256x128xf32>,
    return
  }
  func.func @transform_0(%arg0: i32) -> (i32, i32) {
    %c0_i32 = arith.constant 0 : i32
    %c0_i32_0 = arith.constant 0 : i32
    return %arg0, %c0_i32 : i32, i32
  }
  func.func @transform_1(%arg0: i32) -> (i32, i32) {
    %c0_i32 = arith.constant 0 : i32
    %c0_i32_0 = arith.constant 0 : i32
    %c0_i32_1 = arith.constant 0 : i32
    return %c0_i32, %c0_i32_0 : i32, i32
  }
  func.func @transform_2(%arg0: i32) -> (i32, i32) {
    %c0_i32 = arith.constant 0 : i32
    %c0_i32_0 = arith.constant 0 : i32
    %c0_i32_1 = arith.constant 0 : i32
    return %c0_i32, %c0_i32_0 : i32, i32
  }
  func.func @transform_3(%arg0: i32) -> (i32, i32) {
    %c0_i32 = arith.constant 0 : i32
    %c0_i32_0 = arith.constant 0 : i32
    return %arg0, %c0_i32 : i32, i32
  }
  func.func @transform_4(%arg0: i32) -> (i32, i32) {
    %c0_i32 = arith.constant 0 : i32
    %c0_i32_0 = arith.constant 0 : i32
    return %arg0, %c0_i32 : i32, i32
  }
}

</mosaic_0001>

<bundles_post_ra>
// kernel: bridge_forward.5
= control target key start
LH: loop header
LB: loop body
LE: loop exit
PB: predicated region body
PF: predicated region fallthrough
CT: control target
= control target key end

     0   :  { %s1068_s15 = smov 0   ;;  %s1290_s0 = inlined_call_operand.vmem [shape: f32[1536,128], index: 0, kind: input, shape index: {}]   ;;  %s1291_s1 = inlined_call_operand.vmem [shape: f32[1,128], index: 1, kind: input, shape index: {}]   ;;  %s1292_s2 = inlined_call_operand.vmem [shape: f32[1,128], index: 2, kind: input, shape index: {}]   ;;  %s1293_s3 = inlined_call_operand.vmem [shape: f32[1536,1], index: 3, kind: input, shape index: {}]   ;;  %s1294_s4 = inlined_call_operand.vmem [shape: bf16[1536,128], index: 4, kind: output, shape index: {}]  }
   0x1 LB: > { %s849_s16 = sadd.s32 4294967295, %s1040_s15   ;;  %p853_p0 = scmp.ge.s32.totalorder %s1040_s15, 1  ;;  %s1040_s15 = sphi %s1068_s15, %s14_s15  }
   0x2   : > { %p174_p1 = scmp.lt.s32.totalorder %s1040_s15, 7 }
   0x4   : > { %p175_p2 = pnand %p853_p0, %p174_p1 }
   0x5   : > { %s854_s17 = sshll.u32 (!%p175_p2), %s849_s16, 5 }
   0x6   : > { %178 = sbr.rel (%p175_p2) target bundleno = 206 (0xce), region = 36  ;;  %p206_p3 = scmp.lt.s32.totalorder (!%p175_p2), %s854_s17, 191 }
   0xb   : > { %v1042_v0 = vmov 0   ;;  %s1296_s17 = smov (!%p206_p3, %s854_s17), 191 }
   0xc   : > { %1033 = vset.pattern.permute.xlu1 %v1042_v0  ;;  %1032 = vset.pattern.permute.xlu0 %v1042_v0  ;;  %s855_s18 = sshll.u32 %s1296_s17, 3  ;;  %s859_s29 = sshll.u32 %s1296_s17, 2 }
   0xd   : > { %s1086_s21 = scalar_lea.vmem %s1293_s3, %s855_s18  ;;  %s1157_s24 = scalar_lea.vmem %s1290_s0, %s855_s18 }
   0xe   : > { %v367_v1 = vld [vmem:[%s1086_s21 + $0x10] sm:$0xff]  ;;  %v365_v2 = vld [vmem:[%s1086_s21] sm:$0xff]  ;;  %v368_v3 = vld [vmem:[%s1086_s21 + $0x18] sm:$0xff]  ;;  %s1202_s6 = scalar_lea.vmem %s1294_s4, %s859_s29 }
   0xf   : > { %vm399_vm0 = vcmp.gt.f32.partialorder %v367_v1, 0.0  ;;  %vm397_vm1 = vcmp.gt.f32.partialorder %v365_v2, 0.0  ;;  %vm400_vm2 = vcmp.gt.f32.partialorder %v368_v3, 0.0  ;;  %v366_v4 = vld [vmem:[%s1086_s21 + $0x8] sm:$0xff]  ;;  %v369_v8 = vld [vmem:[%s1086_s21 + $0x20] sm:$0xff]  ;;  %v372_v11 = vld [vmem:[%s1086_s21 + $0x38] sm:$0xff] }
  0x10   : > { %v431_v5 = vsel %vm399_vm0, 1, %v1042_v0  ;;  %v429_v6 = vsel %vm397_vm1, 1, %v1042_v0  ;;  %vm398_vm3 = vcmp.gt.f32.partialorder %v366_v4, 0.0  ;;  %v370_v7 = vld [vmem:[%s1086_s21 + $0x28] sm:$0xff]  ;;  %v432_v9 = vsel %vm400_vm2, 1, %v1042_v0  ;;  %v371_v12 = vld [vmem:[%s1086_s21 + $0x30] sm:$0xff] }
  0x11   : > { %468 = vperm.xlu1 %1033, %v431_v5   ;;  %462 = vperm.xlu0 %1032, %v429_v6   ;;  %v430_v10 = vsel %vm398_vm3, 1, %v1042_v0  ;;  %vm402_vm4 = vcmp.gt.f32.partialorder %v370_v7, 0.0  ;;  %vm401_vm5 = vcmp.gt.f32.partialorder %v369_v8, 0.0  ;;  %vm404_vm6 = vcmp.gt.f32.partialorder %v372_v11, 0.0  ;;  %v374_v15 = vld [vmem:[%s1086_s21 + $0x48] sm:$0xff]  ;;  %v373_v16 = vld [vmem:[%s1086_s21 + $0x40] sm:$0xff] }
  0x12   : > { %v434_v13 = vsel %vm402_vm4, 1, %v1042_v0  ;;  %v433_v14 = vsel %vm401_vm5, 1, %v1042_v0  ;;  %vm403_vm7 = vcmp.gt.f32.partialorder %v371_v12, 0.0  ;;  %v436_v17 = vsel %vm404_vm6, 1, %v1042_v0  ;;  %v376_v19 = vld [vmem:[%s1086_s21 + $0x58] sm:$0xff]  ;;  %v375_v20 = vld [vmem:[%s1086_s21 + $0x50] sm:$0xff] }
  0x13   : > { %v435_v18 = vsel %vm403_vm7, 1, %v1042_v0  ;;  %vm406_vm8 = vcmp.gt.f32.partialorder %v374_v15, 0.0  ;;  %vm405_vm9 = vcmp.gt.f32.partialorder %v373_v16, 0.0  ;;  %vm408_vm10 = vcmp.gt.f32.partialorder %v376_v19, 0.0  ;;  %v378_v23 = vld [vmem:[%s1086_s21 + $0x68] sm:$0xff]  ;;  %v377_v24 = vld [vmem:[%s1086_s21 + $0x60] sm:$0xff] }
  0x14   : > { %v438_v21 = vsel %vm406_vm8, 1, %v1042_v0  ;;  %v437_v22 = vsel %vm405_vm9, 1, %v1042_v0  ;;  %vm407_vm11 = vcmp.gt.f32.partialorder %v375_v20, 0.0  ;;  %v440_v25 = vsel %vm408_vm10, 1, %v1042_v0  ;;  %v380_v27 = vld [vmem:[%s1086_s21 + $0x78] sm:$0xff]  ;;  %v379_v28 = vld [vmem:[%s1086_s21 + $0x70] sm:$0xff] }
  0x15   : > { %471 = vperm.xlu1 %1033, %v432_v9   ;;  %465 = vperm.xlu0 %1032, %v430_v10   ;;  %v439_v26 = vsel %vm407_vm11, 1, %v1042_v0  ;;  %vm410_vm12 = vcmp.gt.f32.partialorder %v378_v23, 0.0  ;;  %vm409_vm13 = vcmp.gt.f32.partialorder %v377_v24, 0.0  ;;  %vm412_vm14 = vcmp.gt.f32.partialorder %v380_v27, 0.0  ;;  %v382_v31 = vld [vmem:[%s1086_s21 + $0x88] sm:$0xff]  ;;  %v381_v32 = vld [vmem:[%s1086_s21 + $0x80] sm:$0xff] }
  0x16   : > { %v442_v29 = vsel %vm410_vm12, 1, %v1042_v0  ;;  %v441_v30 = vsel %vm409_vm13, 1, %v1042_v0  ;;  %vm411_vm15 = vcmp.gt.f32.partialorder %v379_v28, 0.0  ;;  %v444_v33 = vsel %vm412_vm14, 1, %v1042_v0  ;;  %v384_v35 = vld [vmem:[%s1086_s21 + $0x98] sm:$0xff]  ;;  %v383_v36 = vld [vmem:[%s1086_s21 + $0x90] sm:$0xff] }
  0x17   : > { %v443_v34 = vsel %vm411_vm15, 1, %v1042_v0  ;;  %vm414_vm0 = vcmp.gt.f32.partialorder %v382_v31, 0.0  ;;  %vm413_vm1 = vcmp.gt.f32.partialorder %v381_v32, 0.0  ;;  %vm416_vm2 = vcmp.gt.f32.partialorder %v384_v35, 0.0  ;;  %v386_v39 = vld [vmem:[%s1086_s21 + $0xa8] sm:$0xff]  ;;  %v385_v40 = vld [vmem:[%s1086_s21 + $0xa0] sm:$0xff] }
  0x18   : > { %v446_v37 = vsel %vm414_vm0, 1, %v1042_v0  ;;  %v445_v38 = vsel %vm413_vm1, 1, %v1042_v0  ;;  %vm415_vm3 = vcmp.gt.f32.partialorder %v383_v36, 0.0  ;;  %v448_v41 = vsel %vm416_vm2, 1, %v1042_v0  ;;  %v388_v43 = vld [vmem:[%s1086_s21 + $0xb8] sm:$0xff]  ;;  %v387_v44 = vld [vmem:[%s1086_s21 + $0xb0] sm:$0xff] }
  0x19   : > { %477 = vperm.xlu1 %1033, %v434_v13   ;;  %474 = vperm.xlu0 %1032, %v433_v14   ;;  %v447_v42 = vsel %vm415_vm3, 1, %v1042_v0  ;;  %vm418_vm4 = vcmp.gt.f32.partialorder %v386_v39, 0.0  ;;  %vm417_vm5 = vcmp.gt.f32.partialorder %v385_v40, 0.0  ;;  %vm420_vm6 = vcmp.gt.f32.partialorder %v388_v43, 0.0  ;;  %v390_v47 = vld [vmem:[%s1086_s21 + $0xc8] sm:$0xff]  ;;  %v389_v48 = vld [vmem:[%s1086_s21 + $0xc0] sm:$0xff] }
  0x1a   : > { %v450_v45 = vsel %vm418_vm4, 1, %v1042_v0  ;;  %v449_v46 = vsel %vm417_vm5, 1, %v1042_v0  ;;  %vm419_vm7 = vcmp.gt.f32.partialorder %v387_v44, 0.0  ;;  %v452_v49 = vsel %vm420_vm6, 1, %v1042_v0  ;;  %v392_v51 = vld [vmem:[%s1086_s21 + $0xd8] sm:$0xff]  ;;  %v391_v52 = vld [vmem:[%s1086_s21 + $0xd0] sm:$0xff] }
  0x1b   : > { %v451_v50 = vsel %vm419_vm7, 1, %v1042_v0  ;;  %vm422_vm8 = vcmp.gt.f32.partialorder %v390_v47, 0.0  ;;  %vm421_vm9 = vcmp.gt.f32.partialorder %v389_v48, 0.0  ;;  %vm424_vm10 = vcmp.gt.f32.partialorder %v392_v51, 0.0  ;;  %v394_v55 = vld [vmem:[%s1086_s21 + $0xe8] sm:$0xff]  ;;  %v393_v56 = vld [vmem:[%s1086_s21 + $0xe0] sm:$0xff] }
  0x1c   : > { %v454_v53 = vsel %vm422_vm8, 1, %v1042_v0  ;;  %v453_v54 = vsel %vm421_vm9, 1, %v1042_v0  ;;  %vm423_vm11 = vcmp.gt.f32.partialorder %v391_v52, 0.0  ;;  %v456_v57 = vsel %vm424_vm10, 1, %v1042_v0  ;;  %v396_v59 = vld [vmem:[%s1086_s21 + $0xf8] sm:$0xff]  ;;  %v395_v60 = vld [vmem:[%s1086_s21 + $0xf0] sm:$0xff] }
  0x1d   : > { %483 = vperm.xlu1 %1033, %v436_v17   ;;  %480 = vperm.xlu0 %1032, %v435_v18   ;;  %v455_v58 = vsel %vm423_vm11, 1, %v1042_v0  ;;  %vm426_vm12 = vcmp.gt.f32.partialorder %v394_v55, 0.0  ;;  %vm425_vm13 = vcmp.gt.f32.partialorder %v393_v56, 0.0  ;;  %vm428_vm14 = vcmp.gt.f32.partialorder %v396_v59, 0.0  ;;  %v225_v2 = vld [vmem:[%s1157_s24 + $0x10] sm:$0xff]  ;;  %v223_v3 = vld [vmem:[%s1157_s24] sm:$0xff] }
  0x1e   : > { %v458_v61 = vsel %vm426_vm12, 1, %v1042_v0  ;;  %v457_v62 = vsel %vm425_vm13, 1, %v1042_v0  ;;  %vm427_vm15 = vcmp.gt.f32.partialorder %v395_v60, 0.0  ;;  %v460_v63 = vsel %vm428_vm14, 1, %v1042_v0  ;;  %v226_v4 = vld [vmem:[%s1157_s24 + $0x18] sm:$0xff]  ;;  %v224_v5 = vld [vmem:[%s1157_s24 + $0x8] sm:$0xff] }
  0x1f   : > { %v459_v1 = vsel %vm427_vm15, 1, %v1042_v0  ;;  %v1162_v0 = vld [vmem:[%s1291_s1] ss:$0 sm:$0xff]  ;;  %v228_v6 = vld [vmem:[%s1157_s24 + $0x28] sm:$0xff]  ;;  %v230_v15 = vld [vmem:[%s1157_s24 + $0x38] sm:$0xff] }
  0x20   : > { %v227_v7 = vld [vmem:[%s1157_s24 + $0x20] sm:$0xff]  ;;  %v264_v8 = vmul.f32 %v1162_v0, %v225_v2  ;;  %v262_v9 = vmul.f32 %v1162_v0, %v223_v3  ;;  %v265_v10 = vmul.f32 %v1162_v0, %v226_v4  ;;  %v263_v11 = vmul.f32 %v1162_v0, %v224_v5  ;;  %v229_v16 = vld [vmem:[%s1157_s24 + $0x30] sm:$0xff]  ;;  %v232_v31 = vld [vmem:[%s1157_s24 + $0x48] sm:$0xff] }
  0x21   : > { %489 = vperm.xlu1 %1033, %v438_v21   ;;  %486 = vperm.xlu0 %1032, %v437_v22   ;;  %v1177_v12 = vld [vmem:[%s1292_s2] ss:$0 sm:$0xff]  ;;  %v267_v13 = vmul.f32 %v1162_v0, %v228_v6  ;;  %v266_v14 = vmul.f32 %v1162_v0, %v227_v7  ;;  %v271_v39 = vmul.f32 %v1162_v0, %v232_v31  ;;  %v236_v55 = vld [vmem:[%s1157_s24 + $0x68] sm:$0xff]  ;;  %v238_v5 = vld [vmem:[%s1157_s24 + $0x78] sm:$0xff] }
  0x22   : > { %v303_v17 = vadd.f32 %v1177_v12, %v264_v8  ;;  %v301_v18 = vadd.f32 %v1177_v12, %v262_v9  ;;  %v304_v19 = vadd.f32 %v1177_v12, %v265_v10  ;;  %v302_v20 = vadd.f32 %v1177_v12, %v263_v11  ;;  %v231_v32 = vld [vmem:[%s1157_s24 + $0x40] sm:$0xff]  ;;  %v237_v10 = vld [vmem:[%s1157_s24 + $0x70] sm:$0xff] }
  0x23   : > { %v306_v23 = vadd.f32 %v1177_v12, %v267_v13  ;;  %v305_v24 = vadd.f32 %v1177_v12, %v266_v14  ;;  %v270_v40 = vmul.f32 %v1162_v0, %v231_v32  ;;  %v235_v56 = vld [vmem:[%s1157_s24 + $0x60] sm:$0xff]  ;;  %v310_v59 = vadd.f32 %v1177_v12, %v271_v39  ;;  %v242_v32 = vld [vmem:[%s1157_s24 + $0x98] sm:$0xff] }
  0x24   : > { %v335_v27 = vmax.f32 %v303_v17, 0.0  ;;  %v333_v28 = vmax.f32 %v301_v18, 0.0  ;;  %v274_v2 = vmul.f32 %v1162_v0, %v235_v56  ;;  %v276_v18 = vmul.f32 %v1162_v0, %v237_v10 }
  0x25   : > { %495 = vperm.xlu1 %1033, %v440_v25   ;;  %492 = vperm.xlu0 %1032, %v439_v26   ;;  %v269_v25 = vmul.f32 %v1162_v0, %v230_v15  ;;  %v268_v26 = vmul.f32 %v1162_v0, %v229_v16  ;;  %v338_v35 = vmax.f32 %v306_v23, 0.0  ;;  %v337_v36 = vmax.f32 %v305_v24, 0.0  ;;  %v240_v24 = vld [vmem:[%s1157_s24 + $0x88] sm:$0xff] }
  0x26   : > { %v309_v60 = vadd.f32 %v1177_v12, %v270_v40  ;;  %v342_v8 = vmax.f32 %v310_v59, 0.0  ;;  %v277_v16 = vmul.f32 %v1162_v0, %v238_v5  ;;  %v313_v17 = vadd.f32 %v1177_v12, %v274_v2 }
  0x27   : > { %v315_v31 = vadd.f32 %v1177_v12, %v276_v18 }
  0x28   : > { %v341_v9 = vmax.f32 %v309_v60, 0.0 }
  0x29   : > { %501 = vperm.xlu1 %1033, %v442_v29   ;;  %498 = vperm.xlu0 %1032, %v441_v30   ;;  %v336_v29 = vmax.f32 %v304_v19, 0.0  ;;  %v334_v30 = vmax.f32 %v302_v20, 0.0 }
  0x2d   : > { %507 = vperm.xlu1 %1033, %v444_v33   ;;  %504 = vperm.xlu0 %1032, %v443_v34  }
  0x31   : > { %513 = vperm.xlu1 %1033, %v446_v37   ;;  %510 = vperm.xlu0 %1032, %v445_v38   ;;  %v308_v37 = vadd.f32 %v1177_v12, %v269_v25  ;;  %v307_v38 = vadd.f32 %v1177_v12, %v268_v26  ;;  %v239_v25 = vld [vmem:[%s1157_s24 + $0x80] sm:$0xff] }
  0x33   : > { %v340_v51 = vmax.f32 %v308_v37, 0.0  ;;  %v241_v37 = vld [vmem:[%s1157_s24 + $0x90] sm:$0xff] }
  0x35   : > { %519 = vperm.xlu1 %1033, %v448_v41   ;;  %516 = vperm.xlu0 %1032, %v447_v42   ;;  %v234_v41 = vld [vmem:[%s1157_s24 + $0x58] sm:$0xff] }
  0x36   : > { %v273_v52 = vmul.f32 %v1162_v0, %v234_v41 }
  0x38   : > { %v312_v3 = vadd.f32 %v1177_v12, %v273_v52 }
  0x39   : > { %525 = vperm.xlu1 %1033, %v450_v45   ;;  %522 = vperm.xlu0 %1032, %v449_v46   ;;  %v233_v46 = vld [vmem:[%s1157_s24 + $0x50] sm:$0xff] }
  0x3d   : > { %531 = vperm.xlu1 %1033, %v452_v49   ;;  %528 = vperm.xlu0 %1032, %v451_v50  }
  0x41   : > { %537 = vperm.xlu1 %1033, %v454_v53   ;;  %534 = vperm.xlu0 %1032, %v453_v54   ;;  %v339_v53 = vmax.f32 %v307_v38, 0.0  ;;  %v272_v54 = vmul.f32 %v1162_v0, %v233_v46  ;;  %v243_v46 = vld [vmem:[%s1157_s24 + $0xa0] sm:$0xff] }
  0x43   : > { %v311_v4 = vadd.f32 %v1177_v12, %v272_v54 }
  0x45   : > { %543 = vperm.xlu1 %1033, %v456_v57   ;;  %540 = vperm.xlu0 %1032, %v455_v58  }
  0x49   : > { %549 = vperm.xlu1 %1033, %v458_v61   ;;  %546 = vperm.xlu0 %1032, %v457_v62  }
  0x4d   : > { %555 = vperm.xlu1 %1033, %v460_v63   ;;  %552 = vperm.xlu0 %1032, %v459_v1   ;;  %v275_v1 = vmul.f32 %v1162_v0, %v236_v55  ;;  %v282_v55 = vmul.f32 %v1162_v0, %v243_v46 }
  0x4f   : > { %v314_v15 = vadd.f32 %v1177_v12, %v275_v1  ;;  %v321_v5 = vadd.f32 %v1177_v12, %v282_v55 }
  0x8c   : > { %v469_v21 = vpop.permute.xlu1 %468  ;;  %v463_v22 = vpop.permute.xlu0 %462 }
  0x8d   : > { %vm559_vm0 = vcmp.eq.s32.totalorder %v469_v21, 1  ;;  %vm557_vm1 = vcmp.eq.s32.totalorder %v463_v22, 1  ;;  %v344_v21 = vmax.f32 %v312_v3, 0.0  ;;  %v343_v22 = vmax.f32 %v311_v4, 0.0 }
  0x8e   : > { %v591_v42 = vsel %vm559_vm0, %v335_v27, 0.0  ;;  %v589_v43 = vsel %vm557_vm1, %v333_v28, 0.0  ;;  %v346_v28 = vmax.f32 %v314_v15, 0.0  ;;  %v247_v15 = vld [vmem:[%s1157_s24 + $0xc0] sm:$0xff] }
  0x90   : > { %v472_v33 = vpop.permute.xlu1 %471  ;;  %v466_v34 = vpop.permute.xlu0 %465 }
  0x91   : > { %vm560_vm2 = vcmp.eq.s32.totalorder %v472_v33, 1  ;;  %vm558_vm3 = vcmp.eq.s32.totalorder %v466_v34, 1 }
  0x92   : > { %v592_v44 = vsel %vm560_vm2, %v336_v29, 0.0  ;;  %v590_v45 = vsel %vm558_vm3, %v334_v30, 0.0  ;;  %v316_v29 = vadd.f32 %v1177_v12, %v277_v16  ;;  %v345_v30 = vmax.f32 %v313_v17, 0.0 }
  0x93   : > { %v936_v47 = vpack.c.bf16 %v592_v44, %v591_v42  ;;  %v931_v48 = vpack.c.bf16 %v590_v45, %v589_v43  ;;  %v281_v42 = vmul.f32 %v1162_v0, %v242_v32  ;;  %v347_v43 = vmax.f32 %v315_v31, 0.0  ;;  %v244_v45 = vld [vmem:[%s1157_s24 + $0xa8] sm:$0xff] }
  0x94   : > { %v478_v49 = vpop.permute.xlu1 %477  ;;  %v475_v50 = vpop.permute.xlu0 %474  ;;  %v348_v41 = vmax.f32 %v316_v29, 0.0  ;;  %v280_v44 = vmul.f32 %v1162_v0, %v241_v37  ;;  %v283_v54 = vmul.f32 %v1162_v0, %v244_v45 }
  0x95   : > { %1008 = vst [vmem:[%s1202_s6 + $0x8] sm:$0xff] %v936_v47   ;;  %932 = vst [vmem:[%s1202_s6] sm:$0xff] %v931_v48   ;;  %vm562_vm4 = vcmp.eq.s32.totalorder %v478_v49, 1  ;;  %vm561_vm5 = vcmp.eq.s32.totalorder %v475_v50, 1  ;;  %v320_v56 = vadd.f32 %v1177_v12, %v281_v42 }
  0x96   : > { %v594_v57 = vsel %vm562_vm4, %v338_v35, 0.0  ;;  %v593_v58 = vsel %vm561_vm5, %v337_v36, 0.0  ;;  %v279_v35 = vmul.f32 %v1162_v0, %v240_v24  ;;  %v278_v36 = vmul.f32 %v1162_v0, %v239_v25 }
  0x97   : > { %v941_v61 = vpack.c.bf16 %v594_v57, %v593_v58  ;;  %v319_v57 = vadd.f32 %v1177_v12, %v280_v44  ;;  %v322_v4 = vadd.f32 %v1177_v12, %v283_v54  ;;  %v352_v10 = vmax.f32 %v320_v56, 0.0  ;;  %v253_v54 = vld [vmem:[%s1157_s24 + $0xf0] sm:$0xff] }
  0x98   : > { %v484_v62 = vpop.permute.xlu1 %483  ;;  %v481_v63 = vpop.permute.xlu0 %480  ;;  %v318_v49 = vadd.f32 %v1177_v12, %v279_v35  ;;  %v317_v50 = vadd.f32 %v1177_v12, %v278_v36 }
  0x99   : > { %1009 = vst [vmem:[%s1202_s6 + $0x10] sm:$0xff] %v941_v61   ;;  %vm564_vm6 = vcmp.eq.s32.totalorder %v484_v62, 1  ;;  %vm563_vm7 = vcmp.eq.s32.totalorder %v481_v63, 1  ;;  %v246_v62 = vld [vmem:[%s1157_s24 + $0xb8] sm:$0xff]  ;;  %v245_v63 = vld [vmem:[%s1157_s24 + $0xb0] sm:$0xff]  ;;  %v354_v18 = vmax.f32 %v322_v4, 0.0 }
  0x9a   : > { %v596_v6 = vsel %vm564_vm6, %v340_v51, 0.0  ;;  %v595_v7 = vsel %vm563_vm7, %v339_v53, 0.0  ;;  %v350_v60 = vmax.f32 %v318_v49, 0.0  ;;  %v349_v61 = vmax.f32 %v317_v50, 0.0 }
  0x9b   : > { %v946_v11 = vpack.c.bf16 %v596_v6, %v595_v7  ;;  %v285_v6 = vmul.f32 %v1162_v0, %v246_v62  ;;  %v284_v7 = vmul.f32 %v1162_v0, %v245_v63 }
  0x9c   : > { %v490_v13 = vpop.permute.xlu1 %489  ;;  %v487_v14 = vpop.permute.xlu0 %486 }
  0x9d   : > { %1010 = vst [vmem:[%s1202_s6 + $0x18] sm:$0xff] %v946_v11   ;;  %vm566_vm8 = vcmp.eq.s32.totalorder %v490_v13, 1  ;;  %vm565_vm9 = vcmp.eq.s32.totalorder %v487_v14, 1  ;;  %v351_v11 = vmax.f32 %v319_v57, 0.0  ;;  %v248_v14 = vld [vmem:[%s1157_s24 + $0xc8] sm:$0xff] }
  0x9e   : > { %v598_v19 = vsel %vm566_vm8, %v342_v8, 0.0  ;;  %v597_v20 = vsel %vm565_vm9, %v341_v9, 0.0 }
  0x9f   : > { %v951_v23 = vpack.c.bf16 %v598_v19, %v597_v20  ;;  %v353_v19 = vmax.f32 %v321_v5, 0.0  ;;  %v324_v20 = vadd.f32 %v1177_v12, %v285_v6 }
  0xa0   : > { %v496_v26 = vpop.permute.xlu1 %495  ;;  %v493_v27 = vpop.permute.xlu0 %492 }
  0xa1   : > { %1011 = vst [vmem:[%s1202_s6 + $0x20] sm:$0xff] %v951_v23   ;;  %vm568_vm10 = vcmp.eq.s32.totalorder %v496_v26, 1  ;;  %vm567_vm11 = vcmp.eq.s32.totalorder %v493_v27, 1  ;;  %v249_v23 = vld [vmem:[%s1157_s24 + $0xd0] sm:$0xff]  ;;  %v287_v26 = vmul.f32 %v1162_v0, %v248_v14  ;;  %v286_v27 = vmul.f32 %v1162_v0, %v247_v15 }
  0xa2   : > { %v600_v33 = vsel %vm568_vm10, %v344_v21, 0.0  ;;  %v599_v34 = vsel %vm567_vm11, %v343_v22, 0.0  ;;  %v323_v21 = vadd.f32 %v1177_v12, %v284_v7  ;;  %v250_v22 = vld [vmem:[%s1157_s24 + $0xd8] sm:$0xff]  ;;  %v288_v32 = vmul.f32 %v1162_v0, %v249_v23 }
  0xa3   : > { %v956_v38 = vpack.c.bf16 %v600_v33, %v599_v34  ;;  %v289_v31 = vmul.f32 %v1162_v0, %v250_v22  ;;  %v356_v33 = vmax.f32 %v324_v20, 0.0  ;;  %v326_v37 = vadd.f32 %v1177_v12, %v287_v26 }
  0xa4   : > { %v502_v39 = vpop.permute.xlu1 %501  ;;  %v499_v40 = vpop.permute.xlu0 %498  ;;  %v355_v34 = vmax.f32 %v323_v21, 0.0  ;;  %v327_v45 = vadd.f32 %v1177_v12, %v288_v32 }
  0xa5   : > { %1012 = vst [vmem:[%s1202_s6 + $0x28] sm:$0xff] %v956_v38   ;;  %vm570_vm12 = vcmp.eq.s32.totalorder %v502_v39, 1  ;;  %vm569_vm13 = vcmp.eq.s32.totalorder %v499_v40, 1  ;;  %v325_v38 = vadd.f32 %v1177_v12, %v286_v27  ;;  %v252_v39 = vld [vmem:[%s1157_s24 + $0xe8] sm:$0xff]  ;;  %v251_v40 = vld [vmem:[%s1157_s24 + $0xe0] sm:$0xff]  ;;  %v328_v44 = vadd.f32 %v1177_v12, %v289_v31 }
  0xa6   : > { %v602_v47 = vsel %vm570_vm12, %v346_v28, 0.0  ;;  %v601_v48 = vsel %vm569_vm13, %v345_v30, 0.0  ;;  %v291_v46 = vmul.f32 %v1162_v0, %v252_v39  ;;  %v358_v50 = vmax.f32 %v326_v37, 0.0 }
  0xa7   : > { %v961_v51 = vpack.c.bf16 %v602_v47, %v601_v48  ;;  %v290_v47 = vmul.f32 %v1162_v0, %v251_v40  ;;  %v360_v57 = vmax.f32 %v328_v44, 0.0 }
  0xa8   : > { %v508_v52 = vpop.permute.xlu1 %507  ;;  %v505_v53 = vpop.permute.xlu0 %504 }
  0xa9   : > { %1013 = vst [vmem:[%s1202_s6 + $0x30] sm:$0xff] %v961_v51   ;;  %vm572_vm14 = vcmp.eq.s32.totalorder %v508_v52, 1  ;;  %vm571_vm15 = vcmp.eq.s32.totalorder %v505_v53, 1  ;;  %v357_v51 = vmax.f32 %v325_v38, 0.0  ;;  %v254_v53 = vld [vmem:[%s1157_s24 + $0xf8] sm:$0xff] }
  0xaa   : > { %v604_v58 = vsel %vm572_vm14, %v348_v41, 0.0  ;;  %v603_v59 = vsel %vm571_vm15, %v347_v43, 0.0  ;;  %v293_v63 = vmul.f32 %v1162_v0, %v254_v53 }
  0xab   : > { %v966_v1 = vpack.c.bf16 %v604_v58, %v603_v59  ;;  %v359_v58 = vmax.f32 %v327_v45, 0.0  ;;  %v330_v59 = vadd.f32 %v1177_v12, %v291_v46 }
  0xac   : > { %v514_v2 = vpop.permute.xlu1 %513  ;;  %v511_v3 = vpop.permute.xlu0 %510 }
  0xad   : > { %1014 = vst [vmem:[%s1202_s6 + $0x38] sm:$0xff] %v966_v1   ;;  %vm574_vm0 = vcmp.eq.s32.totalorder %v514_v2, 1  ;;  %vm573_vm1 = vcmp.eq.s32.totalorder %v511_v3, 1  ;;  %v292_v1 = vmul.f32 %v1162_v0, %v253_v54  ;;  %v362_v5 = vmax.f32 %v330_v59, 0.0 }
  0xae   : > { %v606_v8 = vsel %vm574_vm0, %v350_v60, 0.0  ;;  %v605_v9 = vsel %vm573_vm1, %v349_v61, 0.0  ;;  %v329_v60 = vadd.f32 %v1177_v12, %v290_v47 }
  0xaf   : > { %v971_v13 = vpack.c.bf16 %v606_v8, %v605_v9  ;;  %v332_v9 = vadd.f32 %v1177_v12, %v293_v63 }
  0xb0   : > { %v520_v16 = vpop.permute.xlu1 %519  ;;  %v517_v17 = vpop.permute.xlu0 %516  ;;  %v361_v6 = vmax.f32 %v329_v60, 0.0 }
  0xb1   : > { %1015 = vst [vmem:[%s1202_s6 + $0x40] sm:$0xff] %v971_v13   ;;  %vm576_vm2 = vcmp.eq.s32.totalorder %v520_v16, 1  ;;  %vm575_vm3 = vcmp.eq.s32.totalorder %v517_v17, 1  ;;  %v364_v16 = vmax.f32 %v332_v9, 0.0 }
  0xb2   : > { %v608_v24 = vsel %vm576_vm2, %v352_v10, 0.0  ;;  %v607_v25 = vsel %vm575_vm3, %v351_v11, 0.0  ;;  %v331_v10 = vadd.f32 %v1177_v12, %v292_v1 }
  0xb3   : > { %v976_v28 = vpack.c.bf16 %v608_v24, %v607_v25 }
  0xb4   : > { %v526_v29 = vpop.permute.xlu1 %525  ;;  %v523_v30 = vpop.permute.xlu0 %522  ;;  %v363_v17 = vmax.f32 %v331_v10, 0.0 }
  0xb5   : > { %1016 = vst [vmem:[%s1202_s6 + $0x48] sm:$0xff] %v976_v28   ;;  %vm578_vm4 = vcmp.eq.s32.totalorder %v526_v29, 1  ;;  %vm577_vm5 = vcmp.eq.s32.totalorder %v523_v30, 1 }
  0xb6   : > { %v610_v35 = vsel %vm578_vm4, %v354_v18, 0.0  ;;  %v609_v36 = vsel %vm577_vm5, %v353_v19, 0.0 }
  0xb7   : > { %v981_v41 = vpack.c.bf16 %v610_v35, %v609_v36 }
  0xb8   : > { %v532_v42 = vpop.permute.xlu1 %531  ;;  %v529_v43 = vpop.permute.xlu0 %528 }
  0xb9   : > { %1017 = vst [vmem:[%s1202_s6 + $0x50] sm:$0xff] %v981_v41   ;;  %vm580_vm6 = vcmp.eq.s32.totalorder %v532_v42, 1  ;;  %vm579_vm7 = vcmp.eq.s32.totalorder %v529_v43, 1 }
  0xba   : > { %v612_v48 = vsel %vm580_vm6, %v356_v33, 0.0  ;;  %v611_v49 = vsel %vm579_vm7, %v355_v34, 0.0 }
  0xbb   : > { %v986_v52 = vpack.c.bf16 %v612_v48, %v611_v49 }
  0xbc   : > { %v538_v55 = vpop.permute.xlu1 %537  ;;  %v535_v56 = vpop.permute.xlu0 %534 }
  0xbd   : > { %1018 = vst [vmem:[%s1202_s6 + $0x58] sm:$0xff] %v986_v52   ;;  %vm582_vm8 = vcmp.eq.s32.totalorder %v538_v55, 1  ;;  %vm581_vm9 = vcmp.eq.s32.totalorder %v535_v56, 1 }
  0xbe   : > { %v614_v61 = vsel %vm582_vm8, %v358_v50, 0.0  ;;  %v613_v62 = vsel %vm581_vm9, %v357_v51, 0.0 }
  0xbf   : > { %v991_v2 = vpack.c.bf16 %v614_v61, %v613_v62 }
  0xc0   : > { %v544_v3 = vpop.permute.xlu1 %543  ;;  %v541_v4 = vpop.permute.xlu0 %540 }
  0xc1   : > { %1019 = vst [vmem:[%s1202_s6 + $0x60] sm:$0xff] %v991_v2   ;;  %vm584_vm10 = vcmp.eq.s32.totalorder %v544_v3, 1  ;;  %vm583_vm11 = vcmp.eq.s32.totalorder %v541_v4, 1 }
  0xc2   : > { %v616_v7 = vsel %vm584_vm10, %v360_v57, 0.0  ;;  %v615_v8 = vsel %vm583_vm11, %v359_v58, 0.0 }
  0xc3   : > { %v996_v11 = vpack.c.bf16 %v616_v7, %v615_v8 }
  0xc4   : > { %v550_v13 = vpop.permute.xlu1 %549  ;;  %v547_v14 = vpop.permute.xlu0 %546 }
  0xc5   : > { %1020 = vst [vmem:[%s1202_s6 + $0x68] sm:$0xff] %v996_v11   ;;  %vm586_vm12 = vcmp.eq.s32.totalorder %v550_v13, 1  ;;  %vm585_vm13 = vcmp.eq.s32.totalorder %v547_v14, 1 }
  0xc6   : > { %v618_v0 = vsel %vm586_vm12, %v362_v5, 0.0  ;;  %v617_v15 = vsel %vm585_vm13, %v361_v6, 0.0 }
  0xc7   : > { %v1001_v18 = vpack.c.bf16 %v618_v0, %v617_v15 }
  0xc8   : > { %v556_v19 = vpop.permute.xlu1 %555  ;;  %v553_v20 = vpop.permute.xlu0 %552 }
  0xc9   : > { %1021 = vst [vmem:[%s1202_s6 + $0x70] sm:$0xff] %v1001_v18   ;;  %vm588_vm14 = vcmp.eq.s32.totalorder %v556_v19, 1  ;;  %vm587_vm15 = vcmp.eq.s32.totalorder %v553_v20, 1 }
  0xca   : > { %v620_v21 = vsel %vm588_vm14, %v364_v16, 0.0  ;;  %v619_v22 = vsel %vm587_vm15, %v363_v17, 0.0 }
  0xcb   : > { %v1006_v12 = vpack.c.bf16 %v620_v21, %v619_v22 }
  0xcd   : > { %1022 = vst [vmem:[%s1202_s6 + $0x78] sm:$0xff] %v1006_v12  }
  0xce PF: > { %s14_s15 = sadd.s32 1, %s1040_s15  }
  0xcf   : > { %p11_p4 = scmp.ge.s32.totalorder %s14_s15, 8  }
  0xd1   :  { %13 = sbr.rel (!%p11_p4) target bundleno = 1 (0x1), region = 69 }

// kernel: bridge_forward.7
= control target key start
LH: loop header
LB: loop body
LE: loop exit
PB: predicated region body
PF: predicated region fallthrough
CT: control target
= control target key end

     0   :  { %s781_s15 = smov 0   ;;  %s1016_s0 = inlined_call_operand.vmem [shape: f32[1536,128], index: 0, kind: input, shape index: {}]   ;;  %s1017_s1 = inlined_call_operand.vmem [shape: f32[1,128], index: 1, kind: input, shape index: {}]   ;;  %s1018_s2 = inlined_call_operand.vmem [shape: f32[1,128], index: 2, kind: input, shape index: {}]   ;;  %s1019_s3 = inlined_call_operand.vmem [shape: f32[1536,1], index: 3, kind: input, shape index: {}]   ;;  %s1020_s4 = inlined_call_operand.vmem [shape: f32[1536,128], index: 4, kind: output, shape index: {}]  }
   0x1 LB: > { %s721_s16 = sadd.s32 4294967295, %s753_s15   ;;  %p725_p0 = scmp.ge.s32.totalorder %s753_s15, 1  ;;  %s753_s15 = sphi %s781_s15, %s14_s15  }
   0x2   : > { %p174_p1 = scmp.lt.s32.totalorder %s753_s15, 7 }
   0x4   : > { %p175_p2 = pnand %p725_p0, %p174_p1 }
   0x5   : > { %s726_s17 = sshll.u32 (!%p175_p2), %s721_s16, 5 }
   0x6   : > { %178 = sbr.rel (%p175_p2) target bundleno = 204 (0xcc), region = 36  ;;  %p206_p3 = scmp.lt.s32.totalorder (!%p175_p2), %s726_s17, 191 }
   0xb   : > { %v755_v0 = vmov 0   ;;  %s1022_s17 = smov (!%p206_p3, %s726_s17), 191 }
   0xc   : > { %746 = vset.pattern.permute.xlu1 %v755_v0  ;;  %745 = vset.pattern.permute.xlu0 %v755_v0  ;;  %s791_s18 = sshll.u32 %s1022_s17, 3 }
   0xd   : > { %s797_s21 = scalar_lea.vmem %s1019_s3, %s791_s18  ;;  %s867_s24 = scalar_lea.vmem %s1016_s0, %s791_s18 }
   0xe   : > { %v367_v1 = vld [vmem:[%s797_s21 + $0x10] sm:$0xff]  ;;  %v365_v2 = vld [vmem:[%s797_s21] sm:$0xff]  ;;  %v368_v3 = vld [vmem:[%s797_s21 + $0x18] sm:$0xff]  ;;  %s901_s5 = scalar_lea.vmem %s1020_s4, %s791_s18 }
   0xf   : > { %vm399_vm0 = vcmp.gt.f32.partialorder %v367_v1, 0.0  ;;  %vm397_vm1 = vcmp.gt.f32.partialorder %v365_v2, 0.0  ;;  %vm400_vm2 = vcmp.gt.f32.partialorder %v368_v3, 0.0  ;;  %v366_v4 = vld [vmem:[%s797_s21 + $0x8] sm:$0xff]  ;;  %v369_v8 = vld [vmem:[%s797_s21 + $0x20] sm:$0xff]  ;;  %v372_v11 = vld [vmem:[%s797_s21 + $0x38] sm:$0xff] }
  0x10   : > { %v431_v5 = vsel %vm399_vm0, 1, %v755_v0  ;;  %v429_v6 = vsel %vm397_vm1, 1, %v755_v0  ;;  %vm398_vm3 = vcmp.gt.f32.partialorder %v366_v4, 0.0  ;;  %v370_v7 = vld [vmem:[%s797_s21 + $0x28] sm:$0xff]  ;;  %v432_v9 = vsel %vm400_vm2, 1, %v755_v0  ;;  %v371_v12 = vld [vmem:[%s797_s21 + $0x30] sm:$0xff] }
  0x11   : > { %468 = vperm.xlu1 %746, %v431_v5   ;;  %462 = vperm.xlu0 %745, %v429_v6   ;;  %v430_v10 = vsel %vm398_vm3, 1, %v755_v0  ;;  %vm402_vm4 = vcmp.gt.f32.partialorder %v370_v7, 0.0  ;;  %vm401_vm5 = vcmp.gt.f32.partialorder %v369_v8, 0.0  ;;  %vm404_vm6 = vcmp.gt.f32.partialorder %v372_v11, 0.0  ;;  %v374_v15 = vld [vmem:[%s797_s21 + $0x48] sm:$0xff]  ;;  %v373_v16 = vld [vmem:[%s797_s21 + $0x40] sm:$0xff] }
  0x12   : > { %v434_v13 = vsel %vm402_vm4, 1, %v755_v0  ;;  %v433_v14 = vsel %vm401_vm5, 1, %v755_v0  ;;  %vm403_vm7 = vcmp.gt.f32.partialorder %v371_v12, 0.0  ;;  %v436_v17 = vsel %vm404_vm6, 1, %v755_v0  ;;  %v376_v19 = vld [vmem:[%s797_s21 + $0x58] sm:$0xff]  ;;  %v375_v20 = vld [vmem:[%s797_s21 + $0x50] sm:$0xff] }
  0x13   : > { %v435_v18 = vsel %vm403_vm7, 1, %v755_v0  ;;  %vm406_vm8 = vcmp.gt.f32.partialorder %v374_v15, 0.0  ;;  %vm405_vm9 = vcmp.gt.f32.partialorder %v373_v16, 0.0  ;;  %vm408_vm10 = vcmp.gt.f32.partialorder %v376_v19, 0.0  ;;  %v378_v23 = vld [vmem:[%s797_s21 + $0x68] sm:$0xff]  ;;  %v377_v24 = vld [vmem:[%s797_s21 + $0x60] sm:$0xff] }
  0x14   : > { %v438_v21 = vsel %vm406_vm8, 1, %v755_v0  ;;  %v437_v22 = vsel %vm405_vm9, 1, %v755_v0  ;;  %vm407_vm11 = vcmp.gt.f32.partialorder %v375_v20, 0.0  ;;  %v440_v25 = vsel %vm408_vm10, 1, %v755_v0  ;;  %v380_v27 = vld [vmem:[%s797_s21 + $0x78] sm:$0xff]  ;;  %v379_v28 = vld [vmem:[%s797_s21 + $0x70] sm:$0xff] }
  0x15   : > { %471 = vperm.xlu1 %746, %v432_v9   ;;  %465 = vperm.xlu0 %745, %v430_v10   ;;  %v439_v26 = vsel %vm407_vm11, 1, %v755_v0  ;;  %vm410_vm12 = vcmp.gt.f32.partialorder %v378_v23, 0.0  ;;  %vm409_vm13 = vcmp.gt.f32.partialorder %v377_v24, 0.0  ;;  %vm412_vm14 = vcmp.gt.f32.partialorder %v380_v27, 0.0  ;;  %v382_v31 = vld [vmem:[%s797_s21 + $0x88] sm:$0xff]  ;;  %v381_v32 = vld [vmem:[%s797_s21 + $0x80] sm:$0xff] }
  0x16   : > { %v442_v29 = vsel %vm410_vm12, 1, %v755_v0  ;;  %v441_v30 = vsel %vm409_vm13, 1, %v755_v0  ;;  %vm411_vm15 = vcmp.gt.f32.partialorder %v379_v28, 0.0  ;;  %v444_v33 = vsel %vm412_vm14, 1, %v755_v0  ;;  %v384_v35 = vld [vmem:[%s797_s21 + $0x98] sm:$0xff]  ;;  %v383_v36 = vld [vmem:[%s797_s21 + $0x90] sm:$0xff] }
  0x17   : > { %v443_v34 = vsel %vm411_vm15, 1, %v755_v0  ;;  %vm414_vm0 = vcmp.gt.f32.partialorder %v382_v31, 0.0  ;;  %vm413_vm1 = vcmp.gt.f32.partialorder %v381_v32, 0.0  ;;  %vm416_vm2 = vcmp.gt.f32.partialorder %v384_v35, 0.0  ;;  %v386_v39 = vld [vmem:[%s797_s21 + $0xa8] sm:$0xff]  ;;  %v385_v40 = vld [vmem:[%s797_s21 + $0xa0] sm:$0xff] }
  0x18   : > { %v446_v37 = vsel %vm414_vm0, 1, %v755_v0  ;;  %v445_v38 = vsel %vm413_vm1, 1, %v755_v0  ;;  %vm415_vm3 = vcmp.gt.f32.partialorder %v383_v36, 0.0  ;;  %v448_v41 = vsel %vm416_vm2, 1, %v755_v0  ;;  %v388_v43 = vld [vmem:[%s797_s21 + $0xb8] sm:$0xff]  ;;  %v387_v44 = vld [vmem:[%s797_s21 + $0xb0] sm:$0xff] }
  0x19   : > { %477 = vperm.xlu1 %746, %v434_v13   ;;  %474 = vperm.xlu0 %745, %v433_v14   ;;  %v447_v42 = vsel %vm415_vm3, 1, %v755_v0  ;;  %vm418_vm4 = vcmp.gt.f32.partialorder %v386_v39, 0.0  ;;  %vm417_vm5 = vcmp.gt.f32.partialorder %v385_v40, 0.0  ;;  %vm420_vm6 = vcmp.gt.f32.partialorder %v388_v43, 0.0  ;;  %v390_v47 = vld [vmem:[%s797_s21 + $0xc8] sm:$0xff]  ;;  %v389_v48 = vld [vmem:[%s797_s21 + $0xc0] sm:$0xff] }
  0x1a   : > { %v450_v45 = vsel %vm418_vm4, 1, %v755_v0  ;;  %v449_v46 = vsel %vm417_vm5, 1, %v755_v0  ;;  %vm419_vm7 = vcmp.gt.f32.partialorder %v387_v44, 0.0  ;;  %v452_v49 = vsel %vm420_vm6, 1, %v755_v0  ;;  %v392_v51 = vld [vmem:[%s797_s21 + $0xd8] sm:$0xff]  ;;  %v391_v52 = vld [vmem:[%s797_s21 + $0xd0] sm:$0xff] }
  0x1b   : > { %v451_v50 = vsel %vm419_vm7, 1, %v755_v0  ;;  %vm422_vm8 = vcmp.gt.f32.partialorder %v390_v47, 0.0  ;;  %vm421_vm9 = vcmp.gt.f32.partialorder %v389_v48, 0.0  ;;  %vm424_vm10 = vcmp.gt.f32.partialorder %v392_v51, 0.0  ;;  %v394_v55 = vld [vmem:[%s797_s21 + $0xe8] sm:$0xff]  ;;  %v393_v56 = vld [vmem:[%s797_s21 + $0xe0] sm:$0xff] }
  0x1c   : > { %v454_v53 = vsel %vm422_vm8, 1, %v755_v0  ;;  %v453_v54 = vsel %vm421_vm9, 1, %v755_v0  ;;  %vm423_vm11 = vcmp.gt.f32.partialorder %v391_v52, 0.0  ;;  %v456_v57 = vsel %vm424_vm10, 1, %v755_v0  ;;  %v396_v59 = vld [vmem:[%s797_s21 + $0xf8] sm:$0xff]  ;;  %v395_v60 = vld [vmem:[%s797_s21 + $0xf0] sm:$0xff] }
  0x1d   : > { %483 = vperm.xlu1 %746, %v436_v17   ;;  %480 = vperm.xlu0 %745, %v435_v18   ;;  %v455_v58 = vsel %vm423_vm11, 1, %v755_v0  ;;  %vm426_vm12 = vcmp.gt.f32.partialorder %v394_v55, 0.0  ;;  %vm425_vm13 = vcmp.gt.f32.partialorder %v393_v56, 0.0  ;;  %vm428_vm14 = vcmp.gt.f32.partialorder %v396_v59, 0.0  ;;  %v872_v2 = vld [vmem:[%s1017_s1] ss:$0 sm:$0xff] }
  0x1e   : > { %v458_v61 = vsel %vm426_vm12, 1, %v755_v0  ;;  %v457_v62 = vsel %vm425_vm13, 1, %v755_v0  ;;  %vm427_vm15 = vcmp.gt.f32.partialorder %v395_v60, 0.0  ;;  %v460_v63 = vsel %vm428_vm14, 1, %v755_v0  ;;  %v223_v3 = vld [vmem:[%s867_s24] sm:$0xff]  ;;  %v226_v7 = vld [vmem:[%s867_s24 + $0x18] sm:$0xff] }
  0x1f   : > { %v459_v1 = vsel %vm427_vm15, 1, %v755_v0  ;;  %v225_v0 = vld [vmem:[%s867_s24 + $0x10] sm:$0xff]  ;;  %v262_v5 = vmul.f32 %v872_v2, %v223_v3  ;;  %v881_v6 = vld [vmem:[%s1018_s2] ss:$0 sm:$0xff]  ;;  %v224_v8 = vld [vmem:[%s867_s24 + $0x8] sm:$0xff]  ;;  %v265_v12 = vmul.f32 %v872_v2, %v226_v7 }
  0x20   : > { %v264_v4 = vmul.f32 %v872_v2, %v225_v0  ;;  %v228_v9 = vld [vmem:[%s867_s24 + $0x28] sm:$0xff]  ;;  %v263_v13 = vmul.f32 %v872_v2, %v224_v8  ;;  %v227_v14 = vld [vmem:[%s867_s24 + $0x20] sm:$0xff]  ;;  %v230_v17 = vld [vmem:[%s867_s24 + $0x38] sm:$0xff] }
  0x21   : > { %489 = vperm.xlu1 %746, %v438_v21   ;;  %486 = vperm.xlu0 %745, %v437_v22   ;;  %v301_v11 = vadd.f32 %v881_v6, %v262_v5  ;;  %v267_v15 = vmul.f32 %v872_v2, %v228_v9  ;;  %v266_v16 = vmul.f32 %v872_v2, %v227_v14  ;;  %v229_v22 = vld [vmem:[%s867_s24 + $0x30] sm:$0xff]  ;;  %v238_v0 = vld [vmem:[%s867_s24 + $0x78] sm:$0xff] }
  0x22   : > { %v303_v10 = vadd.f32 %v881_v6, %v264_v4  ;;  %v304_v20 = vadd.f32 %v881_v6, %v265_v12  ;;  %v302_v21 = vadd.f32 %v881_v6, %v263_v13  ;;  %v268_v28 = vmul.f32 %v872_v2, %v229_v22  ;;  %v237_v8 = vld [vmem:[%s867_s24 + $0x70] sm:$0xff] }
  0x23   : > { %v333_v19 = vmax.f32 %v301_v11, 0.0  ;;  %v305_v27 = vadd.f32 %v881_v6, %v266_v16  ;;  %v277_v12 = vmul.f32 %v872_v2, %v238_v0  ;;  %v276_v14 = vmul.f32 %v872_v2, %v237_v8 }
  0x24   : > { %v335_v18 = vmax.f32 %v303_v10, 0.0  ;;  %v336_v31 = vmax.f32 %v304_v20, 0.0  ;;  %v334_v32 = vmax.f32 %v302_v21, 0.0  ;;  %v307_v40 = vadd.f32 %v881_v6, %v268_v28  ;;  %v239_v20 = vld [vmem:[%s867_s24 + $0x80] sm:$0xff] }
  0x25   : > { %495 = vperm.xlu1 %746, %v440_v25   ;;  %492 = vperm.xlu0 %745, %v439_v26   ;;  %v306_v25 = vadd.f32 %v881_v6, %v267_v15  ;;  %v269_v26 = vmul.f32 %v872_v2, %v230_v17  ;;  %v337_v39 = vmax.f32 %v305_v27, 0.0  ;;  %v242_v27 = vld [vmem:[%s867_s24 + $0x98] sm:$0xff] }
  0x26   : > { %v339_v51 = vmax.f32 %v307_v40, 0.0  ;;  %v243_v40 = vld [vmem:[%s867_s24 + $0xa0] sm:$0xff] }
  0x29   : > { %501 = vperm.xlu1 %746, %v442_v29   ;;  %498 = vperm.xlu0 %745, %v441_v30  }
  0x2d   : > { %507 = vperm.xlu1 %746, %v444_v33   ;;  %504 = vperm.xlu0 %745, %v443_v34   ;;  %v232_v33 = vld [vmem:[%s867_s24 + $0x48] sm:$0xff]  ;;  %v231_v34 = vld [vmem:[%s867_s24 + $0x40] sm:$0xff] }
  0x2e   : > { %v271_v44 = vmul.f32 %v872_v2, %v232_v33 }
  0x31   : > { %513 = vperm.xlu1 %746, %v446_v37   ;;  %510 = vperm.xlu0 %745, %v445_v38   ;;  %v338_v37 = vmax.f32 %v306_v25, 0.0  ;;  %v308_v38 = vadd.f32 %v881_v6, %v269_v26  ;;  %v315_v26 = vadd.f32 %v881_v6, %v276_v14  ;;  %v249_v14 = vld [vmem:[%s867_s24 + $0xd0] sm:$0xff] }
  0x35   : > { %519 = vperm.xlu1 %746, %v448_v41   ;;  %516 = vperm.xlu0 %745, %v447_v42   ;;  %v234_v41 = vld [vmem:[%s867_s24 + $0x58] sm:$0xff] }
  0x39   : > { %525 = vperm.xlu1 %746, %v450_v45   ;;  %522 = vperm.xlu0 %745, %v449_v46   ;;  %v270_v45 = vmul.f32 %v872_v2, %v231_v34  ;;  %v233_v46 = vld [vmem:[%s867_s24 + $0x50] sm:$0xff] }
  0x3a   : > { %v272_v52 = vmul.f32 %v872_v2, %v233_v46 }
  0x3d   : > { %531 = vperm.xlu1 %746, %v452_v49   ;;  %528 = vperm.xlu0 %745, %v451_v50   ;;  %v340_v49 = vmax.f32 %v308_v38, 0.0  ;;  %v273_v50 = vmul.f32 %v872_v2, %v234_v41 }
  0x41   : > { %537 = vperm.xlu1 %746, %v454_v53   ;;  %534 = vperm.xlu0 %745, %v453_v54   ;;  %v236_v53 = vld [vmem:[%s867_s24 + $0x68] sm:$0xff]  ;;  %v235_v54 = vld [vmem:[%s867_s24 + $0x60] sm:$0xff] }
  0x45   : > { %543 = vperm.xlu1 %746, %v456_v57   ;;  %540 = vperm.xlu0 %745, %v455_v58   ;;  %v310_v57 = vadd.f32 %v881_v6, %v271_v44  ;;  %v309_v58 = vadd.f32 %v881_v6, %v270_v45 }
  0x47   : > { %v342_v5 = vmax.f32 %v310_v57, 0.0  ;;  %v341_v7 = vmax.f32 %v309_v58, 0.0 }
  0x49   : > { %549 = vperm.xlu1 %746, %v458_v61   ;;  %546 = vperm.xlu0 %745, %v457_v62   ;;  %v275_v61 = vmul.f32 %v872_v2, %v236_v53  ;;  %v274_v62 = vmul.f32 %v872_v2, %v235_v54 }
  0x4b   : > { %v314_v11 = vadd.f32 %v881_v6, %v275_v61  ;;  %v313_v13 = vadd.f32 %v881_v6, %v274_v62 }
  0x4d   : > { %555 = vperm.xlu1 %746, %v460_v63   ;;  %552 = vperm.xlu0 %745, %v459_v1   ;;  %v312_v63 = vadd.f32 %v881_v6, %v273_v50  ;;  %v311_v1 = vadd.f32 %v881_v6, %v272_v52  ;;  %v345_v25 = vmax.f32 %v313_v13, 0.0  ;;  %v250_v13 = vld [vmem:[%s867_s24 + $0xd8] sm:$0xff] }
  0x4f   : > { %v344_v17 = vmax.f32 %v312_v63, 0.0 }
  0x8c   : > { %v469_v23 = vpop.permute.xlu1 %468  ;;  %v463_v24 = vpop.permute.xlu0 %462 }
  0x8d   : > { %vm559_vm0 = vcmp.eq.s32.totalorder %v469_v23, 1  ;;  %vm557_vm1 = vcmp.eq.s32.totalorder %v463_v24, 1  ;;  %v346_v23 = vmax.f32 %v314_v11, 0.0  ;;  %v316_v24 = vadd.f32 %v881_v6, %v277_v12 }
  0x8e   : > { %v591_v29 = vsel %vm559_vm0, %v335_v18, 0.0  ;;  %v589_v30 = vsel %vm557_vm1, %v333_v19, 0.0  ;;  %v343_v18 = vmax.f32 %v311_v1, 0.0  ;;  %v240_v19 = vld [vmem:[%s867_s24 + $0x88] sm:$0xff] }
  0x8f   : > { %623 = vst [vmem:[%s901_s5 + $0x10] sm:$0xff] %v591_v29  ;;  %621 = vst [vmem:[%s901_s5] sm:$0xff] %v589_v30  ;;  %v279_v30 = vmul.f32 %v872_v2, %v240_v19 }
  0x90   : > { %v472_v35 = vpop.permute.xlu1 %471  ;;  %v466_v36 = vpop.permute.xlu0 %465 }
  0x91   : > { %vm560_vm2 = vcmp.eq.s32.totalorder %v472_v35, 1  ;;  %vm558_vm3 = vcmp.eq.s32.totalorder %v466_v36, 1  ;;  %v348_v35 = vmax.f32 %v316_v24, 0.0  ;;  %v281_v36 = vmul.f32 %v872_v2, %v242_v27 }
  0x92   : > { %v592_v42 = vsel %vm560_vm2, %v336_v31, 0.0  ;;  %v590_v43 = vsel %vm558_vm3, %v334_v32, 0.0  ;;  %v278_v31 = vmul.f32 %v872_v2, %v239_v20  ;;  %v241_v32 = vld [vmem:[%s867_s24 + $0x90] sm:$0xff] }
  0x93   : > { %624 = vst [vmem:[%s901_s5 + $0x18] sm:$0xff] %v592_v42  ;;  %622 = vst [vmem:[%s901_s5 + $0x8] sm:$0xff] %v590_v43  ;;  %v280_v38 = vmul.f32 %v872_v2, %v241_v32  ;;  %v318_v43 = vadd.f32 %v881_v6, %v279_v30  ;;  %v251_v30 = vld [vmem:[%s867_s24 + $0xe0] sm:$0xff] }
  0x94   : > { %v478_v47 = vpop.permute.xlu1 %477  ;;  %v475_v48 = vpop.permute.xlu0 %474  ;;  %v317_v44 = vadd.f32 %v881_v6, %v278_v31 }
  0x95   : > { %vm562_vm4 = vcmp.eq.s32.totalorder %v478_v47, 1  ;;  %vm561_vm5 = vcmp.eq.s32.totalorder %v475_v48, 1  ;;  %v282_v48 = vmul.f32 %v872_v2, %v243_v40  ;;  %v319_v50 = vadd.f32 %v881_v6, %v280_v38 }
  0x96   : > { %v594_v55 = vsel %vm562_vm4, %v338_v37, 0.0  ;;  %v593_v56 = vsel %vm561_vm5, %v337_v39, 0.0  ;;  %v347_v37 = vmax.f32 %v315_v26, 0.0  ;;  %v244_v39 = vld [vmem:[%s867_s24 + $0xa8] sm:$0xff]  ;;  %v350_v53 = vmax.f32 %v318_v43, 0.0 }
  0x97   : > { %626 = vst [vmem:[%s901_s5 + $0x28] sm:$0xff] %v594_v55  ;;  %625 = vst [vmem:[%s901_s5 + $0x20] sm:$0xff] %v593_v56  ;;  %v283_v47 = vmul.f32 %v872_v2, %v244_v39  ;;  %v349_v54 = vmax.f32 %v317_v44, 0.0  ;;  %v246_v55 = vld [vmem:[%s867_s24 + $0xb8] sm:$0xff]  ;;  %v245_v56 = vld [vmem:[%s867_s24 + $0xb0] sm:$0xff] }
  0x98   : > { %v484_v59 = vpop.permute.xlu1 %483  ;;  %v481_v60 = vpop.permute.xlu0 %480  ;;  %v285_v61 = vmul.f32 %v872_v2, %v246_v55  ;;  %v284_v62 = vmul.f32 %v872_v2, %v245_v56 }
  0x99   : > { %vm564_vm6 = vcmp.eq.s32.totalorder %v484_v59, 1  ;;  %vm563_vm7 = vcmp.eq.s32.totalorder %v481_v60, 1  ;;  %v322_v59 = vadd.f32 %v881_v6, %v283_v47  ;;  %v321_v60 = vadd.f32 %v881_v6, %v282_v48 }
  0x9a   : > { %v596_v3 = vsel %vm564_vm6, %v340_v49, 0.0  ;;  %v595_v4 = vsel %vm563_vm7, %v339_v51, 0.0  ;;  %v320_v49 = vadd.f32 %v881_v6, %v281_v36  ;;  %v324_v11 = vadd.f32 %v881_v6, %v285_v61 }
  0x9b   : > { %628 = vst [vmem:[%s901_s5 + $0x38] sm:$0xff] %v596_v3  ;;  %627 = vst [vmem:[%s901_s5 + $0x30] sm:$0xff] %v595_v4  ;;  %v351_v3 = vmax.f32 %v319_v50, 0.0  ;;  %v248_v4 = vld [vmem:[%s867_s24 + $0xc8] sm:$0xff]  ;;  %v323_v12 = vadd.f32 %v881_v6, %v284_v62  ;;  %v290_v36 = vmul.f32 %v872_v2, %v251_v30 }
  0x9c   : > { %v490_v9 = vpop.permute.xlu1 %489  ;;  %v487_v10 = vpop.permute.xlu0 %486  ;;  %v352_v0 = vmax.f32 %v320_v49, 0.0 }
  0x9d   : > { %vm566_vm8 = vcmp.eq.s32.totalorder %v490_v9, 1  ;;  %vm565_vm9 = vcmp.eq.s32.totalorder %v487_v10, 1  ;;  %v354_v9 = vmax.f32 %v322_v59, 0.0  ;;  %v353_v10 = vmax.f32 %v321_v60, 0.0 }
  0x9e   : > { %v598_v15 = vsel %vm566_vm8, %v342_v5, 0.0  ;;  %v597_v16 = vsel %vm565_vm9, %v341_v7, 0.0  ;;  %v247_v5 = vld [vmem:[%s867_s24 + $0xc0] sm:$0xff]  ;;  %v355_v24 = vmax.f32 %v323_v12, 0.0  ;;  %v329_v48 = vadd.f32 %v881_v6, %v290_v36 }
  0x9f   : > { %630 = vst [vmem:[%s901_s5 + $0x48] sm:$0xff] %v598_v15  ;;  %629 = vst [vmem:[%s901_s5 + $0x40] sm:$0xff] %v597_v16 }
  0xa0   : > { %v496_v21 = vpop.permute.xlu1 %495  ;;  %v493_v22 = vpop.permute.xlu0 %492  ;;  %v361_v56 = vmax.f32 %v329_v48, 0.0 }
  0xa1   : > { %vm568_vm10 = vcmp.eq.s32.totalorder %v496_v21, 1  ;;  %vm567_vm11 = vcmp.eq.s32.totalorder %v493_v22, 1  ;;  %v289_v21 = vmul.f32 %v872_v2, %v250_v13  ;;  %v288_v22 = vmul.f32 %v872_v2, %v249_v14 }
  0xa2   : > { %v600_v28 = vsel %vm568_vm10, %v344_v17, 0.0  ;;  %v599_v29 = vsel %vm567_vm11, %v343_v18, 0.0  ;;  %v287_v17 = vmul.f32 %v872_v2, %v248_v4  ;;  %v286_v18 = vmul.f32 %v872_v2, %v247_v5 }
  0xa3   : > { %632 = vst [vmem:[%s901_s5 + $0x58] sm:$0xff] %v600_v28  ;;  %631 = vst [vmem:[%s901_s5 + $0x50] sm:$0xff] %v599_v29  ;;  %v252_v29 = vld [vmem:[%s867_s24 + $0xe8] sm:$0xff] }
  0xa4   : > { %v502_v33 = vpop.permute.xlu1 %501  ;;  %v499_v34 = vpop.permute.xlu0 %498  ;;  %v326_v27 = vadd.f32 %v881_v6, %v287_v17  ;;  %v325_v28 = vadd.f32 %v881_v6, %v286_v18 }
  0xa5   : > { %vm570_vm12 = vcmp.eq.s32.totalorder %v502_v33, 1  ;;  %vm569_vm13 = vcmp.eq.s32.totalorder %v499_v34, 1  ;;  %v328_v33 = vadd.f32 %v881_v6, %v289_v21  ;;  %v327_v34 = vadd.f32 %v881_v6, %v288_v22 }
  0xa6   : > { %v602_v41 = vsel %vm570_vm12, %v346_v23, 0.0  ;;  %v601_v42 = vsel %vm569_vm13, %v345_v25, 0.0  ;;  %v356_v23 = vmax.f32 %v324_v11, 0.0  ;;  %v358_v39 = vmax.f32 %v326_v27, 0.0 }
  0xa7   : > { %634 = vst [vmem:[%s901_s5 + $0x68] sm:$0xff] %v602_v41  ;;  %633 = vst [vmem:[%s901_s5 + $0x60] sm:$0xff] %v601_v42  ;;  %v357_v40 = vmax.f32 %v325_v28, 0.0  ;;  %v254_v41 = vld [vmem:[%s867_s24 + $0xf8] sm:$0xff]  ;;  %v253_v42 = vld [vmem:[%s867_s24 + $0xf0] sm:$0xff] }
  0xa8   : > { %v508_v45 = vpop.permute.xlu1 %507  ;;  %v505_v46 = vpop.permute.xlu0 %504 }
  0xa9   : > { %vm572_vm14 = vcmp.eq.s32.totalorder %v508_v45, 1  ;;  %vm571_vm15 = vcmp.eq.s32.totalorder %v505_v46, 1  ;;  %v360_v45 = vmax.f32 %v328_v33, 0.0  ;;  %v359_v46 = vmax.f32 %v327_v34, 0.0 }
  0xaa   : > { %v604_v51 = vsel %vm572_vm14, %v348_v35, 0.0  ;;  %v603_v52 = vsel %vm571_vm15, %v347_v37, 0.0  ;;  %v291_v35 = vmul.f32 %v872_v2, %v252_v29 }
  0xab   : > { %636 = vst [vmem:[%s901_s5 + $0x78] sm:$0xff] %v604_v51  ;;  %635 = vst [vmem:[%s901_s5 + $0x70] sm:$0xff] %v603_v52  ;;  %v293_v51 = vmul.f32 %v872_v2, %v254_v41  ;;  %v292_v52 = vmul.f32 %v872_v2, %v253_v42 }
  0xac   : > { %v514_v57 = vpop.permute.xlu1 %513  ;;  %v511_v58 = vpop.permute.xlu0 %510  ;;  %v330_v47 = vadd.f32 %v881_v6, %v291_v35 }
  0xad   : > { %vm574_vm0 = vcmp.eq.s32.totalorder %v514_v57, 1  ;;  %vm573_vm1 = vcmp.eq.s32.totalorder %v511_v58, 1  ;;  %v332_v59 = vadd.f32 %v881_v6, %v293_v51  ;;  %v331_v60 = vadd.f32 %v881_v6, %v292_v52 }
  0xae   : > { %v606_v63 = vsel %vm574_vm0, %v350_v53, 0.0  ;;  %v605_v1 = vsel %vm573_vm1, %v349_v54, 0.0  ;;  %v362_v55 = vmax.f32 %v330_v47, 0.0 }
  0xaf   : > { %638 = vst [vmem:[%s901_s5 + $0x88] sm:$0xff] %v606_v63  ;;  %637 = vst [vmem:[%s901_s5 + $0x80] sm:$0xff] %v605_v1  ;;  %v364_v1 = vmax.f32 %v332_v59, 0.0 }
  0xb0   : > { %v520_v7 = vpop.permute.xlu1 %519  ;;  %v517_v8 = vpop.permute.xlu0 %516 }
  0xb1   : > { %vm576_vm2 = vcmp.eq.s32.totalorder %v520_v7, 1  ;;  %vm575_vm3 = vcmp.eq.s32.totalorder %v517_v8, 1 }
  0xb2   : > { %v608_v15 = vsel %vm576_vm2, %v352_v0, 0.0  ;;  %v607_v16 = vsel %vm575_vm3, %v351_v3, 0.0  ;;  %v363_v0 = vmax.f32 %v331_v60, 0.0 }
  0xb3   : > { %640 = vst [vmem:[%s901_s5 + $0x98] sm:$0xff] %v608_v15  ;;  %639 = vst [vmem:[%s901_s5 + $0x90] sm:$0xff] %v607_v16 }
  0xb4   : > { %v526_v19 = vpop.permute.xlu1 %525  ;;  %v523_v20 = vpop.permute.xlu0 %522 }
  0xb5   : > { %vm578_vm4 = vcmp.eq.s32.totalorder %v526_v19, 1  ;;  %vm577_vm5 = vcmp.eq.s32.totalorder %v523_v20, 1 }
  0xb6   : > { %v610_v25 = vsel %vm578_vm4, %v354_v9, 0.0  ;;  %v609_v26 = vsel %vm577_vm5, %v353_v10, 0.0 }
  0xb7   : > { %642 = vst [vmem:[%s901_s5 + $0xa8] sm:$0xff] %v610_v25  ;;  %641 = vst [vmem:[%s901_s5 + $0xa0] sm:$0xff] %v609_v26 }
  0xb8   : > { %v532_v31 = vpop.permute.xlu1 %531  ;;  %v529_v32 = vpop.permute.xlu0 %528 }
  0xb9   : > { %vm580_vm6 = vcmp.eq.s32.totalorder %v532_v31, 1  ;;  %vm579_vm7 = vcmp.eq.s32.totalorder %v529_v32, 1 }
  0xba   : > { %v612_v37 = vsel %vm580_vm6, %v356_v23, 0.0  ;;  %v611_v38 = vsel %vm579_vm7, %v355_v24, 0.0 }
  0xbb   : > { %644 = vst [vmem:[%s901_s5 + $0xb8] sm:$0xff] %v612_v37  ;;  %643 = vst [vmem:[%s901_s5 + $0xb0] sm:$0xff] %v611_v38 }
  0xbc   : > { %v538_v43 = vpop.permute.xlu1 %537  ;;  %v535_v44 = vpop.permute.xlu0 %534 }
  0xbd   : > { %vm582_vm8 = vcmp.eq.s32.totalorder %v538_v43, 1  ;;  %vm581_vm9 = vcmp.eq.s32.totalorder %v535_v44, 1 }
  0xbe   : > { %v614_v49 = vsel %vm582_vm8, %v358_v39, 0.0  ;;  %v613_v50 = vsel %vm581_vm9, %v357_v40, 0.0 }
  0xbf   : > { %646 = vst [vmem:[%s901_s5 + $0xc8] sm:$0xff] %v614_v49  ;;  %645 = vst [vmem:[%s901_s5 + $0xc0] sm:$0xff] %v613_v50 }
  0xc0   : > { %v544_v53 = vpop.permute.xlu1 %543  ;;  %v541_v54 = vpop.permute.xlu0 %540 }
  0xc1   : > { %vm584_vm10 = vcmp.eq.s32.totalorder %v544_v53, 1  ;;  %vm583_vm11 = vcmp.eq.s32.totalorder %v541_v54, 1 }
  0xc2   : > { %v616_v57 = vsel %vm584_vm10, %v360_v45, 0.0  ;;  %v615_v58 = vsel %vm583_vm11, %v359_v46, 0.0 }
  0xc3   : > { %648 = vst [vmem:[%s901_s5 + $0xd8] sm:$0xff] %v616_v57  ;;  %647 = vst [vmem:[%s901_s5 + $0xd0] sm:$0xff] %v615_v58 }
  0xc4   : > { %v550_v61 = vpop.permute.xlu1 %549  ;;  %v547_v2 = vpop.permute.xlu0 %546 }
  0xc5   : > { %vm586_vm12 = vcmp.eq.s32.totalorder %v550_v61, 1  ;;  %vm585_vm13 = vcmp.eq.s32.totalorder %v547_v2, 1 }
  0xc6   : > { %v618_v62 = vsel %vm586_vm12, %v362_v55, 0.0  ;;  %v617_v63 = vsel %vm585_vm13, %v361_v56, 0.0 }
  0xc7   : > { %650 = vst [vmem:[%s901_s5 + $0xe8] sm:$0xff] %v618_v62  ;;  %649 = vst [vmem:[%s901_s5 + $0xe0] sm:$0xff] %v617_v63 }
  0xc8   : > { %v556_v3 = vpop.permute.xlu1 %555  ;;  %v553_v4 = vpop.permute.xlu0 %552 }
  0xc9   : > { %vm588_vm14 = vcmp.eq.s32.totalorder %v556_v3, 1  ;;  %vm587_vm15 = vcmp.eq.s32.totalorder %v553_v4, 1 }
  0xca   : > { %v620_v5 = vsel %vm588_vm14, %v364_v1, 0.0  ;;  %v619_v6 = vsel %vm587_vm15, %v363_v0, 0.0 }
  0xcb   : > { %652 = vst [vmem:[%s901_s5 + $0xf8] sm:$0xff] %v620_v5  ;;  %651 = vst [vmem:[%s901_s5 + $0xf0] sm:$0xff] %v619_v6 }
  0xcc PF: > { %s14_s15 = sadd.s32 1, %s753_s15  }
  0xcd   : > { %p11_p4 = scmp.ge.s32.totalorder %s14_s15, 8  }
  0xcf   :  { %13 = sbr.rel (!%p11_p4) target bundleno = 1 (0x1), region = 69 }

// kernel: bridge_forward.4
= control target key start
LH: loop header
LB: loop body
LE: loop exit
PB: predicated region body
PF: predicated region fallthrough
CT: control target
= control target key end

     0   :  { %s5368_s21 = smov 0   ;;  %s5370_s22 = smov 0   ;;  %s7242_s0 = inlined_call_operand.vmem [shape: bf16[1536,128], index: 0, kind: input, shape index: {}]   ;;  %s7243_s1 = inlined_call_operand.vmem [shape: bf16[9,128,128], index: 1, kind: input, shape index: {}]   ;;  %s7244_s2 = inlined_call_operand.vmem [shape: f32[1,128], index: 2, kind: input, shape index: {}]   ;;  %s7245_s3 = inlined_call_operand.vmem [shape: f32[1536,1], index: 3, kind: input, shape index: {}]   ;;  %s7246_s4 = inlined_call_operand.vmem [shape: f32[1536,128], index: 4, kind: output, shape index: {0}]   ;;  %s7247_s5 = inlined_call_operand.vmem [shape: f32[32,128], index: 5, kind: output, shape index: {1}]   ;;  %s7248_s6 = inlined_call_operand.vmem [shape: f32[32,128], index: 6, kind: output, shape index: {2}]  }
   0x1   :  { %7291 = sst [smem:[#allocation52_spill]] %s7245_s3  ;;  %s5372_s23 = smov 0  }
   0x2   :  { %s5374_s24 = smov 0   ;;  %s5376_s25 = smov 0  }
   0x3 LB: > { %s26_s26 = sadd.s32 1, %s5322_s23  ;;  %s29_s27 = sadd.s32 1, %s5326_s24  ;;  %s5330_s25 = sphi %s5376_s25, %s17_s25   ;;  %s5326_s24 = sphi %s5374_s24, %s7440_s24   ;;  %s5322_s23 = sphi %s5372_s23, %s7439_s23   ;;  %s5318_s22 = sphi %s5370_s22, %s7438_s22   ;;  %s5314_s21 = sphi %s5368_s21, %s7437_s21  }
   0x4   : > { %p27_p0 = scmp.ge.s32.totalorder %s26_s26, 2  ;;  %p4196_p1 = scmp.ge.s32.totalorder %s5330_s25, 1 }
   0x5   : > { %p232_p2 = scmp.lt.s32.totalorder %s5330_s25, 5 }
   0x6   : > { %s7442_s26 = smov (%p27_p0, %s26_s26), 0  ;;  %s7444_s27 = smov (!%p27_p0, %s29_s27), %s5326_s24 }
   0x7   : > { %p233_p3 = pnand %p4196_p1, %p232_p2  ;;  %p31_p4 = scmp.ge.s32.totalorder %s7444_s27, 2 }
   0x9   : > { %s7446_s27 = smov (%p31_p4, %s7444_s27), 0  ;;  %236 = sbr.rel (%p233_p3) target bundleno = 620 (0x26c), region = 32 }
   0xe   : > { %s4197_s28 = sshll.u32 %s5318_s22, 1  ;;  %s7292_s3 = sld [smem:[#allocation52_spill]] }
   0xf   : > { %s5401_s29 = sadd.s32 %s5314_s21, %s4197_s28  ;;  %p4208_p7 = scmp.ne.s32.totalorder %s5314_s21, 0 }
  0x10   : > { %s4465_s30 = sshll.u32 %s5401_s29, 5  ;;  %p304_p5 = scmp.lt.s32.totalorder %s5401_s29, 3 }
  0x11   : > { %s4466_s7 = sadd.s32 32, %s4465_s30  ;;  %s4209_s30 = sshll.u32 (!%p4208_p7), %s5401_s29, 8 }
  0x12   : > { %p282_p6 = scmp.lt.s32.totalorder %s4466_s7, 191 }
  0x13   : > { %s305_s8 = scalar_select %p304_p5, %s5401_s29, 3 }
  0x14   : > { %s7448_s7 = smov (!%p282_p6, %s4466_s7), 191  ;;  %324 = sbr.rel (%p4208_p7) target bundleno = 40 (0x28), region = 36 }
  0x15   : > { %s4204_s9 = sshll.u32 %s305_s8, 3  ;;  %s4199_s10 = sshll.u32 %s7448_s7, 3 }
  0x16   : > { %s5409_s13 = scalar_lea.vmem %s7247_s5, %s4204_s9  ;;  %s5414_s16 = scalar_lea.vmem %s7292_s3, %s4199_s10 }
  0x17   : > { %s5419_s19 = scalar_lea.vmem %s7246_s4, %s4199_s10  ;;  %s5424_s28 = scalar_lea.vmem %s7248_s6, %s4204_s9 }
  0x18   : > { %s326_s7 = sadd.s32 (!%p4208_p7), 224, %s4209_s30 }
  0x19   : > { %s327_s8 = sshra.s32 %s326_s7, 3 }
  0x1a   : > { %s4210_s11 = sshll.u32 %s327_s8, 2 }
  0x1b   : > { %s5431_s15 = scalar_lea.vmem %s7242_s0, %s4210_s11 }
  0x1c   : > { %v364_v0 = vld [vmem:[%s5431_s15] sm:$0xff]  ;;  %v366_v1 = vld [vmem:[%s5431_s15 + $0x8] sm:$0xff]  ;;  %v368_v2 = vld [vmem:[%s5431_s15 + $0x10] sm:$0xff] }
  0x1d   : > { %365 = vst [vmem:[#allocation2] sm:$0xff] %v364_v0  ;;  %367 = vst [vmem:[#allocation2 + $0x8] sm:$0xff] %v366_v1  ;;  %v370_v3 = vld [vmem:[%s5431_s15 + $0x18] sm:$0xff]  ;;  %v372_v4 = vld [vmem:[%s5431_s15 + $0x20] sm:$0xff] }
  0x1e   : > { %369 = vst [vmem:[#allocation2 + $0x10] sm:$0xff] %v368_v2  ;;  %v374_v5 = vld [vmem:[%s5431_s15 + $0x28] sm:$0xff]  ;;  %371 = vst [vmem:[#allocation2 + $0x18] sm:$0xff] %v370_v3  ;;  %v376_v6 = vld [vmem:[%s5431_s15 + $0x30] sm:$0xff] }
  0x1f   : > { %373 = vst [vmem:[#allocation2 + $0x20] sm:$0xff] %v372_v4  ;;  %375 = vst [vmem:[#allocation2 + $0x28] sm:$0xff] %v374_v5  ;;  %v378_v7 = vld [vmem:[%s5431_s15 + $0x38] sm:$0xff]  ;;  %v380_v8 = vld [vmem:[%s5431_s15 + $0x40] sm:$0xff] }
  0x20   : > { %377 = vst [vmem:[#allocation2 + $0x30] sm:$0xff] %v376_v6  ;;  %379 = vst [vmem:[#allocation2 + $0x38] sm:$0xff] %v378_v7  ;;  %v382_v9 = vld [vmem:[%s5431_s15 + $0x48] sm:$0xff]  ;;  %v384_v10 = vld [vmem:[%s5431_s15 + $0x50] sm:$0xff] }
  0x21   : > { %381 = vst [vmem:[#allocation2 + $0x40] sm:$0xff] %v380_v8  ;;  %v386_v11 = vld [vmem:[%s5431_s15 + $0x58] sm:$0xff]  ;;  %383 = vst [vmem:[#allocation2 + $0x48] sm:$0xff] %v382_v9  ;;  %v388_v12 = vld [vmem:[%s5431_s15 + $0x60] sm:$0xff] }
  0x22   : > { %385 = vst [vmem:[#allocation2 + $0x50] sm:$0xff] %v384_v10  ;;  %387 = vst [vmem:[#allocation2 + $0x58] sm:$0xff] %v386_v11  ;;  %v390_v13 = vld [vmem:[%s5431_s15 + $0x68] sm:$0xff]  ;;  %v392_v14 = vld [vmem:[%s5431_s15 + $0x70] sm:$0xff] }
  0x23   : > { %389 = vst [vmem:[#allocation2 + $0x60] sm:$0xff] %v388_v12  ;;  %391 = vst [vmem:[#allocation2 + $0x68] sm:$0xff] %v390_v13  ;;  %v394_v15 = vld [vmem:[%s5431_s15 + $0x78] sm:$0xff]  ;;  %v396_v16 = vld [vmem:[%s5431_s15 + $0x80] sm:$0xff] }
  0x24   : > { %393 = vst [vmem:[#allocation2 + $0x70] sm:$0xff] %v392_v14  ;;  %v398_v17 = vld [vmem:[%s5431_s15 + $0x88] sm:$0xff]  ;;  %395 = vst [vmem:[#allocation2 + $0x78] sm:$0xff] %v394_v15  ;;  %v400_v18 = vld [vmem:[%s5431_s15 + $0x90] sm:$0xff] }
  0x25   : > { %397 = vst [vmem:[#allocation2 + $0x80] sm:$0xff] %v396_v16  ;;  %399 = vst [vmem:[#allocation2 + $0x88] sm:$0xff] %v398_v17  ;;  %v402_v19 = vld [vmem:[%s5431_s15 + $0x98] sm:$0xff] }
  0x26   : > { %401 = vst [vmem:[#allocation2 + $0x90] sm:$0xff] %v400_v18  ;;  %403 = vst [vmem:[#allocation2 + $0x98] sm:$0xff] %v402_v19 }
  0x27   : > { %411 = vsyncadd [#allocation3], 2560 }
  0x28 PF: > { %s412_s9 = sadd.s32 1, %s5314_s21 }
  0x29   : > { %p4211_p8 = scmp.ge.s32.totalorder %s412_s9, 2 }
  0x2a   : > { %p418_p9 = scmp.lt.s32.totalorder (!%p4211_p8), %s412_s9, 0  ;;  %s419_s10 = ssub.s32 (!%p4211_p8), 0, %s412_s9 }
  0x2b   : > { %416 = sbr.rel (%p4211_p8) target bundleno = 66 (0x42), region = 74  ;;  %s4212_s17 = smin.u32 (!%p4211_p8), %s419_s10, %s412_s9 }
  0x2c   : > { %s4469_s18 = sshll.u32 (!%p4211_p8), %s5401_s29, 8  ;;  %s421_s20 = sand.u32 (!%p4211_p8), 1, %s4212_s17  }
  0x2d   : > { %s4470_s22 = sadd.s32 (!%p4211_p8), 256, %s4469_s18  ;;  %s422_s30 = ssub.s32 (!%p4211_p8), 0, %s421_s20 }
  0x2e   : > { %s431_s7 = sadd.s32 (!%p4211_p8), 224, %s4470_s22 }
  0x2f   : > { %s432_s8 = sshra.s32 (!%p4211_p8), %s431_s7, 3 }
  0x30   : > { %s7450_s30 = smov (!%p418_p9, %s422_s30), %s421_s20  ;;  %s4216_s12 = sshll.u32 %s432_s8, 2 }
  0x31   : > { %p4214_p10 = scmp.lt.s32.totalorder %s7450_s30, 0  ;;  %s428_s11 = sadd.s32 2, %s7450_s30 }
  0x32   : > { %s5460_s3 = scalar_lea.vmem %s7242_s0, %s4216_s12 }
  0x33   : > { %s7452_s11 = smov (!%p4214_p10, %s428_s11), %s7450_s30  ;;  %v473_v20 = vld [vmem:[%s5460_s3] sm:$0xff]  ;;  %v475_v21 = vld [vmem:[%s5460_s3 + $0x8] sm:$0xff]  ;;  %v477_v22 = vld [vmem:[%s5460_s3 + $0x10] sm:$0xff] }
  0x34   : > { %s4471_s29 = smul.u32 160, %s7452_s11  ;;  %v479_v23 = vld [vmem:[%s5460_s3 + $0x18] sm:$0xff]  ;;  %v481_v24 = vld [vmem:[%s5460_s3 + $0x20] sm:$0xff]  ;;  %v483_v25 = vld [vmem:[%s5460_s3 + $0x28] sm:$0xff]  ;;  %s439_s10 = scalar_lea.sflag [#allocation3], %s7452_s11 }
  0x35   : > { %v485_v26 = vld [vmem:[%s5460_s3 + $0x30] sm:$0xff]  ;;  %v487_v27 = vld [vmem:[%s5460_s3 + $0x38] sm:$0xff]  ;;  %v489_v28 = vld [vmem:[%s5460_s3 + $0x40] sm:$0xff] }
  0x36   : > { %s5472_s9 = scalar_lea.vmem [#allocation2], %s4471_s29  ;;  %v491_v29 = vld [vmem:[%s5460_s3 + $0x48] sm:$0xff]  ;;  %v493_v30 = vld [vmem:[%s5460_s3 + $0x50] sm:$0xff]  ;;  %v495_v31 = vld [vmem:[%s5460_s3 + $0x58] sm:$0xff] }
  0x37   : > { %474 = vst [vmem:[%s5472_s9] sm:$0xff] %v473_v20  ;;  %476 = vst [vmem:[%s5472_s9 + $0x8] sm:$0xff] %v475_v21  ;;  %v497_v32 = vld [vmem:[%s5460_s3 + $0x60] sm:$0xff]  ;;  %v499_v33 = vld [vmem:[%s5460_s3 + $0x68] sm:$0xff] }
  0x38   : > { %478 = vst [vmem:[%s5472_s9 + $0x10] sm:$0xff] %v477_v22  ;;  %480 = vst [vmem:[%s5472_s9 + $0x18] sm:$0xff] %v479_v23  ;;  %v501_v34 = vld [vmem:[%s5460_s3 + $0x70] sm:$0xff]  ;;  %v503_v35 = vld [vmem:[%s5460_s3 + $0x78] sm:$0xff] }
  0x39   : > { %482 = vst [vmem:[%s5472_s9 + $0x20] sm:$0xff] %v481_v24  ;;  %484 = vst [vmem:[%s5472_s9 + $0x28] sm:$0xff] %v483_v25  ;;  %v505_v36 = vld [vmem:[%s5460_s3 + $0x80] sm:$0xff]  ;;  %v507_v37 = vld [vmem:[%s5460_s3 + $0x88] sm:$0xff] }
  0x3a   : > { %486 = vst [vmem:[%s5472_s9 + $0x30] sm:$0xff] %v485_v26  ;;  %488 = vst [vmem:[%s5472_s9 + $0x38] sm:$0xff] %v487_v27  ;;  %v509_v38 = vld [vmem:[%s5460_s3 + $0x90] sm:$0xff]  ;;  %v511_v39 = vld [vmem:[%s5460_s3 + $0x98] sm:$0xff] }
  0x3b   : > { %490 = vst [vmem:[%s5472_s9 + $0x40] sm:$0xff] %v489_v28  ;;  %492 = vst [vmem:[%s5472_s9 + $0x48] sm:$0xff] %v491_v29 }
  0x3c   : > { %494 = vst [vmem:[%s5472_s9 + $0x50] sm:$0xff] %v493_v30  ;;  %496 = vst [vmem:[%s5472_s9 + $0x58] sm:$0xff] %v495_v31 }
  0x3d   : > { %498 = vst [vmem:[%s5472_s9 + $0x60] sm:$0xff] %v497_v32  ;;  %500 = vst [vmem:[%s5472_s9 + $0x68] sm:$0xff] %v499_v33 }
  0x3e   : > { %502 = vst [vmem:[%s5472_s9 + $0x70] sm:$0xff] %v501_v34  ;;  %504 = vst [vmem:[%s5472_s9 + $0x78] sm:$0xff] %v503_v35 }
  0x3f   : > { %506 = vst [vmem:[%s5472_s9 + $0x80] sm:$0xff] %v505_v36  ;;  %508 = vst [vmem:[%s5472_s9 + $0x88] sm:$0xff] %v507_v37 }
  0x40   : > { %510 = vst [vmem:[%s5472_s9 + $0x90] sm:$0xff] %v509_v38  ;;  %512 = vst [vmem:[%s5472_s9 + $0x98] sm:$0xff] %v511_v39 }
  0x41   : > { %520 = vsyncadd %s439_s10, 2560 }
  0x42 PF: > { %p521_p11 = scmp.lt.s32.totalorder %s5314_s21, 0  ;;  %s522_s17 = ssub.s32 0, %s5314_s21 }
  0x43   : > { %s4218_s18 = smin.u32 %s5314_s21, %s522_s17 }
  0x44   : > { %s524_s20 = sand.u32 1, %s4218_s18  }
  0x45   : > { %s525_s22 = ssub.s32 0, %s524_s20 }
  0x46   : > { %s7454_s22 = smov (!%p521_p11, %s525_s22), %s524_s20 }
  0x47   : > { %p4220_p12 = scmp.lt.s32.totalorder %s7454_s22, 0  ;;  %s531_s30 = sadd.s32 2, %s7454_s22 }
  0x49   : > { %s7456_s30 = smov (!%p4220_p12, %s531_s30), %s7454_s22 }
  0x4a   : > { %s4472_s7 = smul.u32 160, %s7456_s30  ;;  %s538_s3 = scalar_lea.sflag [#allocation3], %s7456_s30 }
  0x4c   : > { %s5509_s8 = scalar_lea.vmem [#allocation2], %s4472_s7 }
  0x4d   : > { %5310 = dma.done.wait %s538_s3, 2560 }
  0x4e   : > { %5311 = vsyncadd %s538_s3, 4294964736  ;;  %v5180_v40 = vld [vmem:[%s7243_s1 + $0x78] sm:$0xff]   ;;  %v5181_v41 = vld [vmem:[%s7243_s1 + $0x70] sm:$0xff]   ;;  %vm697_vm0 = vcmask 1044480   ;;  %vm956_vm1 = vsmask.f32 5376 }
  0x4f   : > { %4689 = vmatprep.subr.bf16.mxu0 %v5180_v40  ;;  %5121 = vmatprep.subr.bf16.mxu1 %v5180_v40  ;;  %v5182_v42 = vld [vmem:[%s7243_s1 + $0x68] sm:$0xff]   ;;  %v5183_v43 = vld [vmem:[%s7243_s1 + $0x60] sm:$0xff]   ;;  %v546_v45 = vld [vmem:[%s5509_s8 + $0x10] sm:$0xf]  ;;  %vm1351_vm2 = vsmask.f32 4352 }
  0x50   : > { %4690 = vmatpush3.bf16.msra.mxu0 %v5180_v40  ;;  %5129 = vmatpush3.bf16.msra.mxu1 %v5180_v40  ;;  %v545_v44 = vld [vmem:[%s5509_s8 + $0xc] sm:$0xf]  ;;  %v5526_v46 = vld [vmem:[%s5509_s8 + $0x4] sm:$0xff]   ;;  %v562_v51 = vld [vmem:[%s5509_s8 + $0x50] sm:$0xf]  ;;  %vm2956_vm4 = vcmask 1046528  }
  0x51   : > { %4691 = vmatprep.subr.bf16.mxu0 %v5181_v41  ;;  %5122 = vmatprep.subr.bf16.mxu1 %v5181_v41  ;;  %v5529_v47 = vld [vmem:[%s5509_s8 + $0x44] sm:$0xf]  ;;  %v5531_v48 = vcombine.low %v545_v44, %v546_v45  ;;  %v560_v49 = vld [vmem:[%s5509_s8 + $0x48] sm:$0xf]  ;;  %v561_v50 = vld [vmem:[%s5509_s8 + $0x4c] sm:$0xf] }
  0x52   : > { %v698_v52 = vrot.slane %v5526_v46, 3  ;;  %v5538_v53 = vcombine.low %v5529_v47, %v560_v49  ;;  %v5540_v54 = vcombine.low %v561_v50, %v562_v51  ;;  %v547_v55 = vld [vmem:[%s5509_s8 + $0x14] sm:$0xf]  ;;  %v5184_v56 = vld [vmem:[%s7243_s1 + $0x58] sm:$0xff]   ;;  %v550_v3 = vld [vmem:[%s5509_s8 + $0x20] sm:$0xf]  ;;  %v5596_v24 = vcombine.low %v560_v49, %v561_v50 }
  0x53   : > { %v699_v57 = vrot.slane %v5531_v48, 3  ;;  %v5547_v58 = vcombine.low %v546_v45, %v547_v55  ;;  %v5185_v61 = vld [vmem:[%s7243_s1 + $0x50] sm:$0xff]   ;;  %v548_v0 = vld [vmem:[%s5509_s8 + $0x18] sm:$0xf]  ;;  %v549_v1 = vld [vmem:[%s5509_s8 + $0x1c] sm:$0xf] }
  0x54   : > { %4692 = vmatpush3.bf16.msra.mxu0 %v5181_v41  ;;  %5130 = vmatpush3.bf16.msra.mxu1 %v5181_v41  ;;  %v7250_v59 = vrot.slane %v5538_v53, 3  ;;  %v715_v60 = vrot.slane %v5540_v54, 3  ;;  %v5562_v2 = vcombine.low %v548_v0, %v549_v1  ;;  %v551_v4 = vld [vmem:[%s5509_s8 + $0x24] sm:$0xf]  ;;  %v5186_v5 = vld [vmem:[%s7243_s1 + $0x48] sm:$0xff]   ;;  %v5571_v7 = vcombine.low %v547_v55, %v548_v0  ;;  %7293 = vst [vmem:[#allocation7_spill] sm:$0xff] %v5596_v24 }
  0x55   : > { %4693 = vmatprep.subr.bf16.mxu0 %v5182_v42  ;;  %5123 = vmatprep.subr.bf16.mxu1 %v5182_v42  ;;  %v700_v62 = vsel %vm697_vm0, %v698_v52, %v699_v57  ;;  %v5569_v6 = vcombine.low %v550_v3, %v551_v4  ;;  %v563_v8 = vld [vmem:[%s5509_s8 + $0x54] sm:$0xf]  ;;  %v564_v9 = vld [vmem:[%s5509_s8 + $0x58] sm:$0xf]  ;;  %v565_v10 = vld [vmem:[%s5509_s8 + $0x5c] sm:$0xf]  ;;  %v5589_v20 = vcombine.low %v549_v1, %v550_v3 }
  0x56   : > { %v716_v63 = vsel %vm697_vm0, %v7250_v59, %v715_v60  ;;  %4705 = vmatprep.mubr.bf16.mxu0 %v700_v62  ;;  %v566_v11 = vld [vmem:[%s5509_s8 + $0x60] sm:$0xf]  ;;  %v5577_v12 = vcombine.low %v563_v8, %v564_v9  ;;  %v552_v13 = vld [vmem:[%s5509_s8 + $0x28] sm:$0xf]  ;;  %v553_v14 = vld [vmem:[%s5509_s8 + $0x2c] sm:$0xf]  ;;  %v5605_v28 = vcombine.low %v562_v51, %v563_v8  ;;  %v5641_v45 = vcombine.low %v564_v9, %v565_v10 }
  0x57   : > { %4721 = vmatprep.mubr.bf16.mxu1 %v716_v63  ;;  %v5187_v15 = vld [vmem:[%s7243_s1 + $0x40] sm:$0xff]   ;;  %v701_v16 = vrot.slane %v5571_v7, 3  ;;  %v554_v17 = vld [vmem:[%s5509_s8 + $0x30] sm:$0xf]  ;;  %v555_v18 = vld [vmem:[%s5509_s8 + $0x34] sm:$0xf]  ;;  %v5587_v19 = vcombine.low %v552_v13, %v553_v14  ;;  %v5591_v21 = vcombine.low %v565_v10, %v566_v11  ;;  %v5612_v32 = vcombine.low %v551_v4, %v552_v13 }
  0x58   : > { %4694 = vmatpush3.bf16.msra.mxu0 %v5182_v42  ;;  %5131 = vmatpush3.bf16.msra.mxu1 %v5182_v42  ;;  %v567_v22 = vld [vmem:[%s5509_s8 + $0x64] sm:$0xf]  ;;  %v5594_v23 = vcombine.low %v554_v17, %v555_v18  ;;  %v5599_v25 = vld [vmem:[%s5509_s8 + $0x68] sm:$0xf]  ;;  %v717_v26 = vrot.slane %v5577_v12, 3  ;;  %v5194_v27 = vld [vmem:[%s7243_s1 + $0x38] sm:$0xff]   ;;  %v5645_v51 = vcombine.low %v553_v14, %v554_v17 }
  0x59   : > { %4695 = vmatprep.subr.bf16.mxu0 %v5183_v43  ;;  %5124 = vmatprep.subr.bf16.mxu1 %v5183_v43  ;;  %7294 = vst [vmem:[#allocation8_spill] sm:$0xff] %v5605_v28  ;;  %v5195_v29 = vld [vmem:[%s7243_s1 + $0xb8] sm:$0xff]   ;;  %v703_v30 = vrot.slane %v5589_v20, 3  ;;  %v719_v31 = vrot.slane %v5591_v21, 3  ;;  %v5615_v33 = vcombine.low %v567_v22, %v5599_v25  ;;  %v702_v34 = vsel %vm697_vm0, %v699_v57, %v701_v16  ;;  %v558_v37 = vld [vmem:[%s5509_s8 + $0x40] sm:$0xf] }
  0x5a   : > { %v556_v35 = vld [vmem:[%s5509_s8 + $0x38] sm:$0xf]  ;;  %v557_v36 = vld [vmem:[%s5509_s8 + $0x3c] sm:$0xf]  ;;  %v718_v38 = vsel %vm697_vm0, %v715_v60, %v717_v26  ;;  %v5196_v39 = vld [vmem:[%s7243_s1 + $0x30] sm:$0xff]   ;;  %7295 = vst [vmem:[#allocation9_spill] sm:$0xff] %v5641_v45  ;;  %v5665_v62 = vcombine.low %v566_v11, %v567_v22 }
  0x5b   : > { %v5628_v40 = vld [vmem:[%s5509_s8 + $0x6c] sm:$0xf]  ;;  %v5631_v41 = vld [vmem:[%s5509_s8 + $0x70] sm:$0xf]  ;;  %v5633_v42 = vcombine.low %v556_v35, %v557_v36  ;;  %v705_v49 = vrot.slane %v5612_v32, 3  ;;  %v721_v50 = vrot.slane %v5615_v33, 3  ;;  %v720_v52 = vsel %vm697_vm0, %v717_v26, %v719_v31 }
  0x5c   : > { %4696 = vmatpush3.bf16.msra.mxu0 %v5183_v43  ;;  %5132 = vmatpush3.bf16.msra.mxu1 %v5183_v43  ;;  %v5636_v43 = vcombine.low %v558_v37, %v5529_v47  ;;  %v5197_v44 = vld [vmem:[%s7243_s1 + $0xb0] sm:$0xff]   ;;  %v704_v47 = vsel %vm697_vm0, %v701_v16, %v703_v30  ;;  %v5202_v55 = vld [vmem:[%s7243_s1 + $0x28] sm:$0xff]   ;;  %v5657_v57 = vcombine.low %v5628_v40, %v5631_v41  ;;  %v5668_v63 = vld [vmem:[%s5509_s8 + $0x7c] sm:$0xf]  ;;  %v707_v1 = vrot.slane %v5645_v51, 3 }
  0x5d   : > { %4697 = vmatprep.subr.bf16.mxu0 %v5184_v56  ;;  %5125 = vmatprep.subr.bf16.mxu1 %v5184_v56  ;;  %v5660_v60 = vld [vmem:[%s5509_s8 + $0x74] sm:$0xf]  ;;  %7296 = vst [vmem:[#allocation10_spill] sm:$0xff] %v5665_v62  ;;  %v5671_v0 = vld [vmem:[%s5509_s8 + $0x80] sm:$0xf]  ;;  %v5674_v3 = vcombine.low %v555_v18, %v556_v35  ;;  %v5681_v8 = vcombine.low %v557_v36, %v558_v37  ;;  %v958_v18 = vshrl.u32 %v5526_v46, 16 }
  0x5e   : > { %v723_v4 = vrot.slane %v5657_v57, 3  ;;  %v706_v9 = vsel %vm697_vm0, %v703_v30, %v705_v49  ;;  %v722_v10 = vsel %vm697_vm0, %v719_v31, %v721_v50  ;;  %v5204_v11 = vld [vmem:[%s7243_s1 + $0x20] sm:$0xff]   ;;  %v5690_v13 = vcombine.low %v5668_v63, %v5671_v0  ;;  %v5211_v35 = vld [vmem:[%s7243_s1 + $0x98] sm:$0xff]  }
  0x5f   : > { %v5693_v14 = vld [vmem:[%s5509_s8 + $0x84] sm:$0xf]  ;;  %v708_v16 = vsel %vm697_vm0, %v705_v49, %v707_v1  ;;  %v709_v17 = vrot.slane %v5674_v3, 3  ;;  %v961_v31 = vshll.u32 %v5526_v46, 16  ;;  %v966_v36 = vshrl.u32 %v5531_v48, 16  ;;  %v5212_v49 = vld [vmem:[%s7243_s1 + $0x10] sm:$0xff]  }
  0x60   : > { %4698 = vmatpush3.bf16.msra.mxu0 %v5184_v56  ;;  %5133 = vmatpush3.bf16.msra.mxu1 %v5184_v56  ;;  %v5203_v56 = vld [vmem:[%s7243_s1 + $0xa8] sm:$0xff]   ;;  %v724_v22 = vsel %vm697_vm0, %v721_v50, %v723_v4  ;;  %v7249_v30 = vrot.slane %v5690_v13, 3  ;;  %v969_v37 = vshll.u32 %v5531_v48, 16  ;;  %v975_v46 = vshrl.u32 %v5571_v7, 16 }
  0x61   : > { %4699 = vmatprep.subr.bf16.mxu0 %v5185_v61  ;;  %5126 = vmatprep.subr.bf16.mxu1 %v5185_v61  ;;  %v978_v48 = vshll.u32 %v5571_v7, 16  ;;  %v987_v7 = vshll.u32 %v5589_v20, 16  ;;  %v1032_v24 = vshll.u32 %v5538_v53, 16  ;;  %vm2270_vm3 = vsmask.f32 7424 }
  0x62   : > { %v1359_v59 = vrot.slane %v975_v46, 3  ;;  %vm3264_vm5 = vsmask.f32 6400 }
  0x64   : > { %4700 = vmatpush3.bf16.msra.mxu0 %v5185_v61  ;;  %5134 = vmatpush3.bf16.msra.mxu1 %v5185_v61  ;;  %v5663_v61 = vld [vmem:[%s5509_s8 + $0x78] sm:$0xf] }
  0x65   : > { %4701 = vmatprep.subr.bf16.mxu0 %v5186_v5  ;;  %5127 = vmatprep.subr.bf16.mxu1 %v5186_v5 }
  0x68   : > { %4702 = vmatpush3.bf16.msra.mxu0 %v5186_v5  ;;  %5135 = vmatpush3.bf16.msra.mxu1 %v5186_v5  ;;  %v5679_v5 = vcombine.low %v5660_v60, %v5663_v61 }
  0x69   : > { %4703 = vmatprep.subr.bf16.mxu0 %v5187_v15  ;;  %5128 = vmatprep.subr.bf16.mxu1 %v5187_v15 }
  0x6a   : > { %7297 = vst [vmem:[#allocation11_spill] sm:$0xff] %v5679_v5  ;;  %v725_v26 = vrot.slane %v5679_v5, 3 }
  0x6c   : > { %4704 = vmatpush3.bf16.msra.mxu0 %v5187_v15  ;;  %5136 = vmatpush3.bf16.msra.mxu1 %v5187_v15  ;;  %v5205_v15 = vld [vmem:[%s7243_s1 + $0xa0] sm:$0xff]  }
  0x6d   : > { %4737 = vmatprep.subr.bf16.mxu1 %v5194_v27  ;;  %4785 = vmatprep.subr.bf16.mxu0 %v5195_v29 }
  0x6f   : > { %4706 = vmatmul.mubr.bf16.vlgmr.msra.gmra.mxu0 %v702_v34  ;;  %4722 = vmatmul.mubr.bf16.vlgmr.msra.gmra.mxu1 %v718_v38  ;;  %v5210_v34 = vld [vmem:[%s7243_s1 + $0x18] sm:$0xff]   ;;  %v710_v38 = vsel %vm697_vm0, %v707_v1, %v709_v17  ;;  %v1352_v1 = vrot.slane %v958_v18, 3 }
  0x70   : > { %4738 = vmatpush3.bf16.msra.mxu1 %v5194_v27  ;;  %4786 = vmatpush3.bf16.msra.mxu0 %v5195_v29  ;;  %v711_v27 = vrot.slane %v5681_v8, 3  ;;  %v5706_v29 = vcombine.low %v5693_v14, %v5693_v14 }
  0x71   : > { %4739 = vmatprep.subr.bf16.mxu1 %v5196_v39  ;;  %4787 = vmatprep.subr.bf16.mxu0 %v5197_v44 }
  0x72   : > { %4709 = vmatprep.mubr.bf16.mxu0 %v704_v47  ;;  %4725 = vmatprep.mubr.bf16.mxu1 %v720_v52  ;;  %7298 = vst [vmem:[#allocation12_spill] sm:$0xff] %v5706_v29  ;;  %v712_v50 = vsel %vm697_vm0, %v709_v17, %v711_v27  ;;  %v729_v47 = vrot.slane %v5706_v29, 3  ;;  %v5213_v52 = vld [vmem:[%s7243_s1 + $0x90] sm:$0xff]   ;;  %v977_v17 = vrot.slane %v975_v46, 2  ;;  %v989_v29 = vrot.slane %v987_v7, 3 }
  0x74   : > { %4740 = vmatpush3.bf16.msra.mxu1 %v5196_v39  ;;  %4788 = vmatpush3.bf16.msra.mxu0 %v5197_v44  ;;  %v5719_v39 = vrot.slane %v958_v18, 2  ;;  %v726_v44 = vsel %vm697_vm0, %v723_v4, %v725_v26  ;;  %v984_v4 = vshrl.u32 %v5589_v20, 16  ;;  %v5217_v18 = vld [vmem:[%s7243_s1 + $0x8] sm:$0xff]   ;;  %v996_v20 = vshll.u32 %v5612_v32, 16 }
  0x75   : > { %4741 = vmatprep.subr.bf16.mxu1 %v5202_v55  ;;  %4789 = vmatprep.subr.bf16.mxu0 %v5203_v56 }
  0x76   : > { %v1363_v5 = vrot.slane %v984_v4, 3 }
  0x77   : > { %4710 = vmatmul.mubr.bf16.gmra.mxu0 %v706_v9  ;;  %4726 = vmatmul.mubr.bf16.gmra.mxu1 %v722_v10  ;;  %v968_v9 = vrot.slane %v966_v36, 2  ;;  %v971_v10 = vrot.slane %v969_v37, 3 }
  0x78   : > { %4742 = vmatpush3.bf16.msra.mxu1 %v5202_v55  ;;  %4790 = vmatpush3.bf16.msra.mxu0 %v5203_v56  ;;  %v728_v55 = vsel %vm697_vm0, %v725_v26, %v7249_v30  ;;  %v963_v56 = vrot.slane %v961_v31, 3  ;;  %v5218_v26 = vld [vmem:[%s7243_s1 + $0x88] sm:$0xff]   ;;  %v980_v30 = vrot.slane %v978_v48, 3 }
  0x79   : > { %4743 = vmatprep.subr.bf16.mxu1 %v5204_v11  ;;  %4791 = vmatprep.subr.bf16.mxu0 %v5205_v15  ;;  %v972_v46 = vor.u32 %v971_v10, %v968_v9 }
  0x7a   : > { %4713 = vmatprep.mubr.bf16.mxu0 %v708_v16  ;;  %4729 = vmatprep.mubr.bf16.mxu1 %v724_v22  ;;  %v1353_v16 = vrot.slane %v961_v31, 4  ;;  %v993_v22 = vshrl.u32 %v5612_v32, 16  ;;  %v1360_v31 = vrot.slane %v978_v48, 4  ;;  %v964_v62 = vor.u32 %v963_v56, %v5719_v39 }
  0x7b   : > { %v7300_v39 = vrot.slane %v5690_v13, 3  ;;  %v1038_v56 = vshrl.u32 %v5540_v54, 16 }
  0x7c   : > { %4744 = vmatpush3.bf16.msra.mxu1 %v5204_v11  ;;  %4792 = vmatpush3.bf16.msra.mxu0 %v5205_v15  ;;  %v1355_v11 = vrot.slane %v966_v36, 3  ;;  %v1356_v15 = vrot.slane %v969_v37, 4  ;;  %v7299_v36 = vrot.slane %v5538_v53, 3  ;;  %v1354_v45 = vor.u32 %v1353_v16, %v1352_v1 }
  0x7d   : > { %4745 = vmatprep.subr.bf16.mxu1 %v5210_v34  ;;  %4793 = vmatprep.subr.bf16.mxu0 %v5211_v35  ;;  %v1041_v1 = vshll.u32 %v5540_v54, 16  ;;  %v1040_v54 = vrot.slane %v1038_v56, 2 }
  0x7e   : > { %v714_v37 = vsel %vm697_vm0, %v711_v27, %v7299_v36  ;;  %v1357_v48 = vor.u32 %v1356_v15, %v1355_v11  ;;  %v5754_v27 = vrot.slane %v996_v20, 3  ;;  %v1002_v36 = vshrl.u32 %v5645_v51, 16 }
  0x7f   : > { %4714 = vmatmul.mubr.bf16.gmra.mxu0 %v710_v38  ;;  %4730 = vmatmul.mubr.bf16.gmra.mxu1 %v726_v44  ;;  %v986_v38 = vrot.slane %v984_v4, 2  ;;  %v1029_v44 = vshrl.u32 %v5538_v53, 16  ;;  %v5219_v4 = vld [vmem:[%s7243_s1] sm:$0xff]   ;;  %v1043_v16 = vrot.slane %v1041_v1, 3  ;;  %v1387_v15 = vrot.slane %v1038_v56, 3 }
  0x80   : > { %4746 = vmatpush3.bf16.msra.mxu1 %v5210_v34  ;;  %4794 = vmatpush3.bf16.msra.mxu0 %v5211_v35  ;;  %v1364_v34 = vrot.slane %v987_v7, 4  ;;  %v5750_v35 = vrot.slane %v993_v22, 2  ;;  %v5220_v53 = vld [vmem:[%s7243_s1 + $0x80] sm:$0xff]   ;;  %v1358_v10 = vsel %vm1351_vm2, %v1354_v45, %v1357_v48  ;;  %v1361_v7 = vor.u32 %v1360_v31, %v1359_v59  ;;  %v5222_v45 = vld [vmem:[%s7243_s1 + $0x138] sm:$0xff]  }
  0x81   : > { %4747 = vmatprep.subr.bf16.mxu1 %v5212_v49  ;;  %4795 = vmatprep.subr.bf16.mxu0 %v5213_v52  ;;  %v1031_v28 = vrot.slane %v1029_v44, 2  ;;  %v1383_v9 = vrot.slane %v1029_v44, 3  ;;  %v5772_v11 = vor.u32 %v989_v29, %v986_v38  ;;  %v5783_v59 = vor.u32 %v1043_v16, %v1040_v54 }
  0x82   : > { %4717 = vmatprep.mubr.bf16.mxu0 %v712_v50  ;;  %4733 = vmatprep.mubr.bf16.mxu1 %v728_v55  ;;  %v730_v50 = vsel %vm697_vm0, %v7300_v39, %v729_v47  ;;  %v981_v55 = vor.u32 %v980_v30, %v977_v17  ;;  %v1384_v47 = vrot.slane %v1032_v24, 4  ;;  %v973_v30 = vsel %vm956_vm1, %v964_v62, %v972_v46 }
  0x83   : > { %v1388_v17 = vrot.slane %v1041_v1, 4  ;;  %v1367_v62 = vrot.slane %v993_v22, 3  ;;  %v1011_v29 = vshrl.u32 %v5674_v3, 16  ;;  %v1365_v38 = vor.u32 %v1364_v34, %v1363_v5 }
  0x84   : > { %4748 = vmatpush3.bf16.msra.mxu1 %v5212_v49  ;;  %4796 = vmatpush3.bf16.msra.mxu0 %v5213_v52  ;;  %v1005_v49 = vshll.u32 %v5645_v51, 16  ;;  %v1034_v52 = vrot.slane %v1032_v24, 3  ;;  %v982_v51 = vsel %vm956_vm1, %v972_v46, %v981_v55  ;;  %v5221_v24 = vld [vmem:[%s7243_s1 + $0xf8] sm:$0xff]   ;;  %v1368_v22 = vrot.slane %v996_v20, 4 }
  0x85   : > { %4749 = vmatprep.subr.bf16.mxu1 %v5217_v18  ;;  %4797 = vmatprep.subr.bf16.mxu0 %v5218_v26  ;;  %v5789_v31 = vor.u32 %v1388_v17, %v1387_v15  ;;  %v5799_v46 = vsel %vm1351_vm2, %v1357_v48, %v1361_v7  ;;  %v1020_v39 = vshrl.u32 %v5681_v8, 16  ;;  %v991_v32 = vsel %vm956_vm1, %v981_v55, %v5772_v11  ;;  %v5223_v55 = vld [vmem:[%s7243_s1 + $0xf0] sm:$0xff]   ;;  %v5226_v15 = vld [vmem:[%s7243_s1 + $0x128] sm:$0xff]  }
  0x86   : > { %v1371_v5 = vrot.slane %v1002_v36, 3  ;;  %v1372_v20 = vrot.slane %v1005_v49, 4  ;;  %v1023_v34 = vshll.u32 %v5681_v8, 16  ;;  %v1013_v48 = vrot.slane %v1011_v29, 2  ;;  %v5224_v8 = vld [vmem:[%s7243_s1 + $0x130] sm:$0xff]  }
  0x87   : > { %4718 = vmatmul.mubr.bf16.gmra.mxu0 %v714_v37  ;;  %4734 = vmatmul.mubr.bf16.gmra.mxu1 %v730_v50  ;;  %v5781_v37 = vor.u32 %v1034_v52, %v1031_v28  ;;  %v1004_v28 = vrot.slane %v1002_v36, 2  ;;  %v1375_v1 = vrot.slane %v1011_v29, 3  ;;  %v1047_v36 = vshrl.u32 %v5577_v12, 16 }
  0x88   : > { %4750 = vmatpush3.bf16.msra.mxu1 %v5217_v18  ;;  %4798 = vmatpush3.bf16.msra.mxu0 %v5218_v26  ;;  %v1014_v18 = vshll.u32 %v5674_v3, 16  ;;  %v5787_v26 = vor.u32 %v1384_v47, %v1383_v9  ;;  %v1007_v3 = vrot.slane %v1005_v49, 3  ;;  %v5811_v9 = vsel %vm1351_vm2, %v1361_v7, %v1365_v38 }
  0x89   : > { %4751 = vmatprep.subr.bf16.mxu1 %v5219_v4  ;;  %4799 = vmatprep.subr.bf16.mxu0 %v5220_v53  ;;  %v5796_v44 = vsel %vm956_vm1, %v5781_v37, %v5783_v59  ;;  %v1369_v49 = vor.u32 %v1368_v22, %v1367_v62  ;;  %v1373_v54 = vor.u32 %v1372_v20, %v1371_v5  ;;  %v1056_v29 = vshrl.u32 %v5591_v21, 16  ;;  %v5228_v5 = vld [vmem:[%s7243_s1 + $0x120] sm:$0xff]  }
  0x8a   : > { %4753 = vmatprep.mubr.bf16.mxu1 %v973_v30  ;;  %4801 = vmatprep.mubr.bf16.mxu0 %v1358_v10  ;;  %v5805_v50 = vsel %vm1351_vm2, %v5787_v26, %v5789_v31  ;;  %v1016_v56 = vrot.slane %v1014_v18, 3  ;;  %v1376_v52 = vrot.slane %v1014_v18, 4  ;;  %v1008_v47 = vor.u32 %v1007_v3, %v1004_v28 }
  0x8b   : > { %v1022_v30 = vrot.slane %v1020_v39, 2  ;;  %v1379_v10 = vrot.slane %v1020_v39, 3  ;;  %v1059_v18 = vshll.u32 %v5591_v21, 16  ;;  %v1092_v3 = vshrl.u32 %v5690_v13, 16  ;;  %v5227_v21 = vld [vmem:[%s7243_s1 + $0xe0] sm:$0xff]  }
  0x8c   : > { %4752 = vmatpush3.bf16.msra.mxu1 %v5219_v4  ;;  %4800 = vmatpush3.bf16.msra.mxu0 %v5220_v53  ;;  %v999_v4 = vor.u32 %v5754_v27, %v5750_v35  ;;  %v1050_v53 = vshll.u32 %v5577_v12, 16  ;;  %v1025_v35 = vrot.slane %v1023_v34, 3  ;;  %v1380_v27 = vrot.slane %v1023_v34, 4  ;;  %v5225_v12 = vld [vmem:[%s7243_s1 + $0xe8] sm:$0xff]  }
  0x8d   : > { %4833 = vmatprep.subr.bf16.mxu1 %v5221_v24  ;;  %4881 = vmatprep.subr.bf16.mxu0 %v5222_v45  ;;  %v1017_v16 = vor.u32 %v1016_v56, %v1013_v48  ;;  %v1377_v7 = vor.u32 %v1376_v52, %v1375_v1  ;;  %v5842_v39 = vsel %vm1351_vm2, %v1369_v49, %v1373_v54  ;;  %v1391_v34 = vrot.slane %v1047_v36, 3 }
  0x8e   : > { %v1000_v17 = vsel %vm956_vm1, %v5772_v11, %v999_v4  ;;  %v1009_v62 = vsel %vm956_vm1, %v999_v4, %v1008_v47  ;;  %v1026_v22 = vor.u32 %v1025_v35, %v1022_v30  ;;  %v1381_v28 = vor.u32 %v1380_v27, %v1379_v10 }
  0x8f   : > { %4754 = vmatmul.mubr.bf16.vlgmr.msra.gmra.mxu1 %v982_v51  ;;  %4802 = vmatmul.mubr.bf16.vlgmr.msra.gmra.mxu0 %v5799_v46  ;;  %v1049_v51 = vrot.slane %v1047_v36, 2  ;;  %v7266_v11 = vshll.u32 %v5690_v13, 16  ;;  %v1392_v48 = vrot.slane %v1050_v53, 4  ;;  %v1065_v56 = vshrl.u32 %v5615_v33, 16 }
  0x90   : > { %4834 = vmatpush3.bf16.msra.mxu1 %v5221_v24  ;;  %4882 = vmatpush3.bf16.msra.mxu0 %v5222_v45  ;;  %v1052_v24 = vrot.slane %v1050_v53, 3  ;;  %v5834_v45 = vsel %vm1351_vm2, %v1365_v38, %v1369_v49  ;;  %v1018_v38 = vsel %vm956_vm1, %v1008_v47, %v1017_v16  ;;  %v5858_v1 = vrot.slane %v1056_v29, 2  ;;  %v5229_v53 = vld [vmem:[%s7243_s1 + $0xd8] sm:$0xff]  }
  0x91   : > { %4757 = vmatprep.mubr.bf16.mxu1 %v991_v32  ;;  %4805 = vmatprep.mubr.bf16.mxu0 %v5811_v9  ;;  %v5846_v32 = vsel %vm1351_vm2, %v1373_v54, %v1377_v7  ;;  %v5860_v52 = vrot.slane %v1059_v18, 3  ;;  %v5862_v4 = vrot.slane %v1056_v29, 3  ;;  %v5868_v36 = vsel %vm1351_vm2, %v1377_v7, %v1381_v28  ;;  %v5230_v49 = vld [vmem:[%s7243_s1 + $0x118] sm:$0xff]  }
  0x92   : > { %4835 = vmatprep.subr.bf16.mxu1 %v5223_v55  ;;  %4883 = vmatprep.subr.bf16.mxu0 %v5224_v8  ;;  %v5854_v20 = vor.u32 %v1052_v24, %v1049_v51  ;;  %v1411_v47 = vrot.slane %v1092_v3, 3  ;;  %v1412_v30 = vrot.slane %v7266_v11, 4  ;;  %v5882_v10 = vsel %vm956_vm1, %v1026_v22, %v5781_v37 }
  0x93   : > { %v5884_v35 = vrot.slane %v1059_v18, 4  ;;  %v2274_v27 = vshll.u32 %v5547_v58, 16  ;;  %v5889_v54 = vcombine.low %v5599_v25, %v5628_v40  ;;  %v5895_v7 = vor.u32 %v1392_v48, %v1391_v34 }
  0x94   : > { %4836 = vmatpush3.bf16.msra.mxu1 %v5223_v55  ;;  %4884 = vmatpush3.bf16.msra.mxu0 %v5224_v8  ;;  %v1068_v55 = vshll.u32 %v5615_v33, 16  ;;  %v1027_v8 = vsel %vm956_vm1, %v1017_v16, %v1026_v22  ;;  %v5893_v16 = vsel %vm1351_vm2, %v1381_v28, %v5787_v26  ;;  %v5899_v37 = vcombine.low %v5631_v41, %v5660_v60  ;;  %v5920_v41 = vld [vmem:[%s5509_s8 + $0x8c] sm:$0xf] }
  0x95   : > { %4837 = vmatprep.subr.bf16.mxu1 %v5225_v12  ;;  %4885 = vmatprep.subr.bf16.mxu0 %v5226_v15  ;;  %v5911_v25 = vcombine.low %v5663_v61, %v5668_v63  ;;  %v5917_v26 = vcombine.low %v5671_v0, %v5693_v14  ;;  %v5924_v60 = vrot.slane %v1065_v56, 2  ;;  %v4312_v61 = vcombine.low %v5920_v41, %v5920_v41  ;;  %v5232_v0 = vld [vmem:[%s7243_s1 + $0x110] sm:$0xff]  }
  0x96   : > { %v2272_v63 = vshrl.u32 %v5547_v58, 16  ;;  %v2276_v24 = vrot.slane %v2274_v27, 1  ;;  %v7261_v18 = vshll.u32 %v5562_v2, 16  ;;  %v7262_v22 = vshrl.u32 %v5562_v2, 16 }
  0x97   : > { %4758 = vmatmul.mubr.bf16.gmra.mxu1 %v1000_v17  ;;  %4806 = vmatmul.mubr.bf16.gmra.mxu0 %v5834_v45  ;;  %v5929_v17 = vor.u32 %v1412_v30, %v1411_v47  ;;  %v1712_v29 = vshll.u32 %v4312_v61, 16  ;;  %v7259_v34 = vshll.u32 %v5569_v6, 16  ;;  %v7260_v27 = vshrl.u32 %v5569_v6, 16 }
  0x98   : > { %4761 = vmatprep.mubr.bf16.mxu1 %v1009_v62  ;;  %4809 = vmatprep.mubr.bf16.mxu0 %v5842_v39  ;;  %v1709_v62 = vshrl.u32 %v4312_v61, 16  ;;  %v2281_v30 = vrot.slane %v7261_v18, 1  ;;  %v7269_v18 = vshrl.u32 %v5594_v23, 16 }
  0x99   : > { %4838 = vmatpush3.bf16.msra.mxu1 %v5225_v12  ;;  %4886 = vmatpush3.bf16.msra.mxu0 %v5226_v15  ;;  %v5902_v12 = vld [vmem:[%s5509_s8 + $0x88] sm:$0xf]  ;;  %v5907_v15 = vsel %vm956_vm1, %v5783_v59, %v5854_v20  ;;  %v5231_v59 = vld [vmem:[%s7243_s1 + $0xd0] sm:$0xff]   ;;  %v1714_v47 = vrot.slane %v1712_v29, 4  ;;  %v2289_v61 = vrot.slane %v7259_v34, 1 }
  0x9a   : > { %4839 = vmatprep.subr.bf16.mxu1 %v5227_v21  ;;  %4887 = vmatprep.subr.bf16.mxu0 %v5228_v5  ;;  %v4311_v40 = vcombine.low %v5693_v14, %v5902_v12  ;;  %v1711_v48 = vrot.slane %v1709_v62, 3  ;;  %v5963_v62 = vrot.slane %v1068_v55, 3 }
  0x9c   : > { %v1700_v14 = vshrl.u32 %v4311_v40, 16  ;;  %v1703_v51 = vshll.u32 %v4311_v40, 16 }
  0x9d   : > { %4840 = vmatpush3.bf16.msra.mxu1 %v5227_v21  ;;  %4888 = vmatpush3.bf16.msra.mxu0 %v5228_v5  ;;  %v2277_v5 = vor.u32 %v2276_v24, %v2272_v63  ;;  %v7265_v63 = vshrl.u32 %v5587_v19, 16  ;;  %v7263_v24 = vshll.u32 %v5594_v23, 16 }
  0x9e   : > { %4841 = vmatprep.subr.bf16.mxu1 %v5229_v53  ;;  %4889 = vmatprep.subr.bf16.mxu0 %v5230_v49  ;;  %v1702_v28 = vrot.slane %v1700_v14, 3  ;;  %v1705_v21 = vrot.slane %v1703_v51, 4  ;;  %v5234_v14 = vld [vmem:[%s7243_s1 + $0x108] sm:$0xff]   ;;  %v2285_v51 = vor.u32 %v7262_v22, %v2281_v30  ;;  %v7267_v22 = vshll.u32 %v5633_v42, 16 }
  0x9f   : > { %4762 = vmatmul.mubr.bf16.gmra.mxu1 %v1018_v38  ;;  %4810 = vmatmul.mubr.bf16.gmra.mxu0 %v5846_v32  ;;  %v5233_v38 = vld [vmem:[%s7243_s1 + $0xc8] sm:$0xff]  }
  0xa0   : > { %4765 = vmatprep.mubr.bf16.mxu1 %v1027_v8  ;;  %4813 = vmatprep.mubr.bf16.mxu0 %v5868_v36  ;;  %v1706_v40 = vor.u32 %v1705_v21, %v1702_v28  ;;  %v7264_v8 = vshll.u32 %v5587_v19, 16  ;;  %v2293_v28 = vor.u32 %v7260_v27, %v2289_v61  ;;  %v5987_v34 = vsel %vm2270_vm3, %v2285_v51, %v2289_v61 }
  0xa1   : > { %4842 = vmatpush3.bf16.msra.mxu1 %v5229_v53  ;;  %4890 = vmatpush3.bf16.msra.mxu0 %v5230_v49  ;;  %v1715_v53 = vor.u32 %v1714_v47, %v1711_v48  ;;  %v5956_v49 = vsel %vm2270_vm3, %v2277_v5, %v2281_v30  ;;  %v5975_v5 = vor.u32 %v5860_v52, %v5858_v1  ;;  %v5235_v48 = vld [vmem:[%s7243_s1 + $0xc0] sm:$0xff]   ;;  %v2305_v27 = vrot.slane %v7263_v24, 1 }
  0xa2   : > { %4843 = vmatprep.subr.bf16.mxu1 %v5231_v59  ;;  %4891 = vmatprep.subr.bf16.mxu0 %v5232_v0  ;;  %v5967_v29 = vsel %vm1351_vm2, %v5929_v17, %v1706_v40  ;;  %v2297_v21 = vrot.slane %v7264_v8, 1  ;;  %v5236_v47 = vld [vmem:[%s7243_s1 + $0x100] sm:$0xff]   ;;  %v7271_v61 = vshrl.u32 %v5633_v42, 16  ;;  %v1077_v8 = vshll.u32 %v5657_v57, 16 }
  0xa3   : > { %v5984_v30 = vsel %vm1351_vm2, %v1706_v40, %v1715_v53  ;;  %v1074_v40 = vshrl.u32 %v5657_v57, 16  ;;  %v7268_v53 = vshll.u32 %v5636_v43, 16  ;;  %v2309_v51 = vor.u32 %v7269_v18, %v2305_v27 }
  0xa4   : > { %v5992_v1 = vsel %vm2270_vm3, %v2293_v28, %v2297_v21  ;;  %v2301_v52 = vor.u32 %v7265_v63, %v2297_v21  ;;  %v2313_v28 = vrot.slane %v7267_v22, 1  ;;  %v7301_v21 = vld [vmem:[#allocation7_spill] sm:$0xff]  ;;  %v7302_v63 = vld [vmem:[#allocation8_spill] sm:$0xff]  ;;  %v1399_v18 = vrot.slane %v1065_v56, 3 }
  0xa5   : > { %4844 = vmatpush3.bf16.msra.mxu1 %v5231_v59  ;;  %4892 = vmatpush3.bf16.msra.mxu0 %v5232_v0  ;;  %v7272_v59 = vshrl.u32 %v5636_v43, 16  ;;  %v7270_v24 = vshll.u32 %v7301_v21, 16  ;;  %v7273_v11 = vshll.u32 %v7302_v63, 16 }
  0xa6   : > { %4845 = vmatprep.subr.bf16.mxu1 %v5233_v38  ;;  %4893 = vmatprep.subr.bf16.mxu0 %v5234_v14  ;;  %v6005_v0 = vsel %vm2270_vm3, %v2301_v52, %v2305_v27  ;;  %v7274_v52 = vshrl.u32 %v7301_v21, 16  ;;  %v1397_v27 = vor.u32 %v5884_v35, %v5862_v4  ;;  %v6027_v22 = vsel %vm2270_vm3, %v2309_v51, %v2313_v28  ;;  %v6040_v35 = vld [vmem:[%s7243_s1 + $0x1b8] sm:$0xff]  }
  0xa7   : > { %4766 = vmatmul.mubr.bf16.gmra.mxu1 %v5882_v10  ;;  %4814 = vmatmul.mubr.bf16.gmra.mxu0 %v5893_v16  ;;  %v2321_v10 = vrot.slane %v7268_v53, 1  ;;  %v2317_v57 = vor.u32 %v7271_v61, %v2313_v28  ;;  %v2329_v53 = vrot.slane %v7270_v24, 1  ;;  %v1400_v4 = vrot.slane %v1068_v55, 4 }
  0xa8   : > { %4769 = vmatprep.mubr.bf16.mxu1 %v5796_v44  ;;  %4817 = vmatprep.mubr.bf16.mxu0 %v5805_v50  ;;  %v6024_v44 = vld [vmem:[%s7243_s1 + $0x178] sm:$0xff]   ;;  %v1076_v51 = vrot.slane %v1074_v40, 2  ;;  %v1403_v28 = vrot.slane %v1074_v40, 3  ;;  %v6056_v55 = vsel %vm1351_vm2, %v5789_v31, %v5895_v7  ;;  %v1079_v24 = vrot.slane %v1077_v8, 3 }
  0xa9   : > { %4846 = vmatpush3.bf16.msra.mxu1 %v5233_v38  ;;  %4894 = vmatpush3.bf16.msra.mxu0 %v5234_v14  ;;  %v2325_v38 = vor.u32 %v7272_v59, %v2321_v10  ;;  %v6046_v14 = vrot.slane %v7273_v11, 1  ;;  %v6049_v56 = vsel %vm2270_vm3, %v2317_v57, %v2321_v10  ;;  %v2333_v33 = vor.u32 %v7274_v52, %v2329_v53 }
  0xaa   : > { %4847 = vmatprep.subr.bf16.mxu1 %v5235_v48  ;;  %4895 = vmatprep.subr.bf16.mxu0 %v5236_v47  ;;  %v1404_v61 = vrot.slane %v1077_v8, 4  ;;  %v1063_v40 = vsel %vm956_vm1, %v5854_v20, %v5975_v5  ;;  %v6066_v10 = vsel %vm1351_vm2, %v5895_v7, %v1397_v27  ;;  %v1071_v31 = vor.u32 %v5963_v62, %v5924_v60  ;;  %v7303_v7 = vld [vmem:[#allocation11_spill] sm:$0xff] }
  0xab   : > { %v6059_v59 = vsel %vm2270_vm3, %v2325_v38, %v2329_v53  ;;  %v6070_v57 = vsel %vm2270_vm3, %v2333_v33, %v6046_v14  ;;  %v1401_v20 = vor.u32 %v1400_v4, %v1399_v18  ;;  %v1083_v8 = vshrl.u32 %v7303_v7, 16 }
  0xac   : > { %v1405_v53 = vor.u32 %v1404_v61, %v1403_v28  ;;  %v1072_v38 = vsel %vm956_vm1, %v5975_v5, %v1071_v31  ;;  %v1094_v4 = vrot.slane %v1092_v3, 2  ;;  %v7305_v5 = vld [vmem:[#allocation12_spill] sm:$0xff] }
  0xad   : > { %4848 = vmatpush3.bf16.msra.mxu1 %v5235_v48  ;;  %4896 = vmatpush3.bf16.msra.mxu0 %v5236_v47  ;;  %v1086_v48 = vshll.u32 %v7303_v7, 16  ;;  %v1080_v47 = vor.u32 %v1079_v24, %v1076_v51  ;;  %v1085_v33 = vrot.slane %v1083_v8, 2  ;;  %v1407_v52 = vrot.slane %v1083_v8, 3 }
  0xae   : > { %4929 = vmatprep.subr.bf16.mxu1 %v6024_v44  ;;  %4977 = vmatprep.subr.bf16.mxu0 %v6040_v35  ;;  %v6088_v62 = vsel %vm1351_vm2, %v1401_v20, %v1405_v53  ;;  %v7304_v24 = vshll.u32 %v5690_v13, 16  ;;  %v1104_v51 = vshll.u32 %v7305_v5, 16 }
  0xaf   : > { %4770 = vmatmul.mubr.bf16.gmra.mxu1 %v5907_v15  ;;  %4818 = vmatmul.mubr.bf16.gmra.mxu0 %v6056_v55  ;;  %v6084_v15 = vsel %vm1351_vm2, %v1397_v27, %v1401_v20  ;;  %v1088_v11 = vrot.slane %v1086_v48, 3  ;;  %v1408_v60 = vrot.slane %v1086_v48, 4  ;;  %v1081_v18 = vsel %vm956_vm1, %v1071_v31, %v1080_v47 }
  0xb0   : > { %4773 = vmatprep.mubr.bf16.mxu1 %v1063_v40  ;;  %4821 = vmatprep.mubr.bf16.mxu0 %v6066_v10  ;;  %v1097_v61 = vrot.slane %v7304_v24, 3  ;;  %v1101_v27 = vshrl.u32 %v7305_v5, 16  ;;  %v1106_v7 = vrot.slane %v1104_v51, 3  ;;  %v1416_v48 = vrot.slane %v1104_v51, 4 }
  0xb1   : > { %v1089_v28 = vor.u32 %v1088_v11, %v1085_v33  ;;  %v1409_v40 = vor.u32 %v1408_v60, %v1407_v52  ;;  %v7306_v33 = vshrl.u32 %v5587_v19, 16 }
  0xb2   : > { %v1098_v31 = vor.u32 %v1097_v61, %v1094_v4  ;;  %v1103_v20 = vrot.slane %v1101_v27, 2  ;;  %v1415_v8 = vrot.slane %v1101_v27, 3  ;;  %v7308_v61 = vshrl.u32 %v5562_v2, 16 }
  0xb3   : > { %v1090_v3 = vsel %vm956_vm1, %v1080_v47, %v1089_v28  ;;  %v6100_v13 = vsel %vm1351_vm2, %v1405_v53, %v1409_v40  ;;  %v6105_v24 = vsel %vm1351_vm2, %v1409_v40, %v5929_v17  ;;  %v3272_v60 = vrot.slane %v7306_v33, 1  ;;  %v5247_v33 = vld [vmem:[%s7243_s1 + $0x168] sm:$0xff]  }
  0xb4   : > { %v1107_v11 = vor.u32 %v1106_v7, %v1103_v20  ;;  %v1417_v52 = vor.u32 %v1416_v48, %v1415_v8  ;;  %v3265_v5 = vrot.slane %v7308_v61, 1  ;;  %v7309_v27 = vshll.u32 %v5562_v2, 16 }
  0xb5   : > { %v7311_v40 = vshll.u32 %v5569_v6, 16  ;;  %v2957_v7 = vrot.slane %v5562_v2, 1  ;;  %v2962_v61 = vrot.slane %v5594_v23, 1 }
  0xb6   : > { %v1108_v47 = vsel %vm956_vm1, %v1098_v31, %v1107_v11  ;;  %v1418_v53 = vsel %vm1351_vm2, %v5929_v17, %v1417_v52  ;;  %v3266_v51 = vrot.slane %v7309_v27, 2  ;;  %v7310_v17 = vshrl.u32 %v5569_v6, 16  ;;  %v5243_v11 = vld [vmem:[%s7243_s1 + $0x170] sm:$0xff]  }
  0xb7   : > { %4774 = vmatmul.mubr.bf16.gmra.mxu1 %v1072_v38  ;;  %4822 = vmatmul.mubr.bf16.gmra.mxu0 %v6084_v15  ;;  %v1099_v38 = vsel %vm956_vm1, %v1089_v28, %v1098_v31  ;;  %v3269_v31 = vrot.slane %v7311_v40, 2  ;;  %v5244_v52 = vld [vmem:[%s7243_s1 + $0x1b0] sm:$0xff]   ;;  %v2964_v27 = vrot.slane %v5633_v42, 1  ;;  %v5251_v40 = vld [vmem:[%s7243_s1 + $0x160] sm:$0xff]  }
  0xb8   : > { %4777 = vmatprep.mubr.bf16.mxu1 %v1081_v18  ;;  %4825 = vmatprep.mubr.bf16.mxu0 %v6088_v62  ;;  %v7307_v18 = vshll.u32 %v5587_v19, 16  ;;  %v3268_v28 = vrot.slane %v7310_v17, 1 }
  0xba   : > { %v3273_v4 = vrot.slane %v7307_v18, 2  ;;  %v3270_v8 = vor.u32 %v3269_v31, %v3268_v28  ;;  %v5252_v31 = vld [vmem:[%s7243_s1 + $0x1a0] sm:$0xff]  }
  0xbc   : > { %v3274_v20 = vor.u32 %v3273_v4, %v3272_v60  ;;  %v5248_v60 = vld [vmem:[%s7243_s1 + $0x1a8] sm:$0xff]  }
  0xbf   : > { %4778 = vmatmul.mubr.bf16.gmra.mxu1 %v1090_v3  ;;  %4826 = vmatmul.mubr.bf16.gmra.mxu0 %v6100_v13  ;;  %v2958_v3 = vrot.slane %v5569_v6, 1 }
  0xc0   : > { %4781 = vmatprep.mubr.bf16.mxu1 %v1099_v38  ;;  %4829 = vmatprep.mubr.bf16.mxu0 %v6105_v24 }
  0xc1   : > { %v6130_v48 = vsel %vm2956_vm4, %v2957_v7, %v2958_v3  ;;  %v6182_v7 = vsel %vm2956_vm4, %v2962_v61, %v2964_v27 }
  0xc7   : > { %4782 = vmatmul.mubr.bf16.gmra.mxu1 %v1108_v47  ;;  %4830 = vmatmul.mubr.bf16.gmra.mxu0 %v1418_v53  ;;  %v6145_v53 = vsel %vm3264_vm5, %v3270_v8, %v3274_v20 }
  0xc8   : > { %4849 = vmatprep.mubr.bf16.mxu1 %v5799_v46  ;;  %4897 = vmatprep.mubr.bf16.mxu0 %v5547_v58  ;;  %v3267_v46 = vor.u32 %v3266_v51, %v3265_v5  ;;  %v2960_v58 = vrot.slane %v5587_v19, 1 }
  0xca   : > { %v6133_v38 = vsel %vm3264_vm5, %v3267_v46, %v3270_v8  ;;  %v6142_v47 = vsel %vm2956_vm4, %v2958_v3, %v2960_v58  ;;  %v6170_v17 = vsel %vm2956_vm4, %v2960_v58, %v2962_v61  ;;  %v7317_v8 = vshll.u32 %v5636_v43, 16 }
  0xcb   : > { %v2339_v61 = vshrl.u32 %v7302_v63, 16 }
  0xcc   : > { %v3285_v58 = vrot.slane %v7317_v8, 2  ;;  %v5332_v8 = vmov 0  }
  0xcd   : > { %5178 = vset.pattern.permute.xlu0 %v5332_v8  ;;  %5179 = vset.pattern.permute.xlu1 %v5332_v8  ;;  %v3681_v8 = vld [vmem:[%s5414_s16 + $0x98] sm:$0xff] }
  0xcf   : > { %4850 = vmatmul.mubr.bf16.vlgmr.msra.gmra.mxu1 %v5811_v9  ;;  %4898 = vmatmul.mubr.bf16.vlgmr.msra.gmra.mxu0 %v5562_v2  ;;  %v7312_v9 = vshrl.u32 %v5594_v23, 16  ;;  %v7313_v2 = vshll.u32 %v5594_v23, 16 }
  0xd0   : > { %4930 = vmatpush3.bf16.msra.mxu1 %v6024_v44  ;;  %4978 = vmatpush3.bf16.msra.mxu0 %v6040_v35 }
  0xd1   : > { %4853 = vmatprep.mubr.bf16.mxu1 %v5834_v45  ;;  %4901 = vmatprep.mubr.bf16.mxu0 %v5569_v6  ;;  %v3276_v18 = vrot.slane %v7312_v9, 1  ;;  %v3277_v44 = vrot.slane %v7313_v2, 2  ;;  %v7314_v45 = vshrl.u32 %v5633_v42, 16  ;;  %v7315_v6 = vshll.u32 %v5633_v42, 16 }
  0xd2   : > { %4931 = vmatprep.subr.bf16.mxu1 %v5243_v11  ;;  %4979 = vmatprep.subr.bf16.mxu0 %v5244_v52  ;;  %v2968_v9 = vrot.slane %v7301_v21, 1 }
  0xd3   : > { %v3280_v35 = vrot.slane %v7314_v45, 1  ;;  %v3281_v4 = vrot.slane %v7315_v6, 2  ;;  %v3278_v5 = vor.u32 %v3277_v44, %v3276_v18  ;;  %v5259_v45 = vld [vmem:[%s7243_s1 + $0x150] sm:$0xff]  }
  0xd4   : > { %4932 = vmatpush3.bf16.msra.mxu1 %v5243_v11  ;;  %4980 = vmatpush3.bf16.msra.mxu0 %v5244_v52  ;;  %v7319_v11 = vshll.u32 %v7301_v21, 16 }
  0xd5   : > { %v3282_v51 = vor.u32 %v3281_v4, %v3280_v35  ;;  %4933 = vmatprep.subr.bf16.mxu1 %v5247_v33  ;;  %4981 = vmatprep.subr.bf16.mxu0 %v5248_v60  ;;  %v6173_v28 = vsel %vm3264_vm5, %v3274_v20, %v3278_v5  ;;  %v7316_v20 = vshrl.u32 %v5636_v43, 16  ;;  %v5260_v35 = vld [vmem:[%s7243_s1 + $0x190] sm:$0xff]  }
  0xd6   : > { %v3289_v52 = vrot.slane %v7319_v11, 2 }
  0xd7   : > { %v6185_v3 = vsel %vm3264_vm5, %v3278_v5, %v3282_v51  ;;  %4854 = vmatmul.mubr.bf16.gmra.mxu1 %v5842_v39  ;;  %4902 = vmatmul.mubr.bf16.gmra.mxu0 %v5587_v19  ;;  %v3284_v46 = vrot.slane %v7316_v20, 1  ;;  %v5255_v39 = vld [vmem:[%s7243_s1 + $0x158] sm:$0xff]   ;;  %v7320_v5 = vld [vmem:[#allocation9_spill] sm:$0xff] }
  0xd8   : > { %4857 = vmatprep.mubr.bf16.mxu1 %v5846_v32  ;;  %4905 = vmatprep.mubr.bf16.mxu0 %v5594_v23  ;;  %v5256_v19 = vld [vmem:[%s7243_s1 + $0x198] sm:$0xff]   ;;  %v7318_v23 = vshrl.u32 %v7301_v21, 16 }
  0xd9   : > { %4934 = vmatpush3.bf16.msra.mxu1 %v5247_v33  ;;  %4982 = vmatpush3.bf16.msra.mxu0 %v5248_v60  ;;  %v2966_v33 = vrot.slane %v5636_v43, 1  ;;  %v3286_v60 = vor.u32 %v3285_v58, %v3284_v46  ;;  %v3664_v58 = vld [vmem:[%s5414_s16 + $0x10] sm:$0xff] }
  0xda   : > { %4935 = vmatprep.subr.bf16.mxu1 %v5251_v40  ;;  %4983 = vmatprep.subr.bf16.mxu0 %v5252_v31  ;;  %v3288_v32 = vrot.slane %v7318_v23, 1 }
  0xdb   : > { %v6208_v2 = vsel %vm2956_vm4, %v2964_v27, %v2966_v33  ;;  %v6211_v44 = vsel %vm3264_vm5, %v3282_v51, %v3286_v60  ;;  %v6220_v6 = vsel %vm2956_vm4, %v2966_v33, %v2968_v9  ;;  %v2343_v27 = vshll.u32 %v7320_v5, 16  ;;  %3706 = vperm.xlu1 %5179, %v3664_v58   ;;  %v5270_v33 = vld [vmem:[%s7243_s1 + $0x180] sm:$0xff]   ;;  %v5275_v58 = vld [vmem:[%s7243_s1 + $0x1e8] sm:$0xff]  }
  0xdc   : > { %v3290_v18 = vor.u32 %v3289_v52, %v3288_v32  ;;  %v2347_v51 = vshrl.u32 %v7320_v5, 16  ;;  %v5269_v52 = vld [vmem:[%s7243_s1 + $0x140] sm:$0xff]  }
  0xdd   : > { %4936 = vmatpush3.bf16.msra.mxu1 %v5251_v40  ;;  %4984 = vmatpush3.bf16.msra.mxu0 %v5252_v31  ;;  %v3662_v40 = vld [vmem:[%s5414_s16] sm:$0xff]  ;;  %v3292_v31 = vrot.slane %v2339_v61, 1  ;;  %v3297_v46 = vrot.slane %v2343_v27, 2 }
  0xde   : > { %4937 = vmatprep.subr.bf16.mxu1 %v5255_v39  ;;  %4985 = vmatprep.subr.bf16.mxu0 %v5256_v19  ;;  %v6223_v4 = vsel %vm3264_vm5, %v3286_v60, %v3290_v18  ;;  %v3296_v20 = vrot.slane %v2347_v51, 1 }
  0xdf   : > { %4858 = vmatmul.mubr.bf16.gmra.mxu1 %v5868_v36  ;;  %4906 = vmatmul.mubr.bf16.gmra.mxu0 %v5633_v42  ;;  %v7321_v36 = vshll.u32 %v7302_v63, 16 }
  0xe0   : > { %4861 = vmatprep.mubr.bf16.mxu1 %v5893_v16  ;;  %4909 = vmatprep.mubr.bf16.mxu0 %v5636_v43  ;;  %v5263_v43 = vld [vmem:[%s7243_s1 + $0x148] sm:$0xff]   ;;  %v6249_v23 = vor.u32 %v3297_v46, %v3296_v20  ;;  %v6307_v20 = vcombine.low %v5902_v12, %v5920_v41  ;;  %v3678_v46 = vld [vmem:[%s5414_s16 + $0x80] sm:$0xff]  ;;  %v5273_v12 = vld [vmem:[%s7243_s1 + $0x1f0] sm:$0xff]  }
  0xe1   : > { %4938 = vmatpush3.bf16.msra.mxu1 %v5255_v39  ;;  %4986 = vmatpush3.bf16.msra.mxu0 %v5256_v19  ;;  %v3293_v42 = vrot.slane %v7321_v36, 2  ;;  %v5264_v16 = vld [vmem:[%s7243_s1 + $0x188] sm:$0xff]   ;;  %v7286_v39 = vrot.slane %v7302_v63, 1  ;;  %v3670_v36 = vld [vmem:[%s5414_s16 + $0x40] sm:$0xff]  ;;  %v5274_v41 = vld [vmem:[%s7243_s1 + $0x230] sm:$0xff]  }
  0xe2   : > { %4939 = vmatprep.subr.bf16.mxu1 %v5259_v45  ;;  %4987 = vmatprep.subr.bf16.mxu0 %v5260_v35 }
  0xe3   : > { %v3294_v19 = vor.u32 %v3293_v42, %v3292_v31  ;;  %3696 = vperm.xlu0 %5178, %v3662_v40   ;;  %v6254_v32 = vsel %vm2956_vm4, %v2968_v9, %v7286_v39  ;;  %v3663_v9 = vld [vmem:[%s5414_s16 + $0x8] sm:$0xff]  ;;  %v3668_v40 = vld [vmem:[%s5414_s16 + $0x30] sm:$0xff]  ;;  %v3669_v31 = vld [vmem:[%s5414_s16 + $0x38] sm:$0xff] }
  0xe4   : > { %v3671_v42 = vld [vmem:[%s5414_s16 + $0x48] sm:$0xff] }
  0xe5   : > { %4940 = vmatpush3.bf16.msra.mxu1 %v5259_v45  ;;  %4988 = vmatpush3.bf16.msra.mxu0 %v5260_v35  ;;  %v6257_v11 = vsel %vm3264_vm5, %v3290_v18, %v3294_v19  ;;  %v6267_v60 = vsel %vm3264_vm5, %v3294_v19, %v6249_v23  ;;  %v3665_v18 = vld [vmem:[%s5414_s16 + $0x18] sm:$0xff]  ;;  %v5276_v19 = vld [vmem:[%s7243_s1 + $0x228] sm:$0xff]  }
  0xe6   : > { %4941 = vmatprep.subr.bf16.mxu1 %v5263_v43  ;;  %4989 = vmatprep.subr.bf16.mxu0 %v5264_v16  ;;  %v5271_v45 = vld [vmem:[%s7243_s1 + $0x1f8] sm:$0xff]  }
  0xe7   : > { %4862 = vmatmul.mubr.bf16.gmra.mxu1 %v5805_v50  ;;  %4910 = vmatmul.mubr.bf16.gmra.mxu0 %v7301_v21  ;;  %v5272_v50 = vld [vmem:[%s7243_s1 + $0x238] sm:$0xff]   ;;  %v3666_v21 = vld [vmem:[%s5414_s16 + $0x20] sm:$0xff] }
  0xe8   : > { %4865 = vmatprep.mubr.bf16.mxu1 %v6056_v55  ;;  %4913 = vmatprep.mubr.bf16.mxu0 %v7302_v63  ;;  %v3667_v55 = vld [vmem:[%s5414_s16 + $0x28] sm:$0xff]  ;;  %v7322_v35 = vld [vmem:[#allocation10_spill] sm:$0xff] }
  0xe9   : > { %4942 = vmatpush3.bf16.msra.mxu1 %v5263_v43  ;;  %4990 = vmatpush3.bf16.msra.mxu0 %v5264_v16  ;;  %v3674_v43 = vld [vmem:[%s5414_s16 + $0x60] sm:$0xff]  ;;  %v3675_v16 = vld [vmem:[%s5414_s16 + $0x68] sm:$0xff] }
  0xea   : > { %4943 = vmatprep.subr.bf16.mxu1 %v5269_v52  ;;  %4991 = vmatprep.subr.bf16.mxu0 %v5270_v33 }
  0xeb   : > { %3701 = vperm.xlu0 %5178, %v3663_v9   ;;  %3711 = vperm.xlu1 %5179, %v3665_v18   ;;  %v5279_v9 = vld [vmem:[%s7243_s1 + $0x1d8] sm:$0xff]   ;;  %v5281_v18 = vld [vmem:[%s7243_s1 + $0x1d0] sm:$0xff]  }
  0xed   : > { %4944 = vmatpush3.bf16.msra.mxu1 %v5269_v52  ;;  %4992 = vmatpush3.bf16.msra.mxu0 %v5270_v33  ;;  %v3684_v52 = vld [vmem:[%s5414_s16 + $0xb0] sm:$0xff]  ;;  %v3685_v33 = vld [vmem:[%s5414_s16 + $0xb8] sm:$0xff] }
  0xee   : > { %5025 = vmatprep.subr.bf16.mxu1 %v5271_v45  ;;  %5073 = vmatprep.subr.bf16.mxu0 %v5272_v50 }
  0xef   : > { %4866 = vmatmul.mubr.bf16.gmra.mxu1 %v6066_v10  ;;  %4914 = vmatmul.mubr.bf16.gmra.mxu0 %v7320_v5  ;;  %v3672_v10 = vld [vmem:[%s5414_s16 + $0x50] sm:$0xff] }
  0xf0   : > { %4869 = vmatprep.mubr.bf16.mxu1 %v6084_v15  ;;  %4917 = vmatprep.mubr.bf16.mxu0 %v7322_v35  ;;  %v3673_v15 = vld [vmem:[%s5414_s16 + $0x58] sm:$0xff] }
  0xf1   : > { %3716 = vperm.xlu0 %5178, %v3666_v21   ;;  %3721 = vperm.xlu1 %5179, %v3667_v55   ;;  %v2341_v21 = vor.u32 %v2339_v61, %v6046_v14  ;;  %v3686_v55 = vld [vmem:[%s5414_s16 + $0xc0] sm:$0xff]  ;;  %v5284_v14 = vld [vmem:[%s7243_s1 + $0x208] sm:$0xff]   ;;  %v7287_v61 = vshll.u32 %v5889_v54, 16 }
  0xf5   : > { %3726 = vperm.xlu0 %5178, %v3668_v40   ;;  %3731 = vperm.xlu1 %5179, %v3669_v31   ;;  %v3687_v40 = vld [vmem:[%s5414_s16 + $0xc8] sm:$0xff] }
  0xf7   : > { %4870 = vmatmul.mubr.bf16.gmra.mxu1 %v6088_v62  ;;  %4918 = vmatmul.mubr.bf16.gmra.mxu0 %v5889_v54  ;;  %v3676_v62 = vld [vmem:[%s5414_s16 + $0x70] sm:$0xff] }
  0xf8   : > { %4873 = vmatprep.mubr.bf16.mxu1 %v6100_v13  ;;  %4921 = vmatprep.mubr.bf16.mxu0 %v5899_v37  ;;  %v3677_v13 = vld [vmem:[%s5414_s16 + $0x78] sm:$0xff] }
  0xf9   : > { %3736 = vperm.xlu0 %5178, %v3670_v36   ;;  %3741 = vperm.xlu1 %5179, %v3671_v42   ;;  %v7288_v42 = vshrl.u32 %v5889_v54, 16 }
  0xfd   : > { %3746 = vperm.xlu0 %5178, %v3672_v10   ;;  %3751 = vperm.xlu1 %5179, %v3673_v15   ;;  %v7282_v10 = vshll.u32 %v5899_v37, 16  ;;  %v5288_v15 = vld [vmem:[%s7243_s1 + $0x1c0] sm:$0xff]  }
  0xff   : > { %4874 = vmatmul.mubr.bf16.gmra.mxu1 %v6105_v24  ;;  %4922 = vmatmul.mubr.bf16.gmra.mxu0 %v5911_v25  ;;  %v3679_v24 = vld [vmem:[%s5414_s16 + $0x88] sm:$0xff] }
 0x100   : > { %4877 = vmatprep.mubr.bf16.mxu1 %v5967_v29  ;;  %4925 = vmatprep.mubr.bf16.mxu0 %v5917_v26  ;;  %v3680_v29 = vld [vmem:[%s5414_s16 + $0x90] sm:$0xff] }
 0x101   : > { %3756 = vperm.xlu0 %5178, %v3674_v43   ;;  %3761 = vperm.xlu1 %5179, %v3675_v16   ;;  %v5289_v43 = vld [vmem:[%s7243_s1 + $0x200] sm:$0xff]   ;;  %v2361_v16 = vrot.slane %v7287_v61, 1 }
 0x105   : > { %3766 = vperm.xlu0 %5178, %v3676_v62   ;;  %3771 = vperm.xlu1 %5179, %v3677_v13   ;;  %v3688_v13 = vld [vmem:[%s5414_s16 + $0xd0] sm:$0xff] }
 0x107   : > { %4878 = vmatmul.mubr.bf16.gmra.mxu1 %v5984_v30  ;;  %4926 = vmatmul.mubr.bf16.gmra.mxu0 %v6307_v20  ;;  %v3683_v30 = vld [vmem:[%s5414_s16 + $0xa8] sm:$0xff] }
 0x108   : > { %4945 = vmatprep.mubr.bf16.mxu1 %v5956_v49  ;;  %4993 = vmatprep.mubr.bf16.mxu0 %v5987_v34  ;;  %v3682_v49 = vld [vmem:[%s5414_s16 + $0xa0] sm:$0xff] }
 0x109   : > { %3776 = vperm.xlu0 %5178, %v3678_v46   ;;  %3781 = vperm.xlu1 %5179, %v3679_v24   ;;  %v3689_v46 = vld [vmem:[%s5414_s16 + $0xd8] sm:$0xff]  ;;  %v2365_v24 = vor.u32 %v7288_v42, %v2361_v16 }
 0x10d   : > { %3786 = vperm.xlu0 %5178, %v3680_v29   ;;  %3791 = vperm.xlu1 %5179, %v3681_v8   ;;  %v2369_v29 = vrot.slane %v7282_v10, 1 }
 0x10f   : > { %4946 = vmatmul.mubr.bf16.vlgmr.msra.gmra.mxu1 %v5987_v34  ;;  %4994 = vmatmul.mubr.bf16.vlgmr.msra.gmra.mxu0 %v5992_v1  ;;  %v5277_v34 = vld [vmem:[%s7243_s1 + $0x1e0] sm:$0xff]  }
 0x110   : > { %5026 = vmatpush3.bf16.msra.mxu1 %v5271_v45  ;;  %5074 = vmatpush3.bf16.msra.mxu0 %v5272_v50  ;;  %v5282_v45 = vld [vmem:[%s7243_s1 + $0x210] sm:$0xff]   ;;  %v2345_v50 = vrot.slane %v2343_v27, 1 }
 0x111   : > { %4949 = vmatprep.mubr.bf16.mxu1 %v5992_v1  ;;  %4997 = vmatprep.mubr.bf16.mxu0 %v6005_v0  ;;  %v5278_v1 = vld [vmem:[%s7243_s1 + $0x220] sm:$0xff]  }
 0x112   : > { %5027 = vmatprep.subr.bf16.mxu1 %v5273_v12  ;;  %5075 = vmatprep.subr.bf16.mxu0 %v5274_v41  ;;  %v2349_v31 = vor.u32 %v2347_v51, %v2345_v50  ;;  %v2346_v27 = vsel %vm2270_vm3, %v2341_v21, %v2345_v50  ;;  %v7290_v51 = vshrl.u32 %v7322_v35, 16 }
 0x113   : > { %3796 = vperm.xlu0 %5178, %v3682_v49   ;;  %3801 = vperm.xlu1 %5179, %v3683_v30   ;;  %v7281_v49 = vshrl.u32 %v5911_v25, 16  ;;  %v7276_v30 = vshll.u32 %v5917_v26, 16 }
 0x114   : > { %5028 = vmatpush3.bf16.msra.mxu1 %v5273_v12  ;;  %5076 = vmatpush3.bf16.msra.mxu0 %v5274_v41  ;;  %v7283_v12 = vshrl.u32 %v5899_v37, 16  ;;  %v2370_v41 = vsel %vm2270_vm3, %v2365_v24, %v2369_v29 }
 0x115   : > { %5029 = vmatprep.subr.bf16.mxu1 %v5275_v58  ;;  %5077 = vmatprep.subr.bf16.mxu0 %v5276_v19  ;;  %v2385_v21 = vrot.slane %v7276_v30, 1 }
 0x117   : > { %4950 = vmatmul.mubr.bf16.gmra.mxu1 %v6005_v0  ;;  %4998 = vmatmul.mubr.bf16.gmra.mxu0 %v6027_v22  ;;  %v5280_v0 = vld [vmem:[%s7243_s1 + $0x218] sm:$0xff]  }
 0x118   : > { %4953 = vmatprep.mubr.bf16.mxu1 %v6027_v22  ;;  %5001 = vmatprep.mubr.bf16.mxu0 %v6049_v56  ;;  %v7289_v22 = vshll.u32 %v7322_v35, 16 }
 0x119   : > { %5030 = vmatpush3.bf16.msra.mxu1 %v5275_v58  ;;  %5078 = vmatpush3.bf16.msra.mxu0 %v5276_v19  ;;  %v578_v58 = vld [vmem:[%s5509_s8 + $0x90] sm:$0xf]  ;;  %v579_v19 = vld [vmem:[%s5509_s8 + $0x94] sm:$0xf] }
 0x11a   : > { %5031 = vmatprep.subr.bf16.mxu1 %v5277_v34  ;;  %5079 = vmatprep.subr.bf16.mxu0 %v5278_v1 }
 0x11b   : > { %3806 = vperm.xlu0 %5178, %v3684_v52   ;;  %3811 = vperm.xlu1 %5179, %v3685_v33  }
 0x11d   : > { %5032 = vmatpush3.bf16.msra.mxu1 %v5277_v34  ;;  %5080 = vmatpush3.bf16.msra.mxu0 %v5278_v1  ;;  %v3690_v34 = vld [vmem:[%s5414_s16 + $0xe0] sm:$0xff]  ;;  %v3691_v1 = vld [vmem:[%s5414_s16 + $0xe8] sm:$0xff] }
 0x11e   : > { %5033 = vmatprep.subr.bf16.mxu1 %v5279_v9  ;;  %5081 = vmatprep.subr.bf16.mxu0 %v5280_v0 }
 0x11f   : > { %4954 = vmatmul.mubr.bf16.gmra.mxu1 %v6049_v56  ;;  %5002 = vmatmul.mubr.bf16.gmra.mxu0 %v6059_v59  ;;  %v2353_v56 = vrot.slane %v7289_v22, 1 }
 0x120   : > { %4957 = vmatprep.mubr.bf16.mxu1 %v6059_v59  ;;  %5005 = vmatprep.mubr.bf16.mxu0 %v6070_v57  ;;  %v5283_v59 = vld [vmem:[%s7243_s1 + $0x1c8] sm:$0xff]  }
 0x121   : > { %5034 = vmatpush3.bf16.msra.mxu1 %v5279_v9  ;;  %5082 = vmatpush3.bf16.msra.mxu0 %v5280_v0  ;;  %v2354_v36 = vsel %vm2270_vm3, %v2349_v31, %v2353_v56  ;;  %v2357_v62 = vor.u32 %v7290_v51, %v2353_v56  ;;  %v2373_v0 = vor.u32 %v7283_v12, %v2369_v29  ;;  %v3693_v31 = vld [vmem:[%s5414_s16 + $0xf8] sm:$0xff] }
 0x122   : > { %5035 = vmatprep.subr.bf16.mxu1 %v5281_v18  ;;  %5083 = vmatprep.subr.bf16.mxu0 %v5282_v45 }
 0x123   : > { %3816 = vperm.xlu0 %5178, %v3686_v55   ;;  %3821 = vperm.xlu1 %5179, %v3687_v40   ;;  %v2362_v8 = vsel %vm2270_vm3, %v2357_v62, %v2361_v16  ;;  %v6430_v55 = vcombine.low %v578_v58, %v579_v19  ;;  %v3692_v40 = vld [vmem:[%s5414_s16 + $0xf0] sm:$0xff]  ;;  %v7277_v62 = vshrl.u32 %v6307_v20, 16  ;;  %v4377_v19 = vcombine.low %v578_v58, %v578_v58 }
 0x125   : > { %5036 = vmatpush3.bf16.msra.mxu1 %v5281_v18  ;;  %5084 = vmatpush3.bf16.msra.mxu0 %v5282_v45  ;;  %v7284_v58 = vshrl.u32 %v6430_v55, 16 }
 0x126   : > { %5037 = vmatprep.subr.bf16.mxu1 %v5283_v59  ;;  %5085 = vmatprep.subr.bf16.mxu0 %v5284_v14 }
 0x127   : > { %4958 = vmatmul.mubr.bf16.gmra.mxu1 %v6070_v57  ;;  %5006 = vmatmul.mubr.bf16.gmra.mxu0 %v2346_v27  ;;  %v7280_v57 = vshll.u32 %v5911_v25, 16 }
 0x128   : > { %4961 = vmatprep.mubr.bf16.mxu1 %v2346_v27  ;;  %5009 = vmatprep.mubr.bf16.mxu0 %v2354_v36 }
 0x129   : > { %5038 = vmatpush3.bf16.msra.mxu1 %v5283_v59  ;;  %5086 = vmatpush3.bf16.msra.mxu0 %v5284_v14  ;;  %v2377_v9 = vrot.slane %v7280_v57, 1  ;;  %v7275_v14 = vshll.u32 %v6307_v20, 16 }
 0x12a   : > { %5039 = vmatprep.subr.bf16.mxu1 %v5288_v15  ;;  %5087 = vmatprep.subr.bf16.mxu0 %v5289_v43 }
 0x12b   : > { %3826 = vperm.xlu0 %5178, %v3688_v13   ;;  %3831 = vperm.xlu1 %5179, %v3689_v46   ;;  %v2381_v50 = vor.u32 %v7281_v49, %v2377_v9  ;;  %v2378_v27 = vsel %vm2270_vm3, %v2373_v0, %v2377_v9  ;;  %v7279_v13 = vshll.u32 %v6430_v55, 16  ;;  %v2393_v29 = vrot.slane %v7275_v14, 1 }
 0x12d   : > { %5040 = vmatpush3.bf16.msra.mxu1 %v5288_v15  ;;  %5088 = vmatpush3.bf16.msra.mxu0 %v5289_v43  ;;  %v2386_v16 = vsel %vm2270_vm3, %v2381_v50, %v2385_v21  ;;  %v2397_v0 = vor.u32 %v7277_v62, %v2393_v29 }
 0x12f   : > { %v6414_v52 = vpop.f32.mrf.mxu0  ;;  %v6416_v33 = vpop.f32.mrf.mxu1  ;;  %4962 = vmatmul.mubr.bf16.gmra.mxu1 %v2354_v36  ;;  %5010 = vmatmul.mubr.bf16.gmra.mxu0 %v2362_v8  ;;  %v7278_v36 = vshrl.u32 %v5917_v26, 16 }
 0x130   : > { %4965 = vmatprep.mubr.bf16.mxu1 %v2362_v8  ;;  %5013 = vmatprep.mubr.bf16.mxu0 %v2370_v41 }
 0x131   : > { %v6422_v18 = vpop.f32.mrf.mxu0  ;;  %v6424_v45 = vpop.f32.mrf.mxu1  ;;  %3836 = vperm.xlu0 %5178, %v3690_v34   ;;  %3841 = vperm.xlu1 %5179, %v3691_v1   ;;  %v2389_v8 = vor.u32 %v7278_v36, %v2385_v21  ;;  %v6457_v34 = vld [vmem:[%s5509_s8 + $0x98] ss:$0 sps:$4 sm:$0xff]   ;;  %v2399_v21 = vshll.u32 %v4377_v19, 16 }
 0x133   : > { %v6434_v56 = vpop.f32.mrf.mxu0  ;;  %v6436_v59 = vpop.f32.mrf.mxu1 }
 0x135   : > { %v6441_v15 = vpop.f32.mrf.mxu0  ;;  %v6443_v43 = vpop.f32.mrf.mxu1  ;;  %3846 = vperm.xlu0 %5178, %v3692_v40   ;;  %3851 = vperm.xlu1 %5179, %v3693_v31   ;;  %v2394_v31 = vsel %vm2270_vm3, %v2389_v8, %v2393_v29  ;;  %v2401_v29 = vrot.slane %v2399_v21, 1 }
 0x137   : > { %v6448_v46 = vpop.f32.mrf.mxu0  ;;  %v6450_v24 = vpop.f32.mrf.mxu1  ;;  %4966 = vmatmul.mubr.bf16.gmra.mxu1 %v2370_v41  ;;  %5014 = vmatmul.mubr.bf16.gmra.mxu0 %v2378_v27  ;;  %v2686_v41 = vrot.slane %v7279_v13, 1 }
 0x138   : > { %4969 = vmatprep.mubr.bf16.mxu1 %v2378_v27  ;;  %5017 = vmatprep.mubr.bf16.mxu0 %v2386_v16  ;;  %v7285_v27 = vshll.u32 %v6457_v34, 16 }
 0x139   : > { %v6459_v1 = vpop.f32.mrf.mxu0  ;;  %v6461_v9 = vpop.f32.mrf.mxu1  ;;  %v2687_v62 = vsel %vm2270_vm3, %v2397_v0, %v2686_v41  ;;  %v2690_v8 = vor.u32 %v7284_v58, %v2686_v41 }
 0x13a   : > { %v2694_v19 = vrot.slane %v7285_v27, 1 }
 0x13b   : > { %v6467_v50 = vpop.f32.mrf.mxu0  ;;  %v6469_v40 = vpop.f32.mrf.mxu1 }
 0x13d   : > { %v6474_v14 = vpop.f32.mrf.mxu0  ;;  %v6476_v30 = vpop.f32.mrf.mxu1 }
 0x13f   : > { %v6479_v36 = vpop.f32.mrf.mxu0  ;;  %v6481_v13 = vpop.f32.mrf.mxu1  ;;  %4970 = vmatmul.mubr.bf16.gmra.mxu1 %v2386_v16  ;;  %5018 = vmatmul.mubr.bf16.gmra.mxu0 %v2394_v31  ;;  %v2402_v16 = vsel %vm2270_vm3, %v2397_v0, %v2401_v29 }
 0x140   : > { %4973 = vmatprep.mubr.bf16.mxu1 %v2394_v31  ;;  %5021 = vmatprep.mubr.bf16.mxu0 %v2687_v62  ;;  %v2695_v31 = vsel %vm2270_vm3, %v2690_v8, %v2694_v19 }
 0x141   : > { %v6487_v57 = vpop.f32.mrf.mxu0  ;;  %v6489_v49 = vpop.f32.mrf.mxu1 }
 0x143   : > { %v6491_v10 = vpop.f32.mrf.mxu0  ;;  %v6493_v12 = vpop.f32.mrf.mxu1 }
 0x145   : > { %v6497_v62 = vpop.f32.mrf.mxu0  ;;  %v6499_v21 = vpop.f32.mrf.mxu1 }
 0x147   : > { %v6501_v41 = vpop.f32.mrf.mxu0  ;;  %v6503_v58 = vpop.f32.mrf.mxu1  ;;  %4974 = vmatmul.mubr.bf16.gmra.mxu1 %v2402_v16  ;;  %5022 = vmatmul.mubr.bf16.gmra.mxu0 %v2695_v31 }
 0x148   : > { %7323 = vst [vmem:[#allocation7_spill] sm:$0xff] %v6503_v58  ;;  %5041 = vmatprep.mubr.bf16.mxu1 %v6130_v48  ;;  %5089 = vmatprep.mubr.bf16.mxu0 %v6133_v38 }
 0x149   : > { %v6507_v27 = vpop.f32.mrf.mxu0  ;;  %v6509_v39 = vpop.f32.mrf.mxu1 }
 0x14a   : > { %7324 = vst [vmem:[#allocation8_spill] sm:$0xff] %v6509_v39 }
 0x14b   : > { %v6511_v0 = vpop.f32.mrf.mxu0  ;;  %v6513_v29 = vpop.f32.mrf.mxu1 }
 0x14c   : > { %7325 = vst [vmem:[#allocation11_spill] sm:$0xff] %v6513_v29 }
 0x14d   : > { %v6515_v8 = vpop.f32.mrf.mxu0  ;;  %v6517_v19 = vpop.f32.mrf.mxu1 }
 0x14e   : > { %7326 = vst [vmem:[#allocation12_spill] sm:$0xff] %v6517_v19 }
 0x14f   : > { %v4755_v61 = vpop.f32.mrf.mxu1  ;;  %v4803_v42 = vpop.f32.mrf.mxu0  ;;  %5042 = vmatmul.mubr.bf16.vlgmr.msra.gmra.mxu1 %v6142_v47  ;;  %5090 = vmatmul.mubr.bf16.vlgmr.msra.gmra.mxu0 %v6145_v53 }
 0x150   : > { %v1216_v48 = vadd.f32 %v4755_v61, %v6414_v52  ;;  %5045 = vmatprep.mubr.bf16.mxu1 %v6170_v17  ;;  %5093 = vmatprep.mubr.bf16.mxu0 %v6173_v28 }
 0x151   : > { %v1207_v38 = vpop.f32.mrf.mxu1  ;;  %v1517_v16 = vpop.f32.mrf.mxu0 }
 0x152   : > { %v6524_v31 = vadd.f32 %v4803_v42, %v1216_v48  ;;  %v1208_v22 = vadd.f32 %v1207_v38, %v6422_v18 }
 0x153   : > { %v4756_v51 = vpop.f32.mrf.mxu1  ;;  %v4804_v19 = vpop.f32.mrf.mxu0 }
 0x154   : > { %v6527_v29 = vadd.f32 %v1517_v16, %v1208_v22  ;;  %v1219_v47 = vadd.f32 %v4756_v51, %v6434_v56 }
 0x155   : > { %v1210_v39 = vpop.f32.mrf.mxu1  ;;  %v1520_v53 = vpop.f32.mrf.mxu0 }
 0x156   : > { %v6530_v58 = vadd.f32 %v4804_v19, %v1219_v47  ;;  %v1211_v17 = vadd.f32 %v1210_v39, %v6441_v15 }
 0x157   : > { %v4759_v61 = vpop.f32.mrf.mxu1  ;;  %v4807_v28 = vpop.f32.mrf.mxu0  ;;  %5046 = vmatmul.mubr.bf16.gmra.mxu1 %v6182_v7  ;;  %5094 = vmatmul.mubr.bf16.gmra.mxu0 %v6185_v3 }
 0x158   : > { %v6535_v42 = vadd.f32 %v1520_v53, %v1211_v17  ;;  %v1232_v52 = vadd.f32 %v4759_v61, %v6448_v46  ;;  %5049 = vmatprep.mubr.bf16.mxu1 %v6208_v2  ;;  %5097 = vmatprep.mubr.bf16.mxu0 %v6211_v44  ;;  %v7327_v46 = vshrl.u32 %v7322_v35, 16  ;;  %v7328_v2 = vshll.u32 %v7322_v35, 16 }
 0x159   : > { %v1223_v22 = vpop.f32.mrf.mxu1  ;;  %v1533_v51 = vpop.f32.mrf.mxu0  ;;  %v2972_v61 = vrot.slane %v7320_v5, 1 }
 0x15a   : > { %v6540_v18 = vadd.f32 %v4807_v28, %v1232_v52  ;;  %v1224_v39 = vadd.f32 %v1223_v22, %v6459_v1  ;;  %v3300_v38 = vrot.slane %v7327_v46, 1  ;;  %v3301_v44 = vrot.slane %v7328_v2, 2 }
 0x15b   : > { %v4760_v56 = vpop.f32.mrf.mxu1  ;;  %v4808_v15 = vpop.f32.mrf.mxu0 }
 0x15c   : > { %v6543_v19 = vadd.f32 %v1533_v51, %v1224_v39  ;;  %v1235_v7 = vadd.f32 %v4760_v56, %v6467_v50  ;;  %v3302_v22 = vor.u32 %v3301_v44, %v3300_v38  ;;  %v7329_v56 = vshrl.u32 %v5889_v54, 16 }
 0x15d   : > { %v1226_v3 = vpop.f32.mrf.mxu1  ;;  %v1536_v48 = vpop.f32.mrf.mxu0  ;;  %v7332_v38 = vshrl.u32 %v5899_v37, 16  ;;  %v7333_v44 = vshll.u32 %v5899_v37, 16 }
 0x15e   : > { %v6550_v16 = vadd.f32 %v4808_v15, %v1235_v7  ;;  %v1227_v47 = vadd.f32 %v1226_v3, %v6474_v14  ;;  %v2974_v14 = vrot.slane %v7322_v35, 1  ;;  %v7331_v7 = vrot.slane %v7302_v63, 1 }
 0x15f   : > { %v4763_v53 = vpop.f32.mrf.mxu1  ;;  %v4811_v1 = vpop.f32.mrf.mxu0  ;;  %5050 = vmatmul.mubr.bf16.gmra.mxu1 %v6220_v6  ;;  %5098 = vmatmul.mubr.bf16.gmra.mxu0 %v6223_v4  ;;  %v3303_v46 = vsel %vm3264_vm5, %v6249_v23, %v3302_v22  ;;  %v3308_v2 = vrot.slane %v7332_v38, 1 }
 0x160   : > { %v6555_v17 = vadd.f32 %v1536_v48, %v1227_v47  ;;  %v1248_v50 = vadd.f32 %v4763_v53, %v6479_v36  ;;  %5053 = vmatprep.mubr.bf16.mxu1 %v6254_v32  ;;  %5101 = vmatprep.mubr.bf16.mxu0 %v6257_v11  ;;  %v3304_v36 = vrot.slane %v7329_v56, 1  ;;  %v7330_v32 = vshll.u32 %v5889_v54, 16 }
 0x161   : > { %v1239_v28 = vpop.f32.mrf.mxu1  ;;  %v1549_v52 = vpop.f32.mrf.mxu0  ;;  %v2973_v35 = vsel %vm2956_vm4, %v7331_v7, %v2972_v61  ;;  %v3309_v47 = vrot.slane %v7333_v44, 2 }
 0x162   : > { %v6562_v51 = vadd.f32 %v4811_v1, %v1248_v50  ;;  %v1240_v6 = vadd.f32 %v1239_v28, %v6487_v57  ;;  %v3305_v15 = vrot.slane %v7330_v32, 2  ;;  %v2975_v57 = vsel %vm2956_vm4, %v2972_v61, %v2974_v14 }
 0x163   : > { %v4764_v4 = vpop.f32.mrf.mxu1  ;;  %v4812_v39 = vpop.f32.mrf.mxu0  ;;  %v2976_v50 = vrot.slane %v5889_v54, 1 }
 0x164   : > { %v6569_v11 = vadd.f32 %v1549_v52, %v1240_v6  ;;  %v1251_v5 = vadd.f32 %v4764_v4, %v6491_v10  ;;  %v3306_v61 = vor.u32 %v3305_v15, %v3304_v36  ;;  %v2978_v4 = vrot.slane %v5899_v37, 1 }
 0x165   : > { %v1242_v3 = vpop.f32.mrf.mxu1  ;;  %v1552_v48 = vpop.f32.mrf.mxu0  ;;  %v2977_v54 = vsel %vm2956_vm4, %v2974_v14, %v2976_v50  ;;  %v7335_v37 = vshll.u32 %v5911_v25, 16  ;;  %v7336_v14 = vshrl.u32 %v5917_v26, 16 }
 0x166   : > { %v6582_v53 = vadd.f32 %v4812_v39, %v1251_v5  ;;  %v1243_v10 = vadd.f32 %v1242_v3, %v6497_v62  ;;  %v3310_v39 = vor.u32 %v3309_v47, %v3308_v2  ;;  %v3307_v36 = vsel %vm3264_vm5, %v3302_v22, %v3306_v61 }
 0x167   : > { %v4767_v63 = vpop.f32.mrf.mxu1  ;;  %v4815_v1 = vpop.f32.mrf.mxu0  ;;  %5054 = vmatmul.mubr.bf16.gmra.mxu1 %v2973_v35  ;;  %5102 = vmatmul.mubr.bf16.gmra.mxu0 %v6267_v60  ;;  %v7334_v5 = vshrl.u32 %v5911_v25, 16  ;;  %v3313_v35 = vrot.slane %v7335_v37, 2  ;;  %v7337_v22 = vshll.u32 %v5917_v26, 16 }
 0x168   : > { %v6587_v28 = vadd.f32 %v1552_v48, %v1243_v10  ;;  %v1264_v23 = vadd.f32 %v4767_v63, %v6501_v41  ;;  %5057 = vmatprep.mubr.bf16.mxu1 %v2975_v57  ;;  %5105 = vmatprep.mubr.bf16.mxu0 %v3303_v46  ;;  %v3311_v57 = vsel %vm3264_vm5, %v3306_v61, %v3310_v39  ;;  %v3316_v46 = vrot.slane %v7336_v14, 1 }
 0x169   : > { %v1255_v52 = vpop.f32.mrf.mxu1  ;;  %v1565_v6 = vpop.f32.mrf.mxu0  ;;  %v3312_v7 = vrot.slane %v7334_v5, 1  ;;  %v3317_v38 = vrot.slane %v7337_v22, 2 }
 0x16a   : > { %v6591_v62 = vadd.f32 %v4815_v1, %v1264_v23  ;;  %v1256_v56 = vadd.f32 %v1255_v52, %v6507_v27  ;;  %v2979_v27 = vsel %vm2956_vm4, %v2976_v50, %v2978_v4  ;;  %v2980_v1 = vrot.slane %v5911_v25, 1 }
 0x16b   : > { %v4768_v32 = vpop.f32.mrf.mxu1  ;;  %v4816_v60 = vpop.f32.mrf.mxu0  ;;  %v3314_v50 = vor.u32 %v3313_v35, %v3312_v7  ;;  %v2982_v52 = vrot.slane %v5917_v26, 1 }
 0x16c   : > { %v6596_v15 = vadd.f32 %v1565_v6, %v1256_v56  ;;  %v1267_v41 = vadd.f32 %v4768_v32, %v6511_v0  ;;  %v3318_v6 = vor.u32 %v3317_v38, %v3316_v46  ;;  %v2981_v7 = vsel %vm2956_vm4, %v2978_v4, %v2980_v1 }
 0x16d   : > { %v1258_v3 = vpop.f32.mrf.mxu1  ;;  %v1568_v48 = vpop.f32.mrf.mxu0  ;;  %v3315_v26 = vsel %vm3264_vm5, %v3310_v39, %v3314_v50  ;;  %v2984_v39 = vrot.slane %v6307_v20, 1 }
 0x16e   : > { %v6609_v2 = vadd.f32 %v4816_v60, %v1267_v41  ;;  %v1259_v0 = vadd.f32 %v1258_v3, %v6515_v8  ;;  %v3319_v3 = vsel %vm3264_vm5, %v3314_v50, %v3318_v6  ;;  %v2986_v50 = vrot.slane %v6430_v55, 1 }
 0x16f   : > { %v4771_v44 = vpop.f32.mrf.mxu1  ;;  %v4819_v47 = vpop.f32.mrf.mxu0  ;;  %5058 = vmatmul.mubr.bf16.gmra.mxu1 %v2977_v54  ;;  %5106 = vmatmul.mubr.bf16.gmra.mxu0 %v3307_v36  ;;  %v7338_v54 = vshrl.u32 %v6307_v20, 16 }
 0x170   : > { %v6612_v10 = vadd.f32 %v1568_v48, %v1259_v0  ;;  %v1280_v63 = vadd.f32 %v4771_v44, %v6416_v33  ;;  %5061 = vmatprep.mubr.bf16.mxu1 %v2979_v27  ;;  %5109 = vmatprep.mubr.bf16.mxu0 %v3311_v57  ;;  %v7339_v33 = vshll.u32 %v6307_v20, 16  ;;  %v7340_v48 = vshrl.u32 %v6430_v55, 16 }
 0x171   : > { %v1271_v61 = vpop.f32.mrf.mxu1  ;;  %v1581_v23 = vpop.f32.mrf.mxu0  ;;  %v3320_v36 = vrot.slane %v7338_v54, 1  ;;  %v7341_v57 = vshll.u32 %v6430_v55, 16 }
 0x172   : > { %v6617_v56 = vadd.f32 %v4819_v47, %v1280_v63  ;;  %v1272_v8 = vadd.f32 %v1271_v61, %v6424_v45  ;;  %v3321_v41 = vrot.slane %v7339_v33, 2  ;;  %v2983_v45 = vsel %vm2956_vm4, %v2980_v1, %v2982_v52 }
 0x173   : > { %v4772_v32 = vpop.f32.mrf.mxu1  ;;  %v4820_v60 = vpop.f32.mrf.mxu0  ;;  %v3324_v27 = vrot.slane %v7340_v48, 1  ;;  %v3325_v14 = vrot.slane %v7341_v57, 2  ;;  %v3328_v47 = vshrl.u32 %v6457_v34, 16  ;;  %v7342_v33 = vshll.u32 %v6457_v34, 16 }
 0x174   : > { %v6624_v5 = vadd.f32 %v1581_v23, %v1272_v8  ;;  %v1283_v25 = vadd.f32 %v4772_v32, %v6436_v59  ;;  %v3322_v38 = vor.u32 %v3321_v41, %v3320_v36  ;;  %v2985_v32 = vsel %vm2956_vm4, %v2982_v52, %v2984_v39 }
 0x175   : > { %v1274_v37 = vpop.f32.mrf.mxu1  ;;  %v1584_v35 = vpop.f32.mrf.mxu0  ;;  %v3330_v36 = vrot.slane %v3328_v47, 1  ;;  %v3331_v41 = vrot.slane %v7342_v33, 2  ;;  %v7345_v33 = vld [vmem:[#allocation11_spill] sm:$0xff] }
 0x176   : > { %v6635_v46 = vadd.f32 %v4820_v60, %v1283_v25  ;;  %v1275_v59 = vadd.f32 %v1274_v37, %v6443_v43  ;;  %v3326_v43 = vor.u32 %v3325_v14, %v3324_v27  ;;  %v3323_v60 = vsel %vm3264_vm5, %v3318_v6, %v3322_v38 }
 0x177   : > { %v4775_v22 = vpop.f32.mrf.mxu1  ;;  %v4823_v4 = vpop.f32.mrf.mxu0  ;;  %5062 = vmatmul.mubr.bf16.gmra.mxu1 %v2981_v7  ;;  %5110 = vmatmul.mubr.bf16.gmra.mxu0 %v3315_v26  ;;  %v2987_v7 = vsel %vm2956_vm4, %v2984_v39, %v2986_v50 }
 0x178   : > { %v6639_v0 = vadd.f32 %v1584_v35, %v1275_v59  ;;  %v1296_v44 = vadd.f32 %v4775_v22, %v6450_v24  ;;  %5065 = vmatprep.mubr.bf16.mxu1 %v2983_v45  ;;  %5113 = vmatprep.mubr.bf16.mxu0 %v3319_v3  ;;  %v2988_v45 = vrot.slane %v6457_v34, 1  ;;  %v3332_v3 = vor.u32 %v3331_v41, %v3330_v36 }
 0x179   : > { %v1287_v63 = vpop.f32.mrf.mxu1  ;;  %v1597_v1 = vpop.f32.mrf.mxu0 }
 0x17a   : > { %v6644_v61 = vadd.f32 %v4823_v4, %v1296_v44  ;;  %v1288_v23 = vadd.f32 %v1287_v63, %v6461_v9  ;;  %v3327_v9 = vsel %vm3264_vm5, %v3322_v38, %v3326_v43  ;;  %v2989_v39 = vsel %vm2956_vm4, %v2986_v50, %v2988_v45  ;;  %v7344_v50 = vld [vmem:[#allocation8_spill] sm:$0xff] }
 0x17b   : > { %v4776_v8 = vpop.f32.mrf.mxu1  ;;  %v4824_v20 = vpop.f32.mrf.mxu0 }
 0x17c   : > { %v6649_v24 = vadd.f32 %v1597_v1, %v1288_v23  ;;  %v1299_v54 = vadd.f32 %v4776_v8, %v6469_v40  ;;  %v7343_v23 = vld [vmem:[#allocation7_spill] sm:$0xff] }
 0x17d   : > { %v1290_v55 = vpop.f32.mrf.mxu1  ;;  %v1600_v25 = vpop.f32.mrf.mxu0 }
 0x17e   : > { %v6656_v26 = vadd.f32 %v4824_v20, %v1299_v54  ;;  %v1291_v52 = vadd.f32 %v1290_v55, %v6476_v30 }
 0x17f   : > { %v4779_v37 = vpop.f32.mrf.mxu1  ;;  %v4827_v6 = vpop.f32.mrf.mxu0  ;;  %5066 = vmatmul.mubr.bf16.gmra.mxu1 %v2985_v32  ;;  %5114 = vmatmul.mubr.bf16.gmra.mxu0 %v3323_v60 }
 0x180   : > { %v6659_v35 = vadd.f32 %v1600_v25, %v1291_v52  ;;  %v1312_v40 = vadd.f32 %v4779_v37, %v6481_v13  ;;  %5069 = vmatprep.mubr.bf16.mxu1 %v2987_v7  ;;  %5117 = vmatprep.mubr.bf16.mxu0 %v3327_v9  ;;  %v3333_v13 = vsel %vm3264_vm5, %v3326_v43, %v3332_v3  ;;  %v7346_v7 = vld [vmem:[#allocation12_spill] sm:$0xff] }
 0x181   : > { %v1303_v48 = vpop.f32.mrf.mxu1  ;;  %v1613_v27 = vpop.f32.mrf.mxu0 }
 0x182   : > { %v6663_v57 = vadd.f32 %v4827_v6, %v1312_v40  ;;  %v1304_v14 = vadd.f32 %v1303_v48, %v6489_v49 }
 0x183   : > { %v4780_v30 = vpop.f32.mrf.mxu1  ;;  %v4828_v59 = vpop.f32.mrf.mxu0 }
 0x184   : > { %v6666_v22 = vadd.f32 %v1613_v27, %v1304_v14  ;;  %v1315_v4 = vadd.f32 %v4780_v30, %v6493_v12 }
 0x185   : > { %v1306_v38 = vpop.f32.mrf.mxu1  ;;  %v1616_v44 = vpop.f32.mrf.mxu0 }
 0x186   : > { %v6671_v34 = vadd.f32 %v4828_v59, %v1315_v4  ;;  %v1307_v47 = vadd.f32 %v1306_v38, %v6499_v21 }
 0x187   : > { %v4783_v63 = vpop.f32.mrf.mxu1  ;;  %v4831_v1 = vpop.f32.mrf.mxu0  ;;  %5070 = vmatmul.mubr.bf16.gmra.mxu1 %v2989_v39  ;;  %5118 = vmatmul.mubr.bf16.gmra.mxu0 %v3333_v13 }
 0x188   : > { %v6674_v49 = vadd.f32 %v1616_v44, %v1307_v47  ;;  %v1328_v8 = vadd.f32 %v4783_v63, %v7343_v23 }
 0x189   : > { %v1319_v20 = vpop.f32.mrf.mxu1  ;;  %v1629_v12 = vpop.f32.mrf.mxu0 }
 0x18a   : > { %v6677_v32 = vadd.f32 %v4831_v1, %v1328_v8  ;;  %v1320_v43 = vadd.f32 %v1319_v20, %v7344_v50 }
 0x18b   : > { %v4784_v60 = vpop.f32.mrf.mxu1  ;;  %v4832_v54 = vpop.f32.mrf.mxu0 }
 0x18c   : > { %v6680_v36 = vadd.f32 %v1629_v12, %v1320_v43  ;;  %v1331_v21 = vadd.f32 %v4784_v60, %v7345_v33 }
 0x18d   : > { %v1322_v41 = vpop.f32.mrf.mxu1  ;;  %v1632_v55 = vpop.f32.mrf.mxu0 }
 0x18e   : > { %v6683_v25 = vadd.f32 %v4832_v54, %v1331_v21  ;;  %v1323_v9 = vadd.f32 %v1322_v41, %v7346_v7 }
 0x18f   : > { %v4851_v52 = vpop.f32.mrf.mxu1  ;;  %v4899_v37 = vpop.f32.mrf.mxu0 }
 0x190   : > { %v6686_v6 = vadd.f32 %v1632_v55, %v1323_v9  ;;  %v1930_v40 = vadd.f32 %v4851_v52, %v6524_v31 }
 0x191   : > { %v1801_v45 = vpop.f32.mrf.mxu1  ;;  %v2091_v3 = vpop.f32.mrf.mxu0 }
 0x192   : > { %v6689_v48 = vadd.f32 %v4899_v37, %v1930_v40  ;;  %v1928_v27 = vadd.f32 %v1801_v45, %v6527_v29 }
 0x193   : > { %v4852_v14 = vpop.f32.mrf.mxu1  ;;  %v4900_v30 = vpop.f32.mrf.mxu0 }
 0x194   : > { %v6692_v59 = vadd.f32 %v2091_v3, %v1928_v27  ;;  %v1931_v4 = vadd.f32 %v4852_v14, %v6530_v58 }
 0x195   : > { %v1804_v39 = vpop.f32.mrf.mxu1  ;;  %v2094_v13 = vpop.f32.mrf.mxu0 }
 0x196   : > { %v6695_v38 = vadd.f32 %v4900_v30, %v1931_v4  ;;  %v1929_v44 = vadd.f32 %v1804_v39, %v6535_v42 }
 0x197   : > { %v4855_v47 = vpop.f32.mrf.mxu1  ;;  %v4903_v31 = vpop.f32.mrf.mxu0 }
 0x198   : > { %v6698_v63 = vadd.f32 %v2094_v13, %v1929_v44  ;;  %v1934_v1 = vadd.f32 %v4855_v47, %v6540_v18 }
 0x199   : > { %v1817_v23 = vpop.f32.mrf.mxu1  ;;  %v2107_v29 = vpop.f32.mrf.mxu0 }
 0x19a   : > { %v6701_v8 = vadd.f32 %v4903_v31, %v1934_v1  ;;  %v1932_v20 = vadd.f32 %v1817_v23, %v6543_v19 }
 0x19b   : > { %v4856_v12 = vpop.f32.mrf.mxu1  ;;  %v4904_v58 = vpop.f32.mrf.mxu0 }
 0x19c   : > { %v6704_v50 = vadd.f32 %v2107_v29, %v1932_v20  ;;  %v1935_v43 = vadd.f32 %v4856_v12, %v6550_v16 }
 0x19d   : > { %v1820_v60 = vpop.f32.mrf.mxu1  ;;  %v2110_v42 = vpop.f32.mrf.mxu0 }
 0x19e   : > { %v6707_v54 = vadd.f32 %v4904_v58, %v1935_v43  ;;  %v1933_v33 = vadd.f32 %v1820_v60, %v6555_v17 }
 0x19f   : > { %v4859_v21 = vpop.f32.mrf.mxu1  ;;  %v4907_v18 = vpop.f32.mrf.mxu0 }
 0x1a0   : > { %v6710_v41 = vadd.f32 %v2110_v42, %v1933_v33  ;;  %v1938_v55 = vadd.f32 %v4859_v21, %v6562_v51 }
 0x1a1   : > { %v1833_v7 = vpop.f32.mrf.mxu1  ;;  %v2123_v19 = vpop.f32.mrf.mxu0 }
 0x1a2   : > { %v6713_v9 = vadd.f32 %v4907_v18, %v1938_v55  ;;  %v1936_v52 = vadd.f32 %v1833_v7, %v6569_v11 }
 0x1a3   : > { %v4860_v37 = vpop.f32.mrf.mxu1  ;;  %v4908_v16 = vpop.f32.mrf.mxu0 }
 0x1a4   : > { %v6716_v40 = vadd.f32 %v2123_v19, %v1936_v52  ;;  %v1939_v45 = vadd.f32 %v4860_v37, %v6582_v53 }
 0x1a5   : > { %v1836_v3 = vpop.f32.mrf.mxu1  ;;  %v2126_v17 = vpop.f32.mrf.mxu0 }
 0x1a6   : > { %v6719_v27 = vadd.f32 %v4908_v16, %v1939_v45  ;;  %v1937_v14 = vadd.f32 %v1836_v3, %v6587_v28 }
 0x1a7   : > { %v4863_v30 = vpop.f32.mrf.mxu1  ;;  %v4911_v51 = vpop.f32.mrf.mxu0 }
 0x1a8   : > { %v6722_v4 = vadd.f32 %v2126_v17, %v1937_v14  ;;  %v1942_v39 = vadd.f32 %v4863_v30, %v6591_v62 }
 0x1a9   : > { %v1849_v13 = vpop.f32.mrf.mxu1  ;;  %v2139_v11 = vpop.f32.mrf.mxu0 }
 0x1aa   : > { %v6725_v44 = vadd.f32 %v4911_v51, %v1942_v39  ;;  %v1940_v47 = vadd.f32 %v1849_v13, %v6596_v15 }
 0x1ab   : > { %v4864_v31 = vpop.f32.mrf.mxu1  ;;  %v4912_v53 = vpop.f32.mrf.mxu0 }
 0x1ac   : > { %v6728_v1 = vadd.f32 %v2139_v11, %v1940_v47  ;;  %v1943_v23 = vadd.f32 %v4864_v31, %v6609_v2 }
 0x1ad   : > { %v1852_v29 = vpop.f32.mrf.mxu1  ;;  %v2142_v28 = vpop.f32.mrf.mxu0 }
 0x1ae   : > { %v6731_v20 = vadd.f32 %v4912_v53, %v1943_v23  ;;  %v1941_v12 = vadd.f32 %v1852_v29, %v6612_v10 }
 0x1af   : > { %v4867_v58 = vpop.f32.mrf.mxu1  ;;  %v4915_v62 = vpop.f32.mrf.mxu0 }
 0x1b0   : > { %v6734_v43 = vadd.f32 %v2142_v28, %v1941_v12  ;;  %v1946_v60 = vadd.f32 %v4867_v58, %v6617_v56 }
 0x1b1   : > { %v1865_v42 = vpop.f32.mrf.mxu1  ;;  %v2155_v15 = vpop.f32.mrf.mxu0 }
 0x1b2   : > { %v6737_v33 = vadd.f32 %v4915_v62, %v1946_v60  ;;  %v1944_v21 = vadd.f32 %v1865_v42, %v6624_v5 }
 0x1b3   : > { %v4868_v18 = vpop.f32.mrf.mxu1  ;;  %v4916_v2 = vpop.f32.mrf.mxu0 }
 0x1b4   : > { %v6740_v55 = vadd.f32 %v2155_v15, %v1944_v21  ;;  %v1947_v7 = vadd.f32 %v4868_v18, %v6635_v46 }
 0x1b5   : > { %v1868_v19 = vpop.f32.mrf.mxu1  ;;  %v2158_v10 = vpop.f32.mrf.mxu0 }
 0x1b6   : > { %v6743_v52 = vadd.f32 %v4916_v2, %v1947_v7  ;;  %v1945_v37 = vadd.f32 %v1868_v19, %v6639_v0 }
 0x1b7   : > { %v4871_v16 = vpop.f32.mrf.mxu1  ;;  %v4919_v56 = vpop.f32.mrf.mxu0 }
 0x1b8   : > { %7347 = vst [vmem:[#allocation9_spill] sm:$0xff] %v6743_v52  ;;  %v6746_v45 = vadd.f32 %v2158_v10, %v1945_v37  ;;  %v1950_v3 = vadd.f32 %v4871_v16, %v6644_v61 }
 0x1b9   : > { %v1881_v17 = vpop.f32.mrf.mxu1  ;;  %v2171_v5 = vpop.f32.mrf.mxu0 }
 0x1ba   : > { %7348 = vst [vmem:[#allocation10_spill] sm:$0xff] %v6746_v45  ;;  %v6749_v14 = vadd.f32 %v4919_v56, %v1950_v3  ;;  %v1948_v30 = vadd.f32 %v1881_v17, %v6649_v24  ;;  %v6872_v45 = vpop.permute.xlu0 %3696 }
 0x1bb   : > { %v4872_v51 = vpop.f32.mrf.mxu1  ;;  %v4920_v46 = vpop.f32.mrf.mxu0 }
 0x1bc   : > { %7349 = vst [vmem:[#allocation7_spill] sm:$0xff] %v6749_v14  ;;  %v6752_v39 = vadd.f32 %v2171_v5, %v1948_v30  ;;  %v1951_v13 = vadd.f32 %v4872_v51, %v6656_v26 }
 0x1bd   : > { %v1884_v11 = vpop.f32.mrf.mxu1  ;;  %v2174_v0 = vpop.f32.mrf.mxu0 }
 0x1be   : > { %7350 = vst [vmem:[#allocation8_spill] sm:$0xff] %v6752_v39  ;;  %v6755_v47 = vadd.f32 %v4920_v46, %v1951_v13  ;;  %v1949_v31 = vadd.f32 %v1884_v11, %v6659_v35 }
 0x1bf   : > { %v4875_v53 = vpop.f32.mrf.mxu1  ;;  %v4923_v61 = vpop.f32.mrf.mxu0 }
 0x1c0   : > { %7351 = vst [vmem:[#allocation11_spill] sm:$0xff] %v6755_v47  ;;  %v6758_v23 = vadd.f32 %v2174_v0, %v1949_v31  ;;  %v1954_v29 = vadd.f32 %v4875_v53, %v6663_v57 }
 0x1c1   : > { %v1897_v28 = vpop.f32.mrf.mxu1  ;;  %v2187_v24 = vpop.f32.mrf.mxu0 }
 0x1c2   : > { %7352 = vst [vmem:[#allocation12_spill] sm:$0xff] %v6758_v23  ;;  %v6761_v12 = vadd.f32 %v4923_v61, %v1954_v29  ;;  %v1952_v58 = vadd.f32 %v1897_v28, %v6666_v22 }
 0x1c3   : > { %v4876_v62 = vpop.f32.mrf.mxu1  ;;  %v4924_v26 = vpop.f32.mrf.mxu0 }
 0x1c4   : > { %7353 = vst [vmem:[#allocation13_spill] sm:$0xff] %v6761_v12  ;;  %v6764_v60 = vadd.f32 %v2187_v24, %v1952_v58  ;;  %v1955_v42 = vadd.f32 %v4876_v62, %v6671_v34 }
 0x1c5   : > { %v1900_v15 = vpop.f32.mrf.mxu1  ;;  %v2190_v35 = vpop.f32.mrf.mxu0 }
 0x1c6   : > { %7354 = vst [vmem:[#allocation14_spill] sm:$0xff] %v6764_v60  ;;  %v6767_v21 = vadd.f32 %v4924_v26, %v1955_v42  ;;  %v1953_v18 = vadd.f32 %v1900_v15, %v6674_v49 }
 0x1c7   : > { %v4879_v2 = vpop.f32.mrf.mxu1  ;;  %v4927_v57 = vpop.f32.mrf.mxu0 }
 0x1c8   : > { %7355 = vst [vmem:[#allocation15_spill] sm:$0xff] %v6767_v21  ;;  %v6770_v7 = vadd.f32 %v2190_v35, %v1953_v18  ;;  %v1958_v19 = vadd.f32 %v4879_v2, %v6677_v32 }
 0x1c9   : > { %v1913_v10 = vpop.f32.mrf.mxu1  ;;  %v2203_v22 = vpop.f32.mrf.mxu0 }
 0x1ca   : > { %7356 = vst [vmem:[#allocation16_spill] sm:$0xff] %v6770_v7  ;;  %v6773_v37 = vadd.f32 %v4927_v57, %v1958_v19  ;;  %v1956_v16 = vadd.f32 %v1913_v10, %v6680_v36 }
 0x1cb   : > { %v4880_v56 = vpop.f32.mrf.mxu1  ;;  %v4928_v34 = vpop.f32.mrf.mxu0 }
 0x1cc   : > { %7357 = vst [vmem:[#allocation17_spill] sm:$0xff] %v6773_v37  ;;  %v6776_v3 = vadd.f32 %v2203_v22, %v1956_v16  ;;  %v1959_v17 = vadd.f32 %v4880_v56, %v6683_v25 }
 0x1cd   : > { %v1916_v5 = vpop.f32.mrf.mxu1  ;;  %v2206_v49 = vpop.f32.mrf.mxu0 }
 0x1ce   : > { %7358 = vst [vmem:[#allocation18_spill] sm:$0xff] %v6776_v3  ;;  %v6779_v30 = vadd.f32 %v4928_v34, %v1959_v17  ;;  %v1957_v51 = vadd.f32 %v1916_v5, %v6686_v6 }
 0x1cf   : > { %v6782_v46 = vpop.f32.mrf.mxu1  ;;  %v6784_v32 = vpop.f32.mrf.mxu0 }
 0x1d0   : > { %7359 = vst [vmem:[#allocation19_spill] sm:$0xff] %v6779_v30  ;;  %v6786_v13 = vadd.f32 %v2206_v49, %v1957_v51 }
 0x1d1   : > { %v6788_v11 = vpop.f32.mrf.mxu1  ;;  %v6790_v36 = vpop.f32.mrf.mxu0 }
 0x1d2   : > { %7360 = vst [vmem:[#allocation20_spill] sm:$0xff] %v6786_v13 }
 0x1d3   : > { %v6792_v0 = vpop.f32.mrf.mxu1  ;;  %v6794_v31 = vpop.f32.mrf.mxu0 }
 0x1d5   : > { %v6796_v25 = vpop.f32.mrf.mxu1  ;;  %v6798_v53 = vpop.f32.mrf.mxu0 }
 0x1d7   : > { %v6800_v61 = vpop.f32.mrf.mxu1  ;;  %v6802_v6 = vpop.f32.mrf.mxu0 }
 0x1d9   : > { %v6804_v29 = vpop.f32.mrf.mxu1  ;;  %v6806_v28 = vpop.f32.mrf.mxu0 }
 0x1db   : > { %v6808_v24 = vpop.f32.mrf.mxu1  ;;  %v6810_v58 = vpop.f32.mrf.mxu0 }
 0x1dd   : > { %v6812_v62 = vpop.f32.mrf.mxu1  ;;  %v6814_v26 = vpop.f32.mrf.mxu0 }
 0x1df   : > { %v6816_v42 = vpop.f32.mrf.mxu1  ;;  %v6818_v15 = vpop.f32.mrf.mxu0 }
 0x1e1   : > { %v6820_v35 = vpop.f32.mrf.mxu1  ;;  %v6822_v18 = vpop.f32.mrf.mxu0 }
 0x1e3   : > { %v6824_v2 = vpop.f32.mrf.mxu1  ;;  %v6826_v57 = vpop.f32.mrf.mxu0 }
 0x1e5   : > { %v6828_v19 = vpop.f32.mrf.mxu1  ;;  %v6830_v10 = vpop.f32.mrf.mxu0 }
 0x1e7   : > { %v6832_v22 = vpop.f32.mrf.mxu1  ;;  %v6834_v16 = vpop.f32.mrf.mxu0 }
 0x1e9   : > { %v6836_v56 = vpop.f32.mrf.mxu1  ;;  %v6838_v34 = vpop.f32.mrf.mxu0 }
 0x1eb   : > { %v6840_v17 = vpop.f32.mrf.mxu1  ;;  %v6842_v5 = vpop.f32.mrf.mxu0 }
 0x1ed   : > { %v6844_v49 = vpop.f32.mrf.mxu1  ;;  %v6846_v51 = vpop.f32.mrf.mxu0 }
 0x1ef   : > { %v6848_v13 = vpop.f32.mrf.mxu1  ;;  %v6850_v30 = vpop.f32.mrf.mxu0 }
 0x1f1   : > { %v6852_v3 = vpop.f32.mrf.mxu1  ;;  %v6854_v37 = vpop.f32.mrf.mxu0 }
 0x1f2   : > { %7361 = vst [vmem:[#allocation21_spill] sm:$0xff] %v6852_v3  ;;  %7362 = vst [vmem:[#allocation22_spill] sm:$0xff] %v6854_v37 }
 0x1f3   : > { %v6856_v7 = vpop.f32.mrf.mxu1  ;;  %v6858_v21 = vpop.f32.mrf.mxu0 }
 0x1f4   : > { %7363 = vst [vmem:[#allocation23_spill] sm:$0xff] %v6856_v7  ;;  %7364 = vst [vmem:[#allocation24_spill] sm:$0xff] %v6858_v21  ;;  %v6878_v7 = vpop.permute.xlu1 %3706 }
 0x1f5   : > { %v6860_v60 = vpop.f32.mrf.mxu1  ;;  %v6862_v12 = vpop.f32.mrf.mxu0  ;;  %7373 = vst [vmem:[#allocation33_spill] sm:$0xff] %v6878_v7 }
 0x1f6   : > { %7365 = vst [vmem:[#allocation25_spill] sm:$0xff] %v6860_v60  ;;  %7366 = vst [vmem:[#allocation26_spill] sm:$0xff] %v6862_v12 }
 0x1f7   : > { %v6864_v23 = vpop.f32.mrf.mxu1  ;;  %v6866_v47 = vpop.f32.mrf.mxu0 }
 0x1f8   : > { %7367 = vst [vmem:[#allocation27_spill] sm:$0xff] %v6864_v23  ;;  %7368 = vst [vmem:[#allocation28_spill] sm:$0xff] %v6866_v47  ;;  %v6888_v47 = vpop.permute.xlu0 %3701  ;;  %v6894_v3 = vpop.permute.xlu1 %3711 }
 0x1f9   : > { %v6868_v39 = vpop.f32.mrf.mxu1  ;;  %v6870_v14 = vpop.f32.mrf.mxu0  ;;  %7378 = vst [vmem:[#allocation38_spill] sm:$0xff] %v6888_v47 }
 0x1fa   : > { %7369 = vst [vmem:[#allocation29_spill] sm:$0xff] %v6868_v39  ;;  %7370 = vst [vmem:[#allocation30_spill] sm:$0xff] %v6870_v14 }
 0x1fb   : > { %v6874_v52 = vpop.f32.mrf.mxu1  ;;  %v6876_v37 = vpop.f32.mrf.mxu0 }
 0x1fc   : > { %7371 = vst [vmem:[#allocation31_spill] sm:$0xff] %v6874_v52  ;;  %7372 = vst [vmem:[#allocation32_spill] sm:$0xff] %v6876_v37  ;;  %v6910_v47 = vpop.permute.xlu1 %3721 }
 0x1fd   : > { %v6880_v21 = vpop.f32.mrf.mxu1  ;;  %v6882_v60 = vpop.f32.mrf.mxu0  ;;  %7387 = vst [vmem:[#allocation47_spill] sm:$0xff] %v6910_v47 }
 0x1fe   : > { %7374 = vst [vmem:[#allocation34_spill] sm:$0xff] %v6880_v21  ;;  %7375 = vst [vmem:[#allocation35_spill] sm:$0xff] %v6882_v60  ;;  %v6904_v60 = vpop.permute.xlu0 %3716 }
 0x1ff   : > { %v6884_v12 = vpop.f32.mrf.mxu1  ;;  %v6886_v23 = vpop.f32.mrf.mxu0 }
 0x200   : > { %7376 = vst [vmem:[#allocation36_spill] sm:$0xff] %v6884_v12  ;;  %7377 = vst [vmem:[#allocation37_spill] sm:$0xff] %v6886_v23 }
 0x201   : > { %v6890_v39 = vpop.f32.mrf.mxu1  ;;  %v6892_v14 = vpop.f32.mrf.mxu0 }
 0x202   : > { %7379 = vst [vmem:[#allocation39_spill] sm:$0xff] %v6890_v39  ;;  %7380 = vst [vmem:[#allocation40_spill] sm:$0xff] %v6892_v14 }
 0x203   : > { %v6896_v52 = vpop.f32.mrf.mxu1  ;;  %v6898_v37 = vpop.f32.mrf.mxu0 }
 0x204   : > { %7381 = vst [vmem:[#allocation41_spill] sm:$0xff] %v6896_v52  ;;  %7382 = vst [vmem:[#allocation42_spill] sm:$0xff] %v6898_v37  ;;  %v2630_v52 = vadd.f32 %v6782_v46, %v6689_v48 }
 0x205   : > { %v6900_v7 = vpop.f32.mrf.mxu1  ;;  %v6902_v21 = vpop.f32.mrf.mxu0 }
 0x206   : > { %7383 = vst [vmem:[#allocation43_spill] sm:$0xff] %v6900_v7  ;;  %7384 = vst [vmem:[#allocation44_spill] sm:$0xff] %v6902_v21  ;;  %v2628_v21 = vadd.f32 %v6788_v11, %v6692_v59  ;;  %v2909_v46 = vadd.f32 %v6784_v32, %v2630_v52  ;;  %v2632_v59 = vadd.f32 %v6804_v29, %v6704_v50  ;;  %v6939_v11 = vpop.permute.xlu1 %3731  ;;  %v6952_v50 = vld [vmem:[%s7244_s2] ss:$0 sm:$0xff] }
 0x207   : > { %v6906_v12 = vpop.f32.mrf.mxu1  ;;  %v6908_v23 = vpop.f32.mrf.mxu0  ;;  %v2633_v52 = vadd.f32 %v6812_v62, %v6710_v41  ;;  %v2639_v41 = vadd.f32 %v6824_v2, %v6719_v27 }
 0x208   : > { %7385 = vst [vmem:[#allocation45_spill] sm:$0xff] %v6906_v12  ;;  %7386 = vst [vmem:[#allocation46_spill] sm:$0xff] %v6908_v23  ;;  %v2631_v12 = vadd.f32 %v6792_v0, %v6695_v38  ;;  %v6926_v23 = vpop.permute.xlu0 %3726 }
 0x209   : > { %v6912_v39 = vpop.f32.mrf.mxu1  ;;  %v6914_v14 = vpop.f32.mrf.mxu0 }
 0x20a   : > { %7388 = vst [vmem:[#allocation48_spill] sm:$0xff] %v6912_v39  ;;  %7389 = vst [vmem:[#allocation49_spill] sm:$0xff] %v6914_v14  ;;  %v2629_v39 = vadd.f32 %v6796_v25, %v6698_v63  ;;  %v2634_v14 = vadd.f32 %v6800_v61, %v6701_v8  ;;  %v2910_v63 = vadd.f32 %v6794_v31, %v2631_v12 }
 0x20b   : > { %v6918_v37 = vpop.f32.mrf.mxu1  ;;  %v6920_v7 = vpop.f32.mrf.mxu0  ;;  %v2911_v12 = vadd.f32 %v6806_v28, %v2632_v59 }
 0x20c   : > { %7390 = vst [vmem:[#allocation50_spill] sm:$0xff] %v6920_v7  ;;  %v2907_v7 = vadd.f32 %v6790_v36, %v2628_v21  ;;  %v2908_v8 = vadd.f32 %v6798_v53, %v2629_v39  ;;  %v2913_v61 = vadd.f32 %v6802_v6, %v2634_v14  ;;  %v2638_v39 = vadd.f32 %v6816_v42, %v6713_v9  ;;  %v6957_v36 = vpop.permute.xlu0 %3736 }
 0x20d   : > { %v6932_v47 = vpop.f32.mrf.mxu1  ;;  %v6934_v48 = vpop.f32.mrf.mxu0  ;;  %v2637_v53 = vadd.f32 %v6828_v19, %v6722_v4  ;;  %v2642_v6 = vadd.f32 %v6832_v22, %v6725_v44  ;;  %v2640_v9 = vadd.f32 %v6836_v56, %v6728_v1  ;;  %v2912_v42 = vadd.f32 %v6814_v26, %v2633_v52  ;;  %v7394_v52 = vld [vmem:[#allocation23_spill] sm:$0xff] }
 0x20e   : > { %7391 = vst [vmem:[#allocation51_spill] sm:$0xff] %v6934_v48  ;;  %v2635_v48 = vadd.f32 %v6808_v24, %v6707_v54  ;;  %v2636_v54 = vadd.f32 %v6820_v35, %v6716_v40  ;;  %v6969_v24 = vpop.permute.xlu1 %3741  ;;  %v2643_v4 = vadd.f32 %v6840_v17, %v6731_v20  ;;  %v2641_v44 = vadd.f32 %v6844_v49, %v6734_v43 }
 0x20f   : > { %v5043_v38 = vpop.f32.mrf.mxu1  ;;  %v5091_v0 = vpop.f32.mrf.mxu0  ;;  %v2646_v1 = vadd.f32 %v6848_v13, %v6737_v33  ;;  %v6987_v20 = vadd.f32 %v6826_v57, %v2639_v41  ;;  %v6990_v43 = vadd.f32 %v6830_v10, %v2637_v53  ;;  %v6993_v33 = vadd.f32 %v6834_v16, %v2642_v6  ;;  %v7398_v41 = vld [vmem:[#allocation7_spill] sm:$0xff]  ;;  %v7400_v6 = vld [vmem:[#allocation38_spill] sm:$0xff] }
 0x210   : > { %v3217_v25 = vadd.f32 %v5043_v38, %v2909_v46  ;;  %v2914_v27 = vadd.f32 %v6810_v58, %v2635_v48  ;;  %v2917_v58 = vadd.f32 %v6818_v15, %v2638_v39  ;;  %v6984_v26 = vadd.f32 %v6822_v18, %v2636_v54  ;;  %v6998_v48 = vpop.permute.xlu0 %3746  ;;  %v7397_v39 = vld [vmem:[#allocation33_spill] sm:$0xff]  ;;  %v7399_v53 = vld [vmem:[#allocation27_spill] sm:$0xff] }
 0x211   : > { %v3088_v32 = vpop.f32.mrf.mxu1  ;;  %v3432_v21 = vpop.f32.mrf.mxu0  ;;  %v6996_v13 = vadd.f32 %v6838_v34, %v2640_v9  ;;  %v7003_v57 = vadd.f32 %v6842_v5, %v2643_v4  ;;  %v7006_v10 = vadd.f32 %v6846_v51, %v2641_v44  ;;  %v7010_v34 = vadd.f32 %v6850_v30, %v2646_v1  ;;  %v7393_v51 = vld [vmem:[#allocation9_spill] sm:$0xff]  ;;  %v7401_v9 = vld [vmem:[#allocation8_spill] sm:$0xff] }
 0x212   : > { %v3561_v14 = vadd.f32 %v5091_v0, %v3217_v25  ;;  %v3215_v31 = vadd.f32 %v3088_v32, %v2907_v7  ;;  %v7392_v0 = vld [vmem:[#allocation21_spill] sm:$0xff]  ;;  %v7014_v25 = vpop.permute.xlu1 %3751  ;;  %v2647_v32 = vadd.f32 %v7394_v52, %v7393_v51 }
 0x213   : > { %v5044_v29 = vpop.f32.mrf.mxu1  ;;  %v5092_v28 = vpop.f32.mrf.mxu0 }
 0x214   : > { %v3600_v7 = vadd.f32 %v6952_v50, %v3561_v14  ;;  %v3559_v40 = vadd.f32 %v3432_v21, %v3215_v31  ;;  %v3218_v62 = vadd.f32 %v5044_v29, %v2910_v63  ;;  %v2644_v63 = vadd.f32 %v7392_v0, %v6740_v55 }
 0x215   : > { %v3091_v35 = vpop.f32.mrf.mxu1  ;;  %v3435_v2 = vpop.f32.mrf.mxu0  ;;  %v2650_v55 = vadd.f32 %v7399_v53, %v7398_v41 }
 0x216   : > { %3632 = vst [vmem:[%s5419_s19 + $0x10] sm:$0xff] %v3600_v7  ;;  %v3598_v19 = vadd.f32 %v6952_v50, %v3559_v40  ;;  %v3562_v22 = vadd.f32 %v5092_v28, %v3218_v62  ;;  %v3216_v56 = vadd.f32 %v3091_v35, %v2908_v8  ;;  %v3856_v14 = vmul.f32 %v7397_v39, %v3600_v7  ;;  %v7402_v40 = vld [vmem:[#allocation29_spill] sm:$0xff]  ;;  %v7044_v51 = vpop.permute.xlu1 %3761 }
 0x217   : > { %v5047_v17 = vpop.f32.mrf.mxu1  ;;  %v5095_v49 = vpop.f32.mrf.mxu0  ;;  %v2648_v62 = vadd.f32 %v7402_v40, %v7401_v9 }
 0x218   : > { %3630 = vst [vmem:[%s5419_s19] sm:$0xff] %v3598_v19  ;;  %v3601_v15 = vadd.f32 %v6952_v50, %v3562_v22  ;;  %v3560_v18 = vadd.f32 %v3435_v2, %v3216_v56  ;;  %v3854_v46 = vmul.f32 %v6872_v45, %v3598_v19  ;;  %v3221_v59 = vadd.f32 %v5047_v17, %v2913_v61  ;;  %v7395_v45 = vld [vmem:[#allocation10_spill] sm:$0xff]  ;;  %v7396_v61 = vld [vmem:[#allocation25_spill] sm:$0xff]  ;;  %v7033_v22 = vpop.permute.xlu0 %3756 }
 0x219   : > { %v3104_v16 = vpop.f32.mrf.mxu1  ;;  %v3448_v38 = vpop.f32.mrf.mxu0  ;;  %v2645_v21 = vadd.f32 %v7396_v61, %v7395_v45  ;;  %v7405_v45 = vld [vmem:[#allocation26_spill] sm:$0xff] }
 0x21a   : > { %3633 = vst [vmem:[%s5419_s19 + $0x18] sm:$0xff] %v3601_v15  ;;  %v3599_v5 = vadd.f32 %v6952_v50, %v3560_v18  ;;  %v3219_v8 = vadd.f32 %v3104_v16, %v2911_v12  ;;  %v3565_v31 = vadd.f32 %v5095_v49, %v3221_v59  ;;  %v3924_v4 = vmul.f32 %v3854_v46, %v3598_v19  ;;  %v7404_v16 = vld [vmem:[#allocation24_spill] sm:$0xff] }
 0x21b   : > { %v5048_v30 = vpop.f32.mrf.mxu1  ;;  %v5096_v54 = vpop.f32.mrf.mxu0  ;;  %v3857_v44 = vmul.f32 %v6894_v3, %v3601_v15  ;;  %v7040_v19 = vadd.f32 %v7404_v16, %v2647_v32  ;;  %v3926_v3 = vmul.f32 %v3856_v14, %v3600_v7  ;;  %v7050_v61 = vadd.f32 %v7405_v45, %v2645_v21  ;;  %v7406_v32 = vld [vmem:[#allocation28_spill] sm:$0xff] }
 0x21c   : > { %3631 = vst [vmem:[%s5419_s19 + $0x8] sm:$0xff] %v3599_v5  ;;  %v3855_v29 = vmul.f32 %v7400_v6, %v3599_v5  ;;  %v3563_v28 = vadd.f32 %v3448_v38, %v3219_v8  ;;  %v3222_v12 = vadd.f32 %v5048_v30, %v2914_v27  ;;  %v7031_v35 = vadd.f32 %v6952_v50, %v3565_v31  ;;  %v7403_v27 = vld [vmem:[#allocation22_spill] sm:$0xff]  ;;  %v7063_v40 = vpop.permute.xlu0 %3766  ;;  %v7073_v16 = vpop.permute.xlu1 %3771 }
 0x21d   : > { %v3107_v2 = vpop.f32.mrf.mxu1  ;;  %v3451_v1 = vpop.f32.mrf.mxu0  ;;  %v7037_v59 = vadd.f32 %v7403_v27, %v2644_v63  ;;  %v7053_v7 = vadd.f32 %v7406_v32, %v2650_v55 }
 0x21e   : > { %v3886_v56 = vadd.f32 %v3855_v29, %v3854_v46  ;;  %v3925_v17 = vmul.f32 %v3855_v29, %v3599_v5  ;;  %v3602_v49 = vadd.f32 %v6952_v50, %v3563_v28  ;;  %v3566_v18 = vadd.f32 %v5096_v54, %v3222_v12  ;;  %3636 = vst [vmem:[%s5419_s19 + $0x30] sm:$0xff] %v7031_v35  ;;  %v7407_v54 = vld [vmem:[#allocation30_spill] sm:$0xff]  ;;  %v7409_v29 = vld [vmem:[#allocation31_spill] sm:$0xff] }
 0x21f   : > { %v3220_v38 = vadd.f32 %v3107_v2, %v2912_v42  ;;  %v5051_v0 = vpop.f32.mrf.mxu1  ;;  %v5099_v8 = vpop.f32.mrf.mxu0  ;;  %v7056_v41 = vadd.f32 %v7407_v54, %v2648_v62 }
 0x220   : > { %v3887_v46 = vadd.f32 %v3886_v56, %v3856_v14  ;;  %v3956_v5 = vadd.f32 %v3925_v17, %v3924_v4  ;;  %3634 = vst [vmem:[%s5419_s19 + $0x20] sm:$0xff] %v3602_v49  ;;  %v3858_v52 = vmul.f32 %v6904_v60, %v3602_v49  ;;  %v3605_v63 = vadd.f32 %v6952_v50, %v3566_v18  ;;  %v7408_v60 = vld [vmem:[#allocation11_spill] sm:$0xff] }
 0x221   : > { %v3564_v39 = vadd.f32 %v3451_v1, %v3220_v38  ;;  %v3225_v42 = vadd.f32 %v5051_v0, %v2917_v58  ;;  %v3120_v31 = vpop.f32.mrf.mxu1  ;;  %v3464_v30 = vpop.f32.mrf.mxu0  ;;  %v3927_v14 = vmul.f32 %v3857_v44, %v3601_v15  ;;  %v2651_v28 = vadd.f32 %v7409_v29, %v7408_v60  ;;  %v7410_v1 = vld [vmem:[#allocation47_spill] sm:$0xff] }
 0x222   : > { %v3957_v53 = vadd.f32 %v3956_v5, %v3926_v3  ;;  %v3888_v6 = vadd.f32 %v3887_v46, %v3857_v44  ;;  %3637 = vst [vmem:[%s5419_s19 + $0x38] sm:$0xff] %v3605_v63  ;;  %v3223_v55 = vadd.f32 %v3120_v31, %v6984_v26  ;;  %v3928_v62 = vmul.f32 %v3858_v52, %v3602_v49  ;;  %v7411_v3 = vld [vmem:[#allocation12_spill] sm:$0xff]  ;;  %v7412_v49 = vld [vmem:[#allocation34_spill] sm:$0xff]  ;;  %v7090_v29 = vpop.permute.xlu0 %3776 }
 0x223   : > { %v3603_v21 = vadd.f32 %v6952_v50, %v3564_v39  ;;  %v3569_v12 = vadd.f32 %v5099_v8, %v3225_v42  ;;  %v5052_v9 = vpop.f32.mrf.mxu1  ;;  %v5100_v58 = vpop.f32.mrf.mxu0  ;;  %v3860_v44 = vmul.f32 %v6926_v23, %v7031_v35  ;;  %v2649_v38 = vadd.f32 %v7412_v49, %v7411_v3  ;;  %v7413_v39 = vld [vmem:[#allocation32_spill] sm:$0xff] }
 0x224   : > { %v3889_v4 = vadd.f32 %v3888_v6, %v3858_v52  ;;  %v3958_v2 = vadd.f32 %v3957_v53, %v3927_v14  ;;  %v3226_v15 = vadd.f32 %v5052_v9, %v6987_v20  ;;  %v3567_v26 = vadd.f32 %v3464_v30, %v3223_v55 }
 0x225   : > { %3635 = vst [vmem:[%s5419_s19 + $0x28] sm:$0xff] %v3603_v21  ;;  %v3859_v56 = vmul.f32 %v7410_v1, %v3603_v21  ;;  %v7071_v17 = vadd.f32 %v6952_v50, %v3569_v12  ;;  %v3123_v18 = vpop.f32.mrf.mxu1  ;;  %v3467_v27 = vpop.f32.mrf.mxu0  ;;  %v3861_v23 = vmul.f32 %v6939_v11, %v3605_v63  ;;  %v7083_v42 = vadd.f32 %v7413_v39, %v2651_v28  ;;  %v7415_v28 = vld [vmem:[#allocation36_spill] sm:$0xff]  ;;  %v7418_v39 = vld [vmem:[#allocation14_spill] sm:$0xff] }
 0x226   : > { %v3959_v0 = vadd.f32 %v3958_v2, %v3928_v62  ;;  %v3570_v20 = vadd.f32 %v5100_v58, %v3226_v15  ;;  %v3224_v8 = vadd.f32 %v3123_v18, %v6990_v43  ;;  %v3606_v52 = vadd.f32 %v6952_v50, %v3567_v26 }
 0x227   : > { %v3890_v46 = vadd.f32 %v3889_v4, %v3859_v56  ;;  %v3929_v5 = vmul.f32 %v3859_v56, %v3603_v21  ;;  %3640 = vst [vmem:[%s5419_s19 + $0x50] sm:$0xff] %v7071_v17  ;;  %v5055_v45 = vpop.f32.mrf.mxu1  ;;  %v5103_v32 = vpop.f32.mrf.mxu0  ;;  %v3930_v43 = vmul.f32 %v3860_v44, %v7031_v35  ;;  %v7414_v21 = vld [vmem:[#allocation13_spill] sm:$0xff]  ;;  %v7416_v35 = vld [vmem:[#allocation35_spill] sm:$0xff]  ;;  %v3931_v4 = vmul.f32 %v3861_v23, %v3605_v63 }
 0x228   : > { %v3609_v31 = vadd.f32 %v6952_v50, %v3570_v20  ;;  %v3568_v30 = vadd.f32 %v3467_v27, %v3224_v8  ;;  %v3229_v54 = vadd.f32 %v5055_v45, %v6993_v33  ;;  %3638 = vst [vmem:[%s5419_s19 + $0x40] sm:$0xff] %v3606_v52  ;;  %v3862_v53 = vmul.f32 %v6957_v36, %v3606_v52 }
 0x229   : > { %v3891_v11 = vadd.f32 %v3890_v46, %v3860_v44  ;;  %v3960_v14 = vadd.f32 %v3959_v0, %v3929_v5  ;;  %v3136_v6 = vpop.f32.mrf.mxu1  ;;  %v3480_v60 = vpop.f32.mrf.mxu0  ;;  %v2654_v12 = vadd.f32 %v7415_v28, %v7414_v21  ;;  %v7098_v58 = vadd.f32 %v7416_v35, %v2649_v38  ;;  %v7417_v0 = vld [vmem:[#allocation37_spill] sm:$0xff]  ;;  %v7420_v28 = vld [vmem:[#allocation15_spill] sm:$0xff] }
 0x22a   : > { %3641 = vst [vmem:[%s5419_s19 + $0x58] sm:$0xff] %v3609_v31  ;;  %v3607_v55 = vadd.f32 %v6952_v50, %v3568_v30  ;;  %v3573_v9 = vadd.f32 %v5103_v32, %v3229_v54  ;;  %v3227_v33 = vadd.f32 %v3136_v6, %v6996_v13  ;;  %v7100_v44 = vpop.permute.xlu1 %3781  ;;  %v3864_v1 = vmul.f32 %v6998_v48, %v7071_v17  ;;  %v7118_v32 = vpop.permute.xlu0 %3786  ;;  %v7419_v30 = vld [vmem:[#allocation39_spill] sm:$0xff] }
 0x22b   : > { %v3961_v62 = vadd.f32 %v3960_v14, %v3930_v43  ;;  %v3892_v36 = vadd.f32 %v3891_v11, %v3861_v23  ;;  %v5056_v2 = vpop.f32.mrf.mxu1  ;;  %v5104_v15 = vpop.f32.mrf.mxu0  ;;  %v3932_v27 = vmul.f32 %v3862_v53, %v3606_v52  ;;  %v7111_v20 = vadd.f32 %v7417_v0, %v2654_v12  ;;  %v7421_v12 = vld [vmem:[#allocation41_spill] sm:$0xff]  ;;  %v7424_v0 = vld [vmem:[#allocation43_spill] sm:$0xff] }
 0x22c   : > { %3639 = vst [vmem:[%s5419_s19 + $0x48] sm:$0xff] %v3607_v55  ;;  %v3863_v56 = vmul.f32 %v6969_v24, %v3607_v55  ;;  %v7107_v26 = vadd.f32 %v6952_v50, %v3573_v9  ;;  %v3571_v13 = vadd.f32 %v3480_v60, %v3227_v33  ;;  %v3230_v3 = vadd.f32 %v5056_v2, %v7003_v57 }
 0x22d   : > { %v3893_v18 = vadd.f32 %v3892_v36, %v3862_v53  ;;  %v3962_v63 = vadd.f32 %v3961_v62, %v3931_v4  ;;  %v3139_v49 = vpop.f32.mrf.mxu1  ;;  %v3483_v38 = vpop.f32.mrf.mxu0  ;;  %v3865_v46 = vmul.f32 %v7014_v25, %v3609_v31  ;;  %v2652_v54 = vadd.f32 %v7419_v30, %v7418_v39 }
 0x22e   : > { %v3933_v8 = vmul.f32 %v3863_v56, %v3607_v55  ;;  %3644 = vst [vmem:[%s5419_s19 + $0x70] sm:$0xff] %v7107_v26  ;;  %v3610_v24 = vadd.f32 %v6952_v50, %v3571_v13  ;;  %v3228_v48 = vadd.f32 %v3139_v49, %v7006_v10  ;;  %v3574_v52 = vadd.f32 %v5104_v15, %v3230_v3  ;;  %v7129_v9 = vpop.permute.xlu1 %3791  ;;  %v7145_v49 = vpop.permute.xlu0 %3796 }
 0x22f   : > { %v3963_v23 = vadd.f32 %v3962_v63, %v3932_v27  ;;  %v3894_v5 = vadd.f32 %v3893_v18, %v3863_v56  ;;  %v5059_v45 = vpop.f32.mrf.mxu1  ;;  %v5107_v57 = vpop.f32.mrf.mxu0  ;;  %v3934_v43 = vmul.f32 %v3864_v1, %v7071_v17  ;;  %v2655_v55 = vadd.f32 %v7421_v12, %v7420_v28  ;;  %v7427_v28 = vld [vmem:[#allocation17_spill] sm:$0xff] }
 0x230   : > { %3642 = vst [vmem:[%s5419_s19 + $0x60] sm:$0xff] %v3610_v24  ;;  %v3572_v11 = vadd.f32 %v3483_v38, %v3228_v48  ;;  %v3233_v14 = vadd.f32 %v5059_v45, %v7010_v34  ;;  %v3866_v25 = vmul.f32 %v7033_v22, %v3610_v24  ;;  %v3613_v6 = vadd.f32 %v6952_v50, %v3574_v52  ;;  %v7423_v38 = vld [vmem:[#allocation16_spill] sm:$0xff]  ;;  %v7428_v12 = vld [vmem:[#allocation45_spill] sm:$0xff] }
 0x231   : > { %v3895_v10 = vadd.f32 %v3894_v5, %v3864_v1  ;;  %v3964_v53 = vadd.f32 %v3963_v23, %v3933_v8  ;;  %v3152_v60 = vpop.f32.mrf.mxu1  ;;  %v3496_v21 = vpop.f32.mrf.mxu0  ;;  %v3935_v35 = vmul.f32 %v3865_v46, %v3609_v31  ;;  %v3868_v22 = vmul.f32 %v7063_v40, %v7107_v26 }
 0x232   : > { %v3611_v17 = vadd.f32 %v6952_v50, %v3572_v11  ;;  %v3577_v33 = vadd.f32 %v5107_v57, %v3233_v14  ;;  %v3231_v34 = vadd.f32 %v3152_v60, %v7037_v59  ;;  %3645 = vst [vmem:[%s5419_s19 + $0x78] sm:$0xff] %v3613_v6  ;;  %v7422_v59 = vld [vmem:[#allocation40_spill] sm:$0xff]  ;;  %v3936_v27 = vmul.f32 %v3866_v25, %v3610_v24  ;;  %v7425_v57 = vld [vmem:[#allocation42_spill] sm:$0xff]  ;;  %v7157_v30 = vpop.permute.xlu1 %3801 }
 0x233   : > { %v3965_v4 = vadd.f32 %v3964_v53, %v3934_v43  ;;  %v3896_v62 = vadd.f32 %v3895_v10, %v3865_v46  ;;  %v5060_v36 = vpop.f32.mrf.mxu1  ;;  %v5108_v2 = vpop.f32.mrf.mxu0  ;;  %v7143_v31 = vadd.f32 %v7422_v59, %v2652_v54  ;;  %v3869_v46 = vmul.f32 %v7073_v16, %v3613_v6  ;;  %v7426_v60 = vld [vmem:[#allocation44_spill] sm:$0xff] }
 0x234   : > { %3643 = vst [vmem:[%s5419_s19 + $0x68] sm:$0xff] %v3611_v17  ;;  %v3867_v15 = vmul.f32 %v7044_v51, %v3611_v17  ;;  %v7139_v1 = vadd.f32 %v6952_v50, %v3577_v33  ;;  %v3575_v56 = vadd.f32 %v3496_v21, %v3231_v34  ;;  %v3234_v13 = vadd.f32 %v5060_v36, %v7040_v19 }
 0x235   : > { %v3897_v18 = vadd.f32 %v3896_v62, %v3866_v25  ;;  %v3966_v40 = vadd.f32 %v3965_v4, %v3935_v35  ;;  %v3155_v63 = vpop.f32.mrf.mxu1  ;;  %v3499_v3 = vpop.f32.mrf.mxu0  ;;  %v2653_v51 = vadd.f32 %v7424_v0, %v7423_v38  ;;  %v7155_v39 = vadd.f32 %v7425_v57, %v2655_v55 }
 0x236   : > { %v3937_v8 = vmul.f32 %v3867_v15, %v3611_v17  ;;  %3648 = vst [vmem:[%s5419_s19 + $0x90] sm:$0xff] %v7139_v1  ;;  %v3614_v48 = vadd.f32 %v6952_v50, %v3575_v56  ;;  %v3578_v19 = vadd.f32 %v5108_v2, %v3234_v13  ;;  %v3232_v24 = vadd.f32 %v3155_v63, %v7050_v61  ;;  %v3812_v63 = vpop.permute.xlu1 %3811 }
 0x237   : > { %v3967_v23 = vadd.f32 %v3966_v40, %v3936_v27  ;;  %v3898_v5 = vadd.f32 %v3897_v18, %v3867_v15  ;;  %v5063_v52 = vpop.f32.mrf.mxu1  ;;  %v5111_v45 = vpop.f32.mrf.mxu0  ;;  %v3938_v54 = vmul.f32 %v3868_v22, %v7107_v26  ;;  %v7165_v21 = vadd.f32 %v7426_v60, %v2653_v51  ;;  %v7429_v27 = vld [vmem:[#allocation46_spill] sm:$0xff] }
 0x238   : > { %3646 = vst [vmem:[%s5419_s19 + $0x80] sm:$0xff] %v3614_v48  ;;  %v3617_v43 = vadd.f32 %v6952_v50, %v3578_v19  ;;  %v3237_v11 = vadd.f32 %v5063_v52, %v7053_v7  ;;  %v3870_v10 = vmul.f32 %v7090_v29, %v3614_v48  ;;  %v3576_v61 = vadd.f32 %v3499_v3, %v3232_v24  ;;  %v7430_v19 = vld [vmem:[#allocation18_spill] sm:$0xff] }
 0x239   : > { %v3899_v14 = vadd.f32 %v3898_v5, %v3868_v22  ;;  %v3968_v16 = vadd.f32 %v3967_v23, %v3937_v8  ;;  %v3168_v53 = vpop.f32.mrf.mxu1  ;;  %v3512_v25 = vpop.f32.mrf.mxu0  ;;  %v2658_v55 = vadd.f32 %v7428_v12, %v7427_v28  ;;  %v3939_v33 = vmul.f32 %v3869_v46, %v3613_v6  ;;  %v7431_v23 = vld [vmem:[#allocation48_spill] sm:$0xff] }
 0x23a   : > { %3649 = vst [vmem:[%s5419_s19 + $0x98] sm:$0xff] %v3617_v43  ;;  %v3581_v26 = vadd.f32 %v5111_v45, %v3237_v11  ;;  %v3235_v17 = vadd.f32 %v3168_v53, %v7056_v41  ;;  %v3615_v35 = vadd.f32 %v6952_v50, %v3576_v61  ;;  %v3807_v22 = vpop.permute.xlu0 %3806  ;;  %v3872_v62 = vmul.f32 %v7118_v32, %v7139_v1  ;;  %v7433_v61 = vld [vmem:[#allocation20_spill] sm:$0xff] }
 0x23b   : > { %v3969_v7 = vadd.f32 %v3968_v16, %v3938_v54  ;;  %v3900_v34 = vadd.f32 %v3899_v14, %v3869_v46  ;;  %v5064_v29 = vpop.f32.mrf.mxu1  ;;  %v5112_v4 = vpop.f32.mrf.mxu0  ;;  %v3940_v41 = vmul.f32 %v3870_v10, %v3614_v48  ;;  %v2937_v40 = vadd.f32 %v7429_v27, %v2658_v55  ;;  %v7432_v14 = vld [vmem:[#allocation19_spill] sm:$0xff] }
 0x23c   : > { %v7175_v36 = vadd.f32 %v6952_v50, %v3581_v26  ;;  %v3579_v2 = vadd.f32 %v3512_v25, %v3235_v17  ;;  %v3238_v15 = vadd.f32 %v5064_v29, %v7083_v42  ;;  %3647 = vst [vmem:[%s5419_s19 + $0x88] sm:$0xff] %v3615_v35  ;;  %v3871_v13 = vmul.f32 %v7100_v44, %v3615_v35  ;;  %v3822_v26 = vpop.permute.xlu1 %3821 }
 0x23d   : > { %v3901_v56 = vadd.f32 %v3900_v34, %v3870_v10  ;;  %v3970_v6 = vadd.f32 %v3969_v7, %v3939_v33  ;;  %v3171_v59 = vpop.f32.mrf.mxu1  ;;  %v3515_v18 = vpop.f32.mrf.mxu0  ;;  %v3873_v0 = vmul.f32 %v7129_v9, %v3617_v43  ;;  %v2656_v46 = vadd.f32 %v7431_v23, %v7430_v19 }
 0x23e   : > { %3652 = vst [vmem:[%s5419_s19 + $0xb0] sm:$0xff] %v7175_v36  ;;  %v3618_v32 = vadd.f32 %v6952_v50, %v3579_v2  ;;  %v3582_v3 = vadd.f32 %v5112_v4, %v3238_v15  ;;  %v3236_v38 = vadd.f32 %v3171_v59, %v7098_v58  ;;  %v3941_v8 = vmul.f32 %v3871_v13, %v3615_v35  ;;  %v3817_v10 = vpop.permute.xlu0 %3816 }
 0x23f   : > { %v3971_v42 = vadd.f32 %v3970_v6, %v3940_v41  ;;  %v3902_v51 = vadd.f32 %v3901_v56, %v3871_v13  ;;  %v5067_v48 = vpop.f32.mrf.mxu1  ;;  %v5115_v44 = vpop.f32.mrf.mxu0  ;;  %v3942_v5 = vmul.f32 %v3872_v62, %v7139_v1  ;;  %v2659_v16 = vadd.f32 %v6918_v37, %v7432_v14  ;;  %v7434_v6 = vld [vmem:[#allocation49_spill] sm:$0xff] }
 0x240   : > { %3650 = vst [vmem:[%s5419_s19 + $0xa0] sm:$0xff] %v3618_v32  ;;  %v3621_v24 = vadd.f32 %v6952_v50, %v3582_v3  ;;  %v3580_v52 = vadd.f32 %v3515_v18, %v3236_v38  ;;  %v3874_v58 = vmul.f32 %v7145_v49, %v3618_v32  ;;  %v3241_v9 = vadd.f32 %v5067_v48, %v7111_v20  ;;  %v7436_v48 = vld [vmem:[#allocation51_spill] sm:$0xff]  ;;  %v3832_v19 = vpop.permute.xlu1 %3831 }
 0x241   : > { %v3903_v45 = vadd.f32 %v3902_v51, %v3872_v62  ;;  %v3972_v57 = vadd.f32 %v3971_v42, %v3941_v8  ;;  %v3184_v54 = vpop.f32.mrf.mxu1  ;;  %v3528_v11 = vpop.f32.mrf.mxu0  ;;  %v2657_v1 = vadd.f32 %v6932_v47, %v7433_v61  ;;  %v3943_v60 = vmul.f32 %v3873_v0, %v3617_v43  ;;  %v7435_v51 = vld [vmem:[#allocation50_spill] sm:$0xff] }
 0x242   : > { %3653 = vst [vmem:[%s5419_s19 + $0xb8] sm:$0xff] %v3621_v24  ;;  %v3619_v53 = vadd.f32 %v6952_v50, %v3580_v52  ;;  %v3239_v25 = vadd.f32 %v3184_v54, %v7143_v31  ;;  %v3585_v12 = vadd.f32 %v5115_v44, %v3241_v9  ;;  %v3876_v17 = vmul.f32 %v3807_v22, %v7175_v36  ;;  %v3827_v59 = vpop.permute.xlu0 %3826 }
 0x243   : > { %v3973_v28 = vadd.f32 %v3972_v57, %v3942_v5  ;;  %v3904_v49 = vadd.f32 %v3903_v45, %v3873_v0  ;;  %v5068_v20 = vpop.f32.mrf.mxu1  ;;  %v5116_v55 = vpop.f32.mrf.mxu0  ;;  %v3944_v34 = vmul.f32 %v3874_v58, %v3618_v32  ;;  %v2935_v13 = vadd.f32 %v7434_v6, %v2656_v46 }
 0x244   : > { %3651 = vst [vmem:[%s5419_s19 + $0xa8] sm:$0xff] %v3619_v53  ;;  %v3875_v37 = vmul.f32 %v7157_v30, %v3619_v53  ;;  %v3583_v33 = vadd.f32 %v3528_v11, %v3239_v25  ;;  %v3242_v47 = vadd.f32 %v5068_v20, %v7155_v39  ;;  %v3624_v31 = vadd.f32 %v6952_v50, %v3585_v12 }
 0x245   : > { %v3905_v7 = vadd.f32 %v3904_v49, %v3874_v58  ;;  %v3974_v35 = vadd.f32 %v3973_v28, %v3943_v60  ;;  %v3187_v43 = vpop.f32.mrf.mxu1  ;;  %v3531_v29 = vpop.f32.mrf.mxu0  ;;  %v3877_v30 = vmul.f32 %v3812_v63, %v3621_v24  ;;  %v3946_v3 = vmul.f32 %v3876_v17, %v7175_v36 }
 0x246   : > { %v3945_v4 = vmul.f32 %v3875_v37, %v3619_v53  ;;  %v3622_v62 = vadd.f32 %v6952_v50, %v3583_v33  ;;  %v3586_v2 = vadd.f32 %v5116_v55, %v3242_v47  ;;  %v3240_v22 = vadd.f32 %v3187_v43, %v7165_v21  ;;  %3656 = vst [vmem:[%s5419_s19 + $0xd0] sm:$0xff] %v3624_v31  ;;  %v3837_v53 = vpop.permute.xlu0 %3836 }
 0x247   : > { %v3975_v15 = vadd.f32 %v3974_v35, %v3944_v34  ;;  %v3906_v56 = vadd.f32 %v3905_v7, %v3875_v37  ;;  %v5071_v41 = vpop.f32.mrf.mxu1  ;;  %v5119_v39 = vpop.f32.mrf.mxu0  ;;  %v2938_v8 = vadd.f32 %v7435_v51, %v2659_v16  ;;  %v2936_v44 = vadd.f32 %v7436_v48, %v2657_v1 }
 0x248   : > { %3654 = vst [vmem:[%s5419_s19 + $0xc0] sm:$0xff] %v3622_v62  ;;  %v3625_v18 = vadd.f32 %v6952_v50, %v3586_v2  ;;  %v3584_v27 = vadd.f32 %v3531_v29, %v3240_v22  ;;  %v3245_v32 = vadd.f32 %v5071_v41, %v2937_v40  ;;  %v3878_v21 = vmul.f32 %v3817_v10, %v3622_v62 }
 0x249   : > { %v3907_v38 = vadd.f32 %v3906_v56, %v3876_v17  ;;  %v3976_v42 = vadd.f32 %v3975_v15, %v3945_v4  ;;  %v3200_v63 = vpop.f32.mrf.mxu1  ;;  %v3544_v0 = vpop.f32.mrf.mxu0  ;;  %v3947_v5 = vmul.f32 %v3877_v30, %v3621_v24  ;;  %v3880_v58 = vmul.f32 %v3827_v59, %v3624_v31 }
 0x24a   : > { %3657 = vst [vmem:[%s5419_s19 + $0xd8] sm:$0xff] %v3625_v18  ;;  %v3623_v23 = vadd.f32 %v6952_v50, %v3584_v27  ;;  %v3589_v46 = vadd.f32 %v5119_v39, %v3245_v32  ;;  %v3243_v36 = vadd.f32 %v3200_v63, %v2935_v13  ;;  %v3948_v16 = vmul.f32 %v3878_v21, %v3622_v62  ;;  %v3847_v62 = vpop.permute.xlu0 %3846 }
 0x24b   : > { %v3977_v52 = vadd.f32 %v3976_v42, %v3946_v3  ;;  %v3908_v40 = vadd.f32 %v3907_v38, %v3877_v30  ;;  %v5072_v45 = vpop.f32.mrf.mxu1  ;;  %v5120_v57 = vpop.f32.mrf.mxu0  ;;  %v3881_v49 = vmul.f32 %v3832_v19, %v3625_v18  ;;  %v3950_v33 = vmul.f32 %v3880_v58, %v3624_v31 }
 0x24c   : > { %3655 = vst [vmem:[%s5419_s19 + $0xc8] sm:$0xff] %v3623_v23  ;;  %v3879_v9 = vmul.f32 %v3822_v26, %v3623_v23  ;;  %v3628_v54 = vadd.f32 %v6952_v50, %v3589_v46  ;;  %v3246_v11 = vadd.f32 %v5072_v45, %v2938_v8  ;;  %v3587_v61 = vadd.f32 %v3544_v0, %v3243_v36  ;;  %v3842_v26 = vpop.permute.xlu1 %3841 }
 0x24d   : > { %v3909_v14 = vadd.f32 %v3908_v40, %v3878_v21  ;;  %v3978_v10 = vadd.f32 %v3977_v52, %v3947_v5  ;;  %v3203_v1 = vpop.f32.mrf.mxu1  ;;  %v3547_v55 = vpop.f32.mrf.mxu0  ;;  %v3951_v43 = vmul.f32 %v3881_v49, %v3625_v18 }
 0x24e   : > { %v3949_v24 = vmul.f32 %v3879_v9, %v3623_v23  ;;  %3660 = vst [vmem:[%s5419_s19 + $0xf0] sm:$0xff] %v3628_v54  ;;  %v3590_v25 = vadd.f32 %v5120_v57, %v3246_v11  ;;  %v3244_v60 = vadd.f32 %v3203_v1, %v2936_v44  ;;  %v3626_v20 = vadd.f32 %v6952_v50, %v3587_v61 }
 0x24f   : > { %v3979_v28 = vadd.f32 %v3978_v10, %v3948_v16  ;;  %v3910_v12 = vadd.f32 %v3909_v14, %v3879_v9  ;;  %v3884_v22 = vmul.f32 %v3847_v62, %v3628_v54 }
 0x250   : > { %v3629_v17 = vadd.f32 %v6952_v50, %v3590_v25  ;;  %v3588_v37 = vadd.f32 %v3547_v55, %v3244_v60  ;;  %3658 = vst [vmem:[%s5419_s19 + $0xe0] sm:$0xff] %v3626_v20  ;;  %v3882_v34 = vmul.f32 %v3837_v53, %v3626_v20  ;;  %v3852_v41 = vpop.permute.xlu1 %3851 }
 0x251   : > { %v3911_v47 = vadd.f32 %v3910_v12, %v3880_v58  ;;  %v3980_v7 = vadd.f32 %v3979_v28, %v3949_v24  ;;  %v3954_v59 = vmul.f32 %v3884_v22, %v3628_v54 }
 0x252   : > { %3661 = vst [vmem:[%s5419_s19 + $0xf8] sm:$0xff] %v3629_v17  ;;  %v3627_v35 = vadd.f32 %v6952_v50, %v3588_v37  ;;  %v3952_v30 = vmul.f32 %v3882_v34, %v3626_v20  ;;  %v3885_v6 = vmul.f32 %v3852_v41, %v3629_v17 }
 0x253   : > { %v3981_v29 = vadd.f32 %v3980_v7, %v3950_v33  ;;  %v3912_v4 = vadd.f32 %v3911_v47, %v3881_v49 }
 0x254   : > { %3659 = vst [vmem:[%s5419_s19 + $0xe8] sm:$0xff] %v3627_v35  ;;  %v3883_v2 = vmul.f32 %v3842_v26, %v3627_v35  ;;  %v3955_v50 = vmul.f32 %v3885_v6, %v3629_v17 }
 0x255   : > { %v3913_v15 = vadd.f32 %v3912_v4, %v3882_v34  ;;  %v3982_v56 = vadd.f32 %v3981_v29, %v3951_v43 }
 0x256   : > { %v3953_v39 = vmul.f32 %v3883_v2, %v3627_v35 }
 0x257   : > { %v3983_v31 = vadd.f32 %v3982_v56, %v3952_v30  ;;  %v3914_v13 = vadd.f32 %v3913_v15, %v3883_v2 }
 0x259   : > { %v3915_v27 = vadd.f32 %v3914_v13, %v3884_v22  ;;  %v3984_v32 = vadd.f32 %v3983_v31, %v3953_v39 }
 0x25b   : > { %v3916_v18 = vadd.f32 %v3915_v27, %v3885_v6  ;;  %v3985_v3 = vadd.f32 %v3984_v32, %v3954_v59 }
 0x25d   : > { %v3917_v38 = vrot.slane %v3916_v18, 4  ;;  %v3986_v42 = vadd.f32 %v3985_v3, %v3955_v50 }
 0x25f   : > { %v3918_v21 = vadd.f32 %v3917_v38, %v3916_v18  ;;  %v3987_v63 = vrot.slane %v3986_v42, 4 }
 0x261   : > { %v3919_v0 = vrot.slane %v3918_v21, 2  ;;  %v3988_v51 = vadd.f32 %v3987_v63, %v3986_v42 }
 0x263   : > { %v3920_v8 = vadd.f32 %v3919_v0, %v3918_v21  ;;  %v3989_v48 = vrot.slane %v3988_v51, 2 }
 0x265   : > { %v3921_v44 = vrot.slane %v3920_v8, 1  ;;  %v3990_v19 = vadd.f32 %v3989_v48, %v3988_v51 }
 0x267   : > { %v3922_v23 = vadd.f32 %v3921_v44, %v3920_v8  ;;  %v3991_v46 = vrot.slane %v3990_v19, 1 }
 0x269   : > { %3923 = vst [vmem:[%s5409_s13] sm:$0xff] %v3922_v23  ;;  %v3992_v5 = vadd.f32 %v3991_v46, %v3990_v19 }
 0x26b   : > { %3993 = vst [vmem:[%s5424_s28] sm:$0xff] %v3992_v5 }
 0x26c PF: > { %s17_s25 = sadd.s32 1, %s5330_s25   ;;  %s7437_s21 = smov %s5322_s23 }
 0x26d   : > { %p14_p13 = scmp.ge.s32.totalorder %s17_s25, 6   ;;  %s7438_s22 = smov %s5326_s24 }
 0x26e   : > { %s7439_s23 = smov %s7442_s26  ;;  %s7440_s24 = smov %s7446_s27 }
 0x26f   :  { %16 = sbr.rel (!%p14_p13) target bundleno = 3 (0x3), region = 193 }
 0x274   :  { %4065 = vsyncmov [#allocation3] }
 0x277   :  { %s4066_s13 = vpop.sfrf %4065 }
 0x278   :  { %p4463_p0 = scmp.ne.s32.totalorder %s4066_s13, 0 }
 0x27a   :  { %4070 = shalt.err (%p4463_p0)  }
 0x27b   :  { %4072 = vsyncmov [#allocation3 + $0x1] }
 0x27e   :  { %s4073_s19 = vpop.sfrf %4072 }
 0x27f   :  { %p4464_p1 = scmp.ne.s32.totalorder %s4073_s19, 0 }
 0x281   :  { %4077 = shalt.err (%p4464_p1)  }

</bundles_post_ra>
